<compile_context>
chip_gen: v6e
topology: v6e:2x2x1
jax: 0.10.0
libtpu: 0.0.40
codegen_flags: <defaults>
</compile_context>

<pallas_src>
import math
from functools import partial

import jax
import jax.numpy as jnp
from jax.experimental import pallas as pl
from jax.experimental.pallas import tpu as pltpu

EPS = 1e-6
NEG_INF = -1e9


# ------------------------- in-kernel helpers -------------------------

def _normalize(x, alpha, bias, dim):
    """Tutorial Normalization: alpha*(x-mean)/(std_unbiased+eps)+bias (f32)."""
    mean = jnp.mean(x, axis=-1, keepdims=True)
    cen = x - mean
    var = jnp.sum(cen * cen, axis=-1, keepdims=True) * (1.0 / (dim - 1))
    inv = pl.reciprocal(jnp.sqrt(var) + EPS, approx=True)
    return alpha * (cen * inv) + bias


def _mha_heads(q, k, v, m, wo, bo, heads, scale):
    """Multi-head attention on (Sq,D)/(Sk,D) activations, heads unrolled in-kernel.

    Avoids per-head pallas_calls, per-head materialized masks and HBM transposes.
    The concat+output-projection is folded into a per-head accumulation:
      concat(attn_h) @ Wo == sum_h attn_h @ Wo[h*dk:(h+1)*dk, :]
    """
    sq, dim = q.shape
    dk = dim // heads
    acc = jnp.zeros((sq, dim), jnp.float32)
    for h in range(heads):
        sl = slice(h * dk, (h + 1) * dk)
        qh = q[:, sl]
        kh = k[:, sl]
        vh = v[:, sl]
        s = jax.lax.dot_general(qh, kh, (((1,), (1,)), ((), ())),
                                preferred_element_type=jnp.float32) * scale
        s = jnp.where(m == 0.0, NEG_INF, s)
        s = s - jnp.max(s, axis=-1, keepdims=True)
        e = jnp.exp(s)
        p = e * pl.reciprocal(jnp.sum(e, axis=-1, keepdims=True), approx=True)
        ctx = jnp.dot(p, vh, preferred_element_type=jnp.float32)          # (Sq, dk)
        acc = acc + jnp.dot(ctx, wo[sl, :], preferred_element_type=jnp.float32)
    return acc + bo


# ------------------------- fused sub-layer kernels -------------------------

def _self_block_body(x, pe, na, nb, wqkv, bqkv, wo, bo, m,
                     *, heads, dim, attn_scale, pe_scale):
    if pe is not None:                       # fold positional encoding into 1st layer
        x = x * pe_scale + pe
    y = _normalize(x, na, nb, dim)
    qkv = jnp.dot(y, wqkv, preferred_element_type=jnp.float32) + bqkv     # (Sq, 3D)
    attn = _mha_heads(qkv[:, :dim], qkv[:, dim:2 * dim], qkv[:, 2 * dim:],
                      m, wo, bo, heads, attn_scale)
    return x + attn                          # residual (dropout = identity, eval)


def _self_block_kernel(x_ref, na_ref, nb_ref, wqkv_ref, bqkv_ref, wo_ref, bo_ref,
                       m_ref, o_ref, *, heads, dim, attn_scale):
    o_ref[0] = _self_block_body(
        x_ref[0], None, na_ref[...], nb_ref[...], wqkv_ref[...], bqkv_ref[...],
        wo_ref[...], bo_ref[...], m_ref[0],
        heads=heads, dim=dim, attn_scale=attn_scale, pe_scale=None)


def _self_block_pe_kernel(x_ref, pe_ref, na_ref, nb_ref, wqkv_ref, bqkv_ref, wo_ref,
                          bo_ref, m_ref, o_ref, *, heads, dim, attn_scale, pe_scale):
    o_ref[0] = _self_block_body(
        x_ref[0], pe_ref[0], na_ref[...], nb_ref[...], wqkv_ref[...], bqkv_ref[...],
        wo_ref[...], bo_ref[...], m_ref[0],
        heads=heads, dim=dim, attn_scale=attn_scale, pe_scale=pe_scale)


def _cross_block_kernel(x_ref, e_ref, na_ref, nb_ref, wq_ref, bq_ref, wkv_ref,
                        bkv_ref, wo_ref, bo_ref, m_ref, o_ref,
                        *, heads, dim, attn_scale):
    x = x_ref[0]
    y = _normalize(x, na_ref[...], nb_ref[...], dim)
    q = jnp.dot(y, wq_ref[...], preferred_element_type=jnp.float32) + bq_ref[...]
    kv = jnp.dot(e_ref[0], wkv_ref[...], preferred_element_type=jnp.float32) + bkv_ref[...]
    attn = _mha_heads(q, kv[:, :dim], kv[:, dim:], m_ref[0],
                      wo_ref[...], bo_ref[...], heads, attn_scale)
    o_ref[0] = x + attn


def _ffn_block_kernel(x_ref, na_ref, nb_ref, w1_ref, b1_ref, w2_ref, b2_ref, o_ref,
                      *, dim):
    x = x_ref[...]
    y = _normalize(x, na_ref[...], nb_ref[...], dim)
    h = jnp.dot(y, w1_ref[...], preferred_element_type=jnp.float32) + b1_ref[...]
    h = jnp.maximum(h, 0.0)
    o_ref[...] = x + jnp.dot(h, w2_ref[...], preferred_element_type=jnp.float32) + b2_ref[...]


def _ln_kernel(x_ref, a_ref, b_ref, o_ref, *, dim):
    o_ref[...] = _normalize(x_ref[...], a_ref[...], b_ref[...], dim)


def _final_kernel(x_ref, a_ref, b_ref, w_ref, bias_ref, o_ref, *, dim):
    y = _normalize(x_ref[...], a_ref[...], b_ref[...], dim)
    o_ref[...] = jnp.dot(y, w_ref[...], preferred_element_type=jnp.float32) + bias_ref[...]


# ------------------------- pallas_call wrappers -------------------------

def _row_blocks(m):
    """Pick a row tile (multiple of 8) giving >=2 parallel grid steps when possible."""
    for rb in (256, 128, 64, 32, 16, 8):
        if m % rb == 0 and m // rb >= 2:
            return rb, m // rb
    return m, 1


_PARALLEL1 = pltpu.CompilerParams(dimension_semantics=("parallel",))


def self_attn_block(x, mask, p, heads, pe=None):
    """Fused: [opt PE] + LayerNorm + QKV(fused) + MHA + out-proj + residual."""
    B, S, D = x.shape
    mq, sk = mask.shape[1], mask.shape[2]
    attn_scale = 1.0 / math.sqrt(D // heads)

    args = [x]
    in_specs = [pl.BlockSpec((1, S, D), lambda b: (b, 0, 0))]
    if pe is not None:
        kern = partial(_self_block_pe_kernel, heads=heads, dim=D,
                       attn_scale=attn_scale, pe_scale=math.sqrt(D))
        args.append(pe[None, :S, :])
        in_specs.append(pl.BlockSpec((1, S, D), lambda b: (0, 0, 0)))
    else:
        kern = partial(_self_block_kernel, heads=heads, dim=D, attn_scale=attn_scale)

    args += [p["n_a"].reshape(1, D), p["n_b"].reshape(1, D),
             p["wqkv"], p["bqkv"].reshape(1, 3 * D),
             p["wo"], p["bo"].reshape(1, D),
             mask.astype(jnp.float32)]
    in_specs += [pl.BlockSpec((1, D), lambda b: (0, 0)),
                 pl.BlockSpec((1, D), lambda b: (0, 0)),
                 pl.BlockSpec((D, 3 * D), lambda b: (0, 0)),
                 pl.BlockSpec((1, 3 * D), lambda b: (0, 0)),
                 pl.BlockSpec((D, D), lambda b: (0, 0)),
                 pl.BlockSpec((1, D), lambda b: (0, 0)),
                 pl.BlockSpec((1, mq, sk), lambda b: (b, 0, 0))]

    return pl.pallas_call(
        kern,
        out_shape=jax.ShapeDtypeStruct((B, S, D), jnp.float32),
        grid=(B,),
        in_specs=in_specs,
        out_specs=pl.BlockSpec((1, S, D), lambda b: (b, 0, 0)),
        compiler_params=_PARALLEL1,
    )(*args)


def cross_attn_block(x, e_out, mask, p, heads):
    """Fused: LayerNorm + Q-proj + KV(fused)-proj + MHA + out-proj + residual."""
    B, Sq, D = x.shape
    Sk = e_out.shape[1]
    mq = mask.shape[1]
    kern = partial(_cross_block_kernel, heads=heads, dim=D,
                   attn_scale=1.0 / math.sqrt(D // heads))
    return pl.pallas_call(
        kern,
        out_shape=jax.ShapeDtypeStruct((B, Sq, D), jnp.float32),
        grid=(B,),
        in_specs=[
            pl.BlockSpec((1, Sq, D), lambda b: (b, 0, 0)),
            pl.BlockSpec((1, Sk, D), lambda b: (b, 0, 0)),
            pl.BlockSpec((1, D), lambda b: (0, 0)),
            pl.BlockSpec((1, D), lambda b: (0, 0)),
            pl.BlockSpec((D, D), lambda b: (0, 0)),
            pl.BlockSpec((1, D), lambda b: (0, 0)),
            pl.BlockSpec((D, 2 * D), lambda b: (0, 0)),
            pl.BlockSpec((1, 2 * D), lambda b: (0, 0)),
            pl.BlockSpec((D, D), lambda b: (0, 0)),
            pl.BlockSpec((1, D), lambda b: (0, 0)),
            pl.BlockSpec((1, mq, Sk), lambda b: (b, 0, 0)),
        ],
        out_specs=pl.BlockSpec((1, Sq, D), lambda b: (b, 0, 0)),
        compiler_params=_PARALLEL1,
    )(x, e_out,
      p["n_a"].reshape(1, D), p["n_b"].reshape(1, D),
      p["wq"], p["bq"].reshape(1, D),
      p["wkv"], p["bkv"].reshape(1, 2 * D),
      p["wo"], p["bo"].reshape(1, D),
      mask.astype(jnp.float32))


def ffn_block(x, p):
    """Fused: LayerNorm + Linear + ReLU + Linear + residual, row-tiled grid."""
    B, S, D = x.shape
    M = B * S
    F = p["w1"].shape[1]
    rb, nblk = _row_blocks(M)
    out = pl.pallas_call(
        partial(_ffn_block_kernel, dim=D),
        out_shape=jax.ShapeDtypeStruct((M, D), jnp.float32),
        grid=(nblk,),
        in_specs=[pl.BlockSpec((rb, D), lambda i: (i, 0)),
                  pl.BlockSpec((1, D), lambda i: (0, 0)),
                  pl.BlockSpec((1, D), lambda i: (0, 0)),
                  pl.BlockSpec((D, F), lambda i: (0, 0)),
                  pl.BlockSpec((1, F), lambda i: (0, 0)),
                  pl.BlockSpec((F, D), lambda i: (0, 0)),
                  pl.BlockSpec((1, D), lambda i: (0, 0))],
        out_specs=pl.BlockSpec((rb, D), lambda i: (i, 0)),
        compiler_params=_PARALLEL1,
    )(x.reshape(M, D), p["n_a"].reshape(1, D), p["n_b"].reshape(1, D),
      p["w1"], p["b1"].reshape(1, F), p["w2"], p["b2"].reshape(1, D))
    return out.reshape(B, S, D)


def layer_norm(x, alpha, bias):
    """Standalone Normalization (encoder final norm), row-tiled grid."""
    B, S, D = x.shape
    M = B * S
    rb, nblk = _row_blocks(M)
    out = pl.pallas_call(
        partial(_ln_kernel, dim=D),
        out_shape=jax.ShapeDtypeStruct((M, D), jnp.float32),
        grid=(nblk,),
        in_specs=[pl.BlockSpec((rb, D), lambda i: (i, 0)),
                  pl.BlockSpec((1, D), lambda i: (0, 0)),
                  pl.BlockSpec((1, D), lambda i: (0, 0))],
        out_specs=pl.BlockSpec((rb, D), lambda i: (i, 0)),
        compiler_params=_PARALLEL1,
    )(x.reshape(M, D), alpha.reshape(1, D), bias.reshape(1, D))
    return out.reshape(B, S, D)


def final_norm_project(x, alpha, bias, w_pad, b_pad, vocab):
    """Fused: decoder final Normalization + vocab projection (lane-padded)."""
    B, S, D = x.shape
    M = B * S
    Vp = w_pad.shape[1]
    rb, nblk = _row_blocks(M)
    out = pl.pallas_call(
        partial(_final_kernel, dim=D),
        out_shape=jax.ShapeDtypeStruct((M, Vp), jnp.float32),
        grid=(nblk,),
        in_specs=[pl.BlockSpec((rb, D), lambda i: (i, 0)),
                  pl.BlockSpec((1, D), lambda i: (0, 0)),
                  pl.BlockSpec((1, D), lambda i: (0, 0)),
                  pl.BlockSpec((D, Vp), lambda i: (0, 0)),
                  pl.BlockSpec((1, Vp), lambda i: (0, 0))],
        out_specs=pl.BlockSpec((rb, Vp), lambda i: (i, 0)),
        compiler_params=_PARALLEL1,
    )(x.reshape(M, D), alpha.reshape(1, D), bias.reshape(1, D),
      w_pad, b_pad.reshape(1, Vp))
    return out.reshape(B, S, Vp)[:, :, :vocab]


# ------------------------- model (JAX glue around fused kernels) -------------------------

def encoder_forward(p, src, src_mask, heads):
    x = jnp.take(p["embed"], src, axis=0)          # Embedder gather (glue)
    for li, lp in enumerate(p["layers"]):
        pe = p["pe"] if li == 0 else None          # PE folded into 1st layer kernel
        x = self_attn_block(x, src_mask, lp["self_attn"], heads, pe=pe)
        x = ffn_block(x, lp["ffn"])
    return layer_norm(x, p["norm_a"], p["norm_b"])


def decoder_forward(p, tgt, e_outputs, src_mask, tgt_mask, heads):
    x = jnp.take(p["embed"], tgt, axis=0)
    for li, lp in enumerate(p["layers"]):
        pe = p["pe"] if li == 0 else None
        x = self_attn_block(x, tgt_mask, lp["self_attn"], heads, pe=pe)
        x = cross_attn_block(x, e_outputs, src_mask, lp["cross_attn"], heads)
        x = ffn_block(x, lp["ffn"])
    return x                                       # final norm fused into output proj


def transformer_forward(params, src, tgt, src_mask, tgt_mask, *, heads):
    e_outputs = encoder_forward(params["encoder"], src, src_mask, heads)
    d_outputs = decoder_forward(params["decoder"], tgt, e_outputs,
                                src_mask, tgt_mask, heads)
    return final_norm_project(d_outputs,
                              params["decoder"]["norm_a"], params["decoder"]["norm_b"],
                              params["out_w_pad"], params["out_b_pad"],
                              params["tgt_vocab"])


# ------------------------- deterministic parameter init -------------------------

def _init_linear(key, d_in, d_out):
    k1, k2 = jax.random.split(key)
    bound = 1.0 / math.sqrt(d_in)
    w = jax.random.uniform(k1, (d_in, d_out), jnp.float32, -bound, bound)
    b = jax.random.uniform(k2, (d_out,), jnp.float32, -bound, bound)
    return w, b


def _norm_params(d):
    return jnp.ones((d,), jnp.float32), jnp.zeros((d,), jnp.float32)


def _init_self_attn(key, d):
    ks = jax.random.split(key, 4)
    wq, bq = _init_linear(ks[0], d, d)
    wk, bk = _init_linear(ks[1], d, d)
    wv, bv = _init_linear(ks[2], d, d)
    wo, bo = _init_linear(ks[3], d, d)
    na, nb = _norm_params(d)
    return dict(n_a=na, n_b=nb,
                wqkv=jnp.concatenate([wq, wk, wv], axis=1),      # fused (D, 3D)
                bqkv=jnp.concatenate([bq, bk, bv]),
                wo=wo, bo=bo)


def _init_cross_attn(key, d):
    ks = jax.random.split(key, 4)
    wq, bq = _init_linear(ks[0], d, d)
    wk, bk = _init_linear(ks[1], d, d)
    wv, bv = _init_linear(ks[2], d, d)
    wo, bo = _init_linear(ks[3], d, d)
    na, nb = _norm_params(d)
    return dict(n_a=na, n_b=nb, wq=wq, bq=bq,
                wkv=jnp.concatenate([wk, wv], axis=1),           # fused (D, 2D)
                bkv=jnp.concatenate([bk, bv]),
                wo=wo, bo=bo)


def _init_ffn(key, d, d_ff):
    k1, k2 = jax.random.split(key)
    w1, b1 = _init_linear(k1, d, d_ff)
    w2, b2 = _init_linear(k2, d_ff, d)
    na, nb = _norm_params(d)
    return dict(n_a=na, n_b=nb, w1=w1, b1=b1, w2=w2, b2=b2)


def _init_enc_layer(key, d, d_ff):
    k1, k2 = jax.random.split(key)
    return dict(self_attn=_init_self_attn(k1, d), ffn=_init_ffn(k2, d, d_ff))


def _init_dec_layer(key, d, d_ff):
    k1, k2, k3 = jax.random.split(key, 3)
    return dict(self_attn=_init_self_attn(k1, d),
                cross_attn=_init_cross_attn(k2, d),
                ffn=_init_ffn(k3, d, d_ff))


def make_pe(max_len, d):
    pos = jnp.arange(max_len, dtype=jnp.float32)[:, None]
    div = jnp.exp(jnp.arange(0, d, 2, dtype=jnp.float32) * (-math.log(10000.0) / d))
    pe = jnp.zeros((max_len, d), jnp.float32)
    pe = pe.at[:, 0::2].set(jnp.sin(pos * div))
    pe = pe.at[:, 1::2].set(jnp.cos(pos * div))
    return pe


def init_transformer(key, src_vocab, tgt_vocab, d, N, heads, d_ff, max_len):
    ke, kd, ko, kee, kde = jax.random.split(key, 5)
    enc_layers = [_init_enc_layer(k, d, d_ff) for k in jax.random.split(ke, N)]
    dec_layers = [_init_dec_layer(k, d, d_ff) for k in jax.random.split(kd, N)]
    na, nb = _norm_params(d)
    na2, nb2 = _norm_params(d)
    out_w, out_b = _init_linear(ko, d, tgt_vocab)
    # pad vocab projection to a multiple of 128 lanes (lane-dense stores); slice after
    vp = ((tgt_vocab + 127) // 128) * 128
    out_w_pad = jnp.zeros((d, vp), jnp.float32).at[:, :tgt_vocab].set(out_w)
    out_b_pad = jnp.zeros((vp,), jnp.float32).at[:tgt_vocab].set(out_b)
    pe = make_pe(max_len, d)
    return dict(
        encoder=dict(embed=jax.random.normal(kee, (src_vocab, d), jnp.float32),
                     pe=pe, layers=enc_layers, norm_a=na, norm_b=nb),
        decoder=dict(embed=jax.random.normal(kde, (tgt_vocab, d), jnp.float32),
                     pe=pe, layers=dec_layers, norm_a=na2, norm_b=nb2),
        out_w_pad=out_w_pad, out_b_pad=out_b_pad, tgt_vocab=tgt_vocab,
    )


# ------------------------- main -------------------------

if __name__ == "__main__":
    SRC_VOCAB, TGT_VOCAB = 11, 13
    DIM, N_LAYERS, HEADS = 32, 2, 4
    D_FF = 64               # FeedForward hidden size (tutorial default 2048, kept small)
    B, S_SRC, S_TGT = 2, 8, 8

    key = jax.random.PRNGKey(0)
    kp, ks, kt = jax.random.split(key, 3)
    params = init_transformer(kp, SRC_VOCAB, TGT_VOCAB, DIM, N_LAYERS, HEADS,
                              D_FF, max_len=64)

    src = jax.random.randint(ks, (B, S_SRC), 0, SRC_VOCAB, dtype=jnp.int32)
    tgt = jax.random.randint(kt, (B, S_TGT), 0, TGT_VOCAB, dtype=jnp.int32)
    src_mask = jnp.ones((B, 1, S_SRC), dtype=jnp.float32)                   # (B, 1, Ssrc)
    tgt_mask = jnp.tril(jnp.ones((S_TGT, S_TGT), jnp.float32))[None]        # (1, St, St)
    tgt_mask = jnp.broadcast_to(tgt_mask, (B, S_TGT, S_TGT))

    # "tgt_vocab" is a static python int inside params; keep it out of the traced tree.
    vocab = params.pop("tgt_vocab")
    fwd = jax.jit(lambda prm, s, t, sm, tm: transformer_forward(
        dict(prm, tgt_vocab=vocab), s, t, sm, tm, heads=HEADS))

    logits = fwd(params, src, tgt, src_mask, tgt_mask)
    logits = jax.block_until_ready(logits)
    assert logits.shape == (B, S_TGT, TGT_VOCAB)
    assert bool(jnp.all(jnp.isfinite(logits)))
    print("KERNEL_OK")
</pallas_src>

<mosaic_0001>
module attributes {stable_mosaic.version = 11 : i64} {
  func.func @_ffn_block_kernel(%arg0: i32, %arg1: memref<8x32xf32, #tpu.memory_space<vmem>>, %arg2: memref<1x32xf32, #tpu.memory_space<vmem>>, %arg3: memref<1x32xf32, #tpu.memory_space<vmem>>, %arg4: memref<32x64xf32, #tpu.memory_space<vmem>>, %arg5: memref<1x64xf32, #tpu.memory_space<vmem>>, %arg6: memref<64x32xf32, #tpu.memory_space<vmem>>, %arg7: memref<1x32xf32, #tpu.memory_space<vmem>>, %arg8: memref<8x32xf32, #tpu.memory_space<vmem>>) attributes {dimension_semantics = [#tpu.dimension_semantics<parallel>], iteration_bounds = array<i64: 2>, scalar_prefetch = 0 : i64, scratch_operands = 0 : i64, tpu.core_type = #tpu.core_type<tc>, window_params = [{transform_indices = @transform_0, window_bounds = array<i64: 8, 32>}, {pipeline_mode = #tpu.pipeline_mode<synchronous>, transform_indices = @transform_1, window_bounds = array<i64: 1, 32>}, {pipeline_mode = #tpu.pipeline_mode<synchronous>, transform_indices = @transform_2, window_bounds = array<i64: 1, 32>}, {pipeline_mode = #tpu.pipeline_mode<synchronous>, transform_indices = @transform_3, window_bounds = array<i64: 32, 64>}, {pipeline_mode = #tpu.pipeline_mode<synchronous>, transform_indices = @transform_4, window_bounds = array<i64: 1, 64>}, {pipeline_mode = #tpu.pipeline_mode<synchronous>, transform_indices = @transform_5, window_bounds = array<i64: 64, 32>}, {pipeline_mode = #tpu.pipeline_mode<synchronous>, transform_indices = @transform_6, window_bounds = array<i64: 1, 32>}, {transform_indices = @transform_7, window_bounds = array<i64: 8, 32>}]} {
    %c0 = arith.constant 0 : index
    %c0_0 = arith.constant 0 : index
    %0 = vector.load %arg1[%c0, %c0_0] : memref<8x32xf32, #tpu.memory_space<vmem>>, vector<8x32xf32>
    %c0_1 = arith.constant 0 : index
    %c0_2 = arith.constant 0 : index
    %1 = vector.load %arg2[%c0_1, %c0_2] : memref<1x32xf32, #tpu.memory_space<vmem>>, vector<1x32xf32>
    %c0_3 = arith.constant 0 : index
    %c0_4 = arith.constant 0 : index
    %2 = vector.load %arg3[%c0_3, %c0_4] : memref<1x32xf32, #tpu.memory_space<vmem>>, vector<1x32xf32>
    %cst = arith.constant dense<0.000000e+00> : vector<8xf32>
    %3 = vector.multi_reduction <add>, %0, %cst [1] : vector<8x32xf32> to vector<8xf32>
    %4 = vector.shape_cast %3 : vector<8xf32> to vector<8x1xf32>
    %cst_5 = arith.constant 3.200000e+01 : f32
    %5 = vector.broadcast %cst_5 : f32 to vector<8x1xf32>
    %6 = arith.divf %4, %5 : vector<8x1xf32>
    %7 = vector.broadcast %6 : vector<8x1xf32> to vector<8x32xf32>
    %8 = arith.subf %0, %7 : vector<8x32xf32>
    %9 = arith.mulf %8, %8 : vector<8x32xf32>
    %cst_6 = arith.constant dense<0.000000e+00> : vector<8xf32>
    %10 = vector.multi_reduction <add>, %9, %cst_6 [1] : vector<8x32xf32> to vector<8xf32>
    %11 = vector.shape_cast %10 : vector<8xf32> to vector<8x1xf32>
    %cst_7 = arith.constant 0.0322580636 : f32
    %12 = vector.broadcast %cst_7 : f32 to vector<8x1xf32>
    %13 = arith.mulf %11, %12 : vector<8x1xf32>
    %14 = math.sqrt %13 : vector<8x1xf32>
    %cst_8 = arith.constant 9.99999997E-7 : f32
    %15 = vector.broadcast %cst_8 : f32 to vector<8x1xf32>
    %16 = arith.addf %14, %15 : vector<8x1xf32>
    %17 = tpu.reciprocal %16 {approx = true} : vector<8x1xf32> -> vector<8x1xf32>
    %18 = vector.broadcast %17 : vector<8x1xf32> to vector<8x32xf32>
    %19 = arith.mulf %8, %18 : vector<8x32xf32>
    %20 = vector.broadcast %1 : vector<1x32xf32> to vector<8x32xf32>
    %21 = arith.mulf %20, %19 : vector<8x32xf32>
    %22 = vector.broadcast %2 : vector<1x32xf32> to vector<8x32xf32>
    %23 = arith.addf %21, %22 : vector<8x32xf32>
    %c0_9 = arith.constant 0 : index
    %c0_10 = arith.constant 0 : index
    %24 = vector.load %arg4[%c0_9, %c0_10] : memref<32x64xf32, #tpu.memory_space<vmem>>, vector<32x64xf32>
    %cst_11 = arith.constant dense<0.000000e+00> : vector<8x64xf32>
    %25 = tpu.matmul %23, %24, %cst_11 {dimension_numbers = #tpu.dot_dimension_numbers<[1], [0], [0], [1], [0, 0, 1, 1], [], []>} : vector<8x32xf32>, vector<32x64xf32>, vector<8x64xf32> -> vector<8x64xf32>
    %c0_12 = arith.constant 0 : index
    %c0_13 = arith.constant 0 : index
    %26 = vector.load %arg5[%c0_12, %c0_13] : memref<1x64xf32, #tpu.memory_space<vmem>>, vector<1x64xf32>
    %27 = vector.broadcast %26 : vector<1x64xf32> to vector<8x64xf32>
    %28 = arith.addf %25, %27 : vector<8x64xf32>
    %cst_14 = arith.constant 0.000000e+00 : f32
    %29 = vector.broadcast %cst_14 : f32 to vector<8x64xf32>
    %30 = arith.maximumf %28, %29 : vector<8x64xf32>
    %c0_15 = arith.constant 0 : index
    %c0_16 = arith.constant 0 : index
    %31 = vector.load %arg6[%c0_15, %c0_16] : memref<64x32xf32, #tpu.memory_space<vmem>>, vector<64x32xf32>
    %cst_17 = arith.constant dense<0.000000e+00> : vector<8x32xf32>
    %32 = tpu.matmul %30, %31, %cst_17 {dimension_numbers = #tpu.dot_dimension_numbers<[1], [0], [0], [1], [0, 0, 1, 1], [], []>} : vector<8x64xf32>, vector<64x32xf32>, vector<8x32xf32> -> vector<8x32xf32>
    %33 = arith.addf %0, %32 : vector<8x32xf32>
    %c0_18 = arith.constant 0 : index
    %c0_19 = arith.constant 0 : index
    %34 = vector.load %arg7[%c0_18, %c0_19] : memref<1x32xf32, #tpu.memory_space<vmem>>, vector<1x32xf32>
    %35 = vector.broadcast %34 : vector<1x32xf32> to vector<8x32xf32>
    %36 = arith.addf %33, %35 : vector<8x32xf32>
    %c0_20 = arith.constant 0 : index
    %c0_21 = arith.constant 0 : index
    %37 = vector.load %arg8[%c0_20, %c0_21] : memref<8x32xf32, #tpu.memory_space<vmem>>, vector<8x32xf32>
    tpu.vector_store %arg8[%c0_20, %c0_21], %36 {strides = array<i32>} : memref<8x32xf32, #tpu.memory_space<vmem>>, vector<8x32xf32>,
    return
  }
  func.func @transform_0(%arg0: i32) -> (i32, i32) {
    %c0_i32 = arith.constant 0 : i32
    %c0_i32_0 = arith.constant 0 : i32
    return %arg0, %c0_i32 : i32, i32
  }
  func.func @transform_1(%arg0: i32) -> (i32, i32) {
    %c0_i32 = arith.constant 0 : i32
    %c0_i32_0 = arith.constant 0 : i32
    %c0_i32_1 = arith.constant 0 : i32
    return %c0_i32, %c0_i32_0 : i32, i32
  }
  func.func @transform_2(%arg0: i32) -> (i32, i32) {
    %c0_i32 = arith.constant 0 : i32
    %c0_i32_0 = arith.constant 0 : i32
    %c0_i32_1 = arith.constant 0 : i32
    return %c0_i32, %c0_i32_0 : i32, i32
  }
  func.func @transform_3(%arg0: i32) -> (i32, i32) {
    %c0_i32 = arith.constant 0 : i32
    %c0_i32_0 = arith.constant 0 : i32
    %c0_i32_1 = arith.constant 0 : i32
    return %c0_i32, %c0_i32_0 : i32, i32
  }
  func.func @transform_4(%arg0: i32) -> (i32, i32) {
    %c0_i32 = arith.constant 0 : i32
    %c0_i32_0 = arith.constant 0 : i32
    %c0_i32_1 = arith.constant 0 : i32
    return %c0_i32, %c0_i32_0 : i32, i32
  }
  func.func @transform_5(%arg0: i32) -> (i32, i32) {
    %c0_i32 = arith.constant 0 : i32
    %c0_i32_0 = arith.constant 0 : i32
    %c0_i32_1 = arith.constant 0 : i32
    return %c0_i32, %c0_i32_0 : i32, i32
  }
  func.func @transform_6(%arg0: i32) -> (i32, i32) {
    %c0_i32 = arith.constant 0 : i32
    %c0_i32_0 = arith.constant 0 : i32
    %c0_i32_1 = arith.constant 0 : i32
    return %c0_i32, %c0_i32_0 : i32, i32
  }
  func.func @transform_7(%arg0: i32) -> (i32, i32) {
    %c0_i32 = arith.constant 0 : i32
    %c0_i32_0 = arith.constant 0 : i32
    return %arg0, %c0_i32 : i32, i32
  }
}

module attributes {stable_mosaic.version = 11 : i64} {
  func.func @_self_block_pe_kernel(%arg0: i32, %arg1: memref<1x8x32xf32, #tpu.memory_space<vmem>>, %arg2: memref<1x8x32xf32, #tpu.memory_space<vmem>>, %arg3: memref<1x32xf32, #tpu.memory_space<vmem>>, %arg4: memref<1x32xf32, #tpu.memory_space<vmem>>, %arg5: memref<32x96xf32, #tpu.memory_space<vmem>>, %arg6: memref<1x96xf32, #tpu.memory_space<vmem>>, %arg7: memref<32x32xf32, #tpu.memory_space<vmem>>, %arg8: memref<1x32xf32, #tpu.memory_space<vmem>>, %arg9: memref<1x1x8xf32, #tpu.memory_space<vmem>>, %arg10: memref<1x8x32xf32, #tpu.memory_space<vmem>>) attributes {dimension_semantics = [#tpu.dimension_semantics<parallel>], iteration_bounds = array<i64: 2>, scalar_prefetch = 0 : i64, scratch_operands = 0 : i64, tpu.core_type = #tpu.core_type<tc>, window_params = [{transform_indices = @transform_0, window_bounds = array<i64: 1, 8, 32>}, {pipeline_mode = #tpu.pipeline_mode<synchronous>, transform_indices = @transform_1, window_bounds = array<i64: 1, 8, 32>}, {pipeline_mode = #tpu.pipeline_mode<synchronous>, transform_indices = @transform_2, window_bounds = array<i64: 1, 32>}, {pipeline_mode = #tpu.pipeline_mode<synchronous>, transform_indices = @transform_3, window_bounds = array<i64: 1, 32>}, {pipeline_mode = #tpu.pipeline_mode<synchronous>, transform_indices = @transform_4, window_bounds = array<i64: 32, 96>}, {pipeline_mode = #tpu.pipeline_mode<synchronous>, transform_indices = @transform_5, window_bounds = array<i64: 1, 96>}, {pipeline_mode = #tpu.pipeline_mode<synchronous>, transform_indices = @transform_6, window_bounds = array<i64: 32, 32>}, {pipeline_mode = #tpu.pipeline_mode<synchronous>, transform_indices = @transform_7, window_bounds = array<i64: 1, 32>}, {transform_indices = @transform_8, window_bounds = array<i64: 1, 1, 8>}, {transform_indices = @transform_9, window_bounds = array<i64: 1, 8, 32>}]} {
    %c0 = arith.constant 0 : index
    %c0_0 = arith.constant 0 : index
    %c0_1 = arith.constant 0 : index
    %0 = vector.load %arg1[%c0, %c0_0, %c0_1] : memref<1x8x32xf32, #tpu.memory_space<vmem>>, vector<1x8x32xf32>
    %1 = vector.shape_cast %0 : vector<1x8x32xf32> to vector<8x32xf32>
    %c0_2 = arith.constant 0 : index
    %c0_3 = arith.constant 0 : index
    %c0_4 = arith.constant 0 : index
    %2 = vector.load %arg2[%c0_2, %c0_3, %c0_4] : memref<1x8x32xf32, #tpu.memory_space<vmem>>, vector<1x8x32xf32>
    %3 = vector.shape_cast %2 : vector<1x8x32xf32> to vector<8x32xf32>
    %c0_5 = arith.constant 0 : index
    %c0_6 = arith.constant 0 : index
    %4 = vector.load %arg3[%c0_5, %c0_6] : memref<1x32xf32, #tpu.memory_space<vmem>>, vector<1x32xf32>
    %c0_7 = arith.constant 0 : index
    %c0_8 = arith.constant 0 : index
    %5 = vector.load %arg4[%c0_7, %c0_8] : memref<1x32xf32, #tpu.memory_space<vmem>>, vector<1x32xf32>
    %c0_9 = arith.constant 0 : index
    %c0_10 = arith.constant 0 : index
    %6 = vector.load %arg5[%c0_9, %c0_10] : memref<32x96xf32, #tpu.memory_space<vmem>>, vector<32x96xf32>
    %c0_11 = arith.constant 0 : index
    %c0_12 = arith.constant 0 : index
    %7 = vector.load %arg6[%c0_11, %c0_12] : memref<1x96xf32, #tpu.memory_space<vmem>>, vector<1x96xf32>
    %c0_13 = arith.constant 0 : index
    %c0_14 = arith.constant 0 : index
    %8 = vector.load %arg7[%c0_13, %c0_14] : memref<32x32xf32, #tpu.memory_space<vmem>>, vector<32x32xf32>
    %c0_15 = arith.constant 0 : index
    %c0_16 = arith.constant 0 : index
    %9 = vector.load %arg8[%c0_15, %c0_16] : memref<1x32xf32, #tpu.memory_space<vmem>>, vector<1x32xf32>
    %c0_17 = arith.constant 0 : index
    %c0_18 = arith.constant 0 : index
    %c0_19 = arith.constant 0 : index
    %10 = vector.load %arg9[%c0_17, %c0_18, %c0_19] : memref<1x1x8xf32, #tpu.memory_space<vmem>>, vector<1x1x8xf32>
    %11 = vector.shape_cast %10 : vector<1x1x8xf32> to vector<1x8xf32>
    %cst = arith.constant 5.65685415 : f32
    %12 = vector.broadcast %cst : f32 to vector<8x32xf32>
    %13 = arith.mulf %1, %12 : vector<8x32xf32>
    %14 = arith.addf %13, %3 : vector<8x32xf32>
    %cst_20 = arith.constant dense<0.000000e+00> : vector<8xf32>
    %15 = vector.multi_reduction <add>, %14, %cst_20 [1] : vector<8x32xf32> to vector<8xf32>
    %16 = vector.shape_cast %15 : vector<8xf32> to vector<8x1xf32>
    %cst_21 = arith.constant 3.200000e+01 : f32
    %17 = vector.broadcast %cst_21 : f32 to vector<8x1xf32>
    %18 = arith.divf %16, %17 : vector<8x1xf32>
    %19 = vector.broadcast %18 : vector<8x1xf32> to vector<8x32xf32>
    %20 = arith.subf %14, %19 : vector<8x32xf32>
    %21 = arith.mulf %20, %20 : vector<8x32xf32>
    %cst_22 = arith.constant dense<0.000000e+00> : vector<8xf32>
    %22 = vector.multi_reduction <add>, %21, %cst_22 [1] : vector<8x32xf32> to vector<8xf32>
    %23 = vector.shape_cast %22 : vector<8xf32> to vector<8x1xf32>
    %cst_23 = arith.constant 0.0322580636 : f32
    %24 = vector.broadcast %cst_23 : f32 to vector<8x1xf32>
    %25 = arith.mulf %23, %24 : vector<8x1xf32>
    %26 = math.sqrt %25 : vector<8x1xf32>
    %cst_24 = arith.constant 9.99999997E-7 : f32
    %27 = vector.broadcast %cst_24 : f32 to vector<8x1xf32>
    %28 = arith.addf %26, %27 : vector<8x1xf32>
    %29 = tpu.reciprocal %28 {approx = true} : vector<8x1xf32> -> vector<8x1xf32>
    %30 = vector.broadcast %29 : vector<8x1xf32> to vector<8x32xf32>
    %31 = arith.mulf %20, %30 : vector<8x32xf32>
    %32 = vector.broadcast %4 : vector<1x32xf32> to vector<8x32xf32>
    %33 = arith.mulf %32, %31 : vector<8x32xf32>
    %34 = vector.broadcast %5 : vector<1x32xf32> to vector<8x32xf32>
    %35 = arith.addf %33, %34 : vector<8x32xf32>
    %cst_25 = arith.constant dense<0.000000e+00> : vector<8x96xf32>
    %36 = tpu.matmul %35, %6, %cst_25 {dimension_numbers = #tpu.dot_dimension_numbers<[1], [0], [0], [1], [0, 0, 1, 1], [], []>} : vector<8x32xf32>, vector<32x96xf32>, vector<8x96xf32> -> vector<8x96xf32>
    %37 = vector.broadcast %7 : vector<1x96xf32> to vector<8x96xf32>
    %38 = arith.addf %36, %37 : vector<8x96xf32>
    %39 = vector.extract_strided_slice %38 {offsets = [0, 0], sizes = [8, 32], strides = [1, 1]} : vector<8x96xf32> to vector<8x32xf32>
    %40 = vector.extract_strided_slice %38 {offsets = [0, 32], sizes = [8, 32], strides = [1, 1]} : vector<8x96xf32> to vector<8x32xf32>
    %41 = vector.extract_strided_slice %38 {offsets = [0, 64], sizes = [8, 32], strides = [1, 1]} : vector<8x96xf32> to vector<8x32xf32>
    %cst_26 = arith.constant 0.000000e+00 : f32
    %42 = vector.broadcast %cst_26 : f32 to vector<8x32xf32>
    %43 = vector.extract_strided_slice %39 {offsets = [0, 0], sizes = [8, 8], strides = [1, 1]} : vector<8x32xf32> to vector<8x8xf32>
    %44 = vector.extract_strided_slice %40 {offsets = [0, 0], sizes = [8, 8], strides = [1, 1]} : vector<8x32xf32> to vector<8x8xf32>
    %45 = vector.extract_strided_slice %41 {offsets = [0, 0], sizes = [8, 8], strides = [1, 1]} : vector<8x32xf32> to vector<8x8xf32>
    %cst_27 = arith.constant dense<0.000000e+00> : vector<8x8xf32>
    %46 = tpu.matmul %43, %44, %cst_27 {dimension_numbers = #tpu.dot_dimension_numbers<[1], [1], [0], [0], [0, 0, 1, 0], [], []>} : vector<8x8xf32>, vector<8x8xf32>, vector<8x8xf32> -> vector<8x8xf32>
    %cst_28 = arith.constant 0.353553385 : f32
    %47 = vector.broadcast %cst_28 : f32 to vector<8x8xf32>
    %48 = arith.mulf %46, %47 : vector<8x8xf32>
    %cst_29 = arith.constant 0.000000e+00 : f32
    %49 = vector.broadcast %cst_29 : f32 to vector<1x8xf32>
    %50 = arith.cmpf oeq, %11, %49 : vector<1x8xf32>
    %cst_30 = arith.constant -1.000000e+09 : f32
    %51 = vector.shape_cast %50 : vector<1x8xi1> to vector<1x8xi1>
    %52 = vector.broadcast %51 : vector<1x8xi1> to vector<8x8xi1>
    %53 = vector.broadcast %cst_30 : f32 to vector<8x8xf32>
    %54 = arith.select %52, %53, %48 : vector<8x8xi1>, vector<8x8xf32>
    %cst_31 = arith.constant dense<0xFF800000> : vector<8xf32>
    %55 = vector.multi_reduction <maximumf>, %54, %cst_31 [1] : vector<8x8xf32> to vector<8xf32>
    %56 = vector.shape_cast %55 : vector<8xf32> to vector<8x1xf32>
    %57 = vector.broadcast %56 : vector<8x1xf32> to vector<8x8xf32>
    %58 = arith.subf %54, %57 : vector<8x8xf32>
    %59 = math.exp %58 : vector<8x8xf32>
    %cst_32 = arith.constant dense<0.000000e+00> : vector<8xf32>
    %60 = vector.multi_reduction <add>, %59, %cst_32 [1] : vector<8x8xf32> to vector<8xf32>
    %61 = vector.shape_cast %60 : vector<8xf32> to vector<8x1xf32>
    %62 = tpu.reciprocal %61 {approx = true} : vector<8x1xf32> -> vector<8x1xf32>
    %63 = vector.broadcast %62 : vector<8x1xf32> to vector<8x8xf32>
    %64 = arith.mulf %59, %63 : vector<8x8xf32>
    %cst_33 = arith.constant dense<0.000000e+00> : vector<8x8xf32>
    %65 = tpu.matmul %64, %45, %cst_33 {dimension_numbers = #tpu.dot_dimension_numbers<[1], [0], [0], [1], [0, 0, 1, 1], [], []>} : vector<8x8xf32>, vector<8x8xf32>, vector<8x8xf32> -> vector<8x8xf32>
    %66 = vector.extract_strided_slice %8 {offsets = [0, 0], sizes = [8, 32], strides = [1, 1]} : vector<32x32xf32> to vector<8x32xf32>
    %cst_34 = arith.constant dense<0.000000e+00> : vector<8x32xf32>
    %67 = tpu.matmul %65, %66, %cst_34 {dimension_numbers = #tpu.dot_dimension_numbers<[1], [0], [0], [1], [0, 0, 1, 1], [], []>} : vector<8x8xf32>, vector<8x32xf32>, vector<8x32xf32> -> vector<8x32xf32>
    %68 = arith.addf %42, %67 : vector<8x32xf32>
    %69 = vector.extract_strided_slice %39 {offsets = [0, 8], sizes = [8, 8], strides = [1, 1]} : vector<8x32xf32> to vector<8x8xf32>
    %70 = vector.extract_strided_slice %40 {offsets = [0, 8], sizes = [8, 8], strides = [1, 1]} : vector<8x32xf32> to vector<8x8xf32>
    %71 = vector.extract_strided_slice %41 {offsets = [0, 8], sizes = [8, 8], strides = [1, 1]} : vector<8x32xf32> to vector<8x8xf32>
    %cst_35 = arith.constant dense<0.000000e+00> : vector<8x8xf32>
    %72 = tpu.matmul %69, %70, %cst_35 {dimension_numbers = #tpu.dot_dimension_numbers<[1], [1], [0], [0], [0, 0, 1, 0], [], []>} : vector<8x8xf32>, vector<8x8xf32>, vector<8x8xf32> -> vector<8x8xf32>
    %cst_36 = arith.constant 0.353553385 : f32
    %73 = vector.broadcast %cst_36 : f32 to vector<8x8xf32>
    %74 = arith.mulf %72, %73 : vector<8x8xf32>
    %cst_37 = arith.constant 0.000000e+00 : f32
    %75 = vector.broadcast %cst_37 : f32 to vector<1x8xf32>
    %76 = arith.cmpf oeq, %11, %75 : vector<1x8xf32>
    %cst_38 = arith.constant -1.000000e+09 : f32
    %77 = vector.shape_cast %76 : vector<1x8xi1> to vector<1x8xi1>
    %78 = vector.broadcast %77 : vector<1x8xi1> to vector<8x8xi1>
    %79 = vector.broadcast %cst_38 : f32 to vector<8x8xf32>
    %80 = arith.select %78, %79, %74 : vector<8x8xi1>, vector<8x8xf32>
    %cst_39 = arith.constant dense<0xFF800000> : vector<8xf32>
    %81 = vector.multi_reduction <maximumf>, %80, %cst_39 [1] : vector<8x8xf32> to vector<8xf32>
    %82 = vector.shape_cast %81 : vector<8xf32> to vector<8x1xf32>
    %83 = vector.broadcast %82 : vector<8x1xf32> to vector<8x8xf32>
    %84 = arith.subf %80, %83 : vector<8x8xf32>
    %85 = math.exp %84 : vector<8x8xf32>
    %cst_40 = arith.constant dense<0.000000e+00> : vector<8xf32>
    %86 = vector.multi_reduction <add>, %85, %cst_40 [1] : vector<8x8xf32> to vector<8xf32>
    %87 = vector.shape_cast %86 : vector<8xf32> to vector<8x1xf32>
    %88 = tpu.reciprocal %87 {approx = true} : vector<8x1xf32> -> vector<8x1xf32>
    %89 = vector.broadcast %88 : vector<8x1xf32> to vector<8x8xf32>
    %90 = arith.mulf %85, %89 : vector<8x8xf32>
    %cst_41 = arith.constant dense<0.000000e+00> : vector<8x8xf32>
    %91 = tpu.matmul %90, %71, %cst_41 {dimension_numbers = #tpu.dot_dimension_numbers<[1], [0], [0], [1], [0, 0, 1, 1], [], []>} : vector<8x8xf32>, vector<8x8xf32>, vector<8x8xf32> -> vector<8x8xf32>
    %92 = vector.extract_strided_slice %8 {offsets = [8, 0], sizes = [8, 32], strides = [1, 1]} : vector<32x32xf32> to vector<8x32xf32>
    %cst_42 = arith.constant dense<0.000000e+00> : vector<8x32xf32>
    %93 = tpu.matmul %91, %92, %cst_42 {dimension_numbers = #tpu.dot_dimension_numbers<[1], [0], [0], [1], [0, 0, 1, 1], [], []>} : vector<8x8xf32>, vector<8x32xf32>, vector<8x32xf32> -> vector<8x32xf32>
    %94 = arith.addf %68, %93 : vector<8x32xf32>
    %95 = vector.extract_strided_slice %39 {offsets = [0, 16], sizes = [8, 8], strides = [1, 1]} : vector<8x32xf32> to vector<8x8xf32>
    %96 = vector.extract_strided_slice %40 {offsets = [0, 16], sizes = [8, 8], strides = [1, 1]} : vector<8x32xf32> to vector<8x8xf32>
    %97 = vector.extract_strided_slice %41 {offsets = [0, 16], sizes = [8, 8], strides = [1, 1]} : vector<8x32xf32> to vector<8x8xf32>
    %cst_43 = arith.constant dense<0.000000e+00> : vector<8x8xf32>
    %98 = tpu.matmul %95, %96, %cst_43 {dimension_numbers = #tpu.dot_dimension_numbers<[1], [1], [0], [0], [0, 0, 1, 0], [], []>} : vector<8x8xf32>, vector<8x8xf32>, vector<8x8xf32> -> vector<8x8xf32>
    %cst_44 = arith.constant 0.353553385 : f32
    %99 = vector.broadcast %cst_44 : f32 to vector<8x8xf32>
    %100 = arith.mulf %98, %99 : vector<8x8xf32>
    %cst_45 = arith.constant 0.000000e+00 : f32
    %101 = vector.broadcast %cst_45 : f32 to vector<1x8xf32>
    %102 = arith.cmpf oeq, %11, %101 : vector<1x8xf32>
    %cst_46 = arith.constant -1.000000e+09 : f32
    %103 = vector.shape_cast %102 : vector<1x8xi1> to vector<1x8xi1>
    %104 = vector.broadcast %103 : vector<1x8xi1> to vector<8x8xi1>
    %105 = vector.broadcast %cst_46 : f32 to vector<8x8xf32>
    %106 = arith.select %104, %105, %100 : vector<8x8xi1>, vector<8x8xf32>
    %cst_47 = arith.constant dense<0xFF800000> : vector<8xf32>
    %107 = vector.multi_reduction <maximumf>, %106, %cst_47 [1] : vector<8x8xf32> to vector<8xf32>
    %108 = vector.shape_cast %107 : vector<8xf32> to vector<8x1xf32>
    %109 = vector.broadcast %108 : vector<8x1xf32> to vector<8x8xf32>
    %110 = arith.subf %106, %109 : vector<8x8xf32>
    %111 = math.exp %110 : vector<8x8xf32>
    %cst_48 = arith.constant dense<0.000000e+00> : vector<8xf32>
    %112 = vector.multi_reduction <add>, %111, %cst_48 [1] : vector<8x8xf32> to vector<8xf32>
    %113 = vector.shape_cast %112 : vector<8xf32> to vector<8x1xf32>
    %114 = tpu.reciprocal %113 {approx = true} : vector<8x1xf32> -> vector<8x1xf32>
    %115 = vector.broadcast %114 : vector<8x1xf32> to vector<8x8xf32>
    %116 = arith.mulf %111, %115 : vector<8x8xf32>
    %cst_49 = arith.constant dense<0.000000e+00> : vector<8x8xf32>
    %117 = tpu.matmul %116, %97, %cst_49 {dimension_numbers = #tpu.dot_dimension_numbers<[1], [0], [0], [1], [0, 0, 1, 1], [], []>} : vector<8x8xf32>, vector<8x8xf32>, vector<8x8xf32> -> vector<8x8xf32>
    %118 = vector.extract_strided_slice %8 {offsets = [16, 0], sizes = [8, 32], strides = [1, 1]} : vector<32x32xf32> to vector<8x32xf32>
    %cst_50 = arith.constant dense<0.000000e+00> : vector<8x32xf32>
    %119 = tpu.matmul %117, %118, %cst_50 {dimension_numbers = #tpu.dot_dimension_numbers<[1], [0], [0], [1], [0, 0, 1, 1], [], []>} : vector<8x8xf32>, vector<8x32xf32>, vector<8x32xf32> -> vector<8x32xf32>
    %120 = arith.addf %94, %119 : vector<8x32xf32>
    %121 = vector.extract_strided_slice %39 {offsets = [0, 24], sizes = [8, 8], strides = [1, 1]} : vector<8x32xf32> to vector<8x8xf32>
    %122 = vector.extract_strided_slice %40 {offsets = [0, 24], sizes = [8, 8], strides = [1, 1]} : vector<8x32xf32> to vector<8x8xf32>
    %123 = vector.extract_strided_slice %41 {offsets = [0, 24], sizes = [8, 8], strides = [1, 1]} : vector<8x32xf32> to vector<8x8xf32>
    %cst_51 = arith.constant dense<0.000000e+00> : vector<8x8xf32>
    %124 = tpu.matmul %121, %122, %cst_51 {dimension_numbers = #tpu.dot_dimension_numbers<[1], [1], [0], [0], [0, 0, 1, 0], [], []>} : vector<8x8xf32>, vector<8x8xf32>, vector<8x8xf32> -> vector<8x8xf32>
    %cst_52 = arith.constant 0.353553385 : f32
    %125 = vector.broadcast %cst_52 : f32 to vector<8x8xf32>
    %126 = arith.mulf %124, %125 : vector<8x8xf32>
    %cst_53 = arith.constant 0.000000e+00 : f32
    %127 = vector.broadcast %cst_53 : f32 to vector<1x8xf32>
    %128 = arith.cmpf oeq, %11, %127 : vector<1x8xf32>
    %cst_54 = arith.constant -1.000000e+09 : f32
    %129 = vector.shape_cast %128 : vector<1x8xi1> to vector<1x8xi1>
    %130 = vector.broadcast %129 : vector<1x8xi1> to vector<8x8xi1>
    %131 = vector.broadcast %cst_54 : f32 to vector<8x8xf32>
    %132 = arith.select %130, %131, %126 : vector<8x8xi1>, vector<8x8xf32>
    %cst_55 = arith.constant dense<0xFF800000> : vector<8xf32>
    %133 = vector.multi_reduction <maximumf>, %132, %cst_55 [1] : vector<8x8xf32> to vector<8xf32>
    %134 = vector.shape_cast %133 : vector<8xf32> to vector<8x1xf32>
    %135 = vector.broadcast %134 : vector<8x1xf32> to vector<8x8xf32>
    %136 = arith.subf %132, %135 : vector<8x8xf32>
    %137 = math.exp %136 : vector<8x8xf32>
    %cst_56 = arith.constant dense<0.000000e+00> : vector<8xf32>
    %138 = vector.multi_reduction <add>, %137, %cst_56 [1] : vector<8x8xf32> to vector<8xf32>
    %139 = vector.shape_cast %138 : vector<8xf32> to vector<8x1xf32>
    %140 = tpu.reciprocal %139 {approx = true} : vector<8x1xf32> -> vector<8x1xf32>
    %141 = vector.broadcast %140 : vector<8x1xf32> to vector<8x8xf32>
    %142 = arith.mulf %137, %141 : vector<8x8xf32>
    %cst_57 = arith.constant dense<0.000000e+00> : vector<8x8xf32>
    %143 = tpu.matmul %142, %123, %cst_57 {dimension_numbers = #tpu.dot_dimension_numbers<[1], [0], [0], [1], [0, 0, 1, 1], [], []>} : vector<8x8xf32>, vector<8x8xf32>, vector<8x8xf32> -> vector<8x8xf32>
    %144 = vector.extract_strided_slice %8 {offsets = [24, 0], sizes = [8, 32], strides = [1, 1]} : vector<32x32xf32> to vector<8x32xf32>
    %cst_58 = arith.constant dense<0.000000e+00> : vector<8x32xf32>
    %145 = tpu.matmul %143, %144, %cst_58 {dimension_numbers = #tpu.dot_dimension_numbers<[1], [0], [0], [1], [0, 0, 1, 1], [], []>} : vector<8x8xf32>, vector<8x32xf32>, vector<8x32xf32> -> vector<8x32xf32>
    %146 = arith.addf %120, %145 : vector<8x32xf32>
    %147 = vector.broadcast %9 : vector<1x32xf32> to vector<8x32xf32>
    %148 = arith.addf %146, %147 : vector<8x32xf32>
    %149 = arith.addf %14, %148 : vector<8x32xf32>
    %c0_59 = arith.constant 0 : index
    %c0_60 = arith.constant 0 : index
    %c0_61 = arith.constant 0 : index
    %150 = vector.load %arg10[%c0_59, %c0_60, %c0_61] : memref<1x8x32xf32, #tpu.memory_space<vmem>>, vector<1x8x32xf32>
    %151 = vector.shape_cast %150 : vector<1x8x32xf32> to vector<8x32xf32>
    %152 = vector.shape_cast %149 : vector<8x32xf32> to vector<1x8x32xf32>
    tpu.vector_store %arg10[%c0_59, %c0_60, %c0_61], %152 {strides = array<i32>} : memref<1x8x32xf32, #tpu.memory_space<vmem>>, vector<1x8x32xf32>,
    return
  }
  func.func @transform_0(%arg0: i32) -> (i32, i32, i32) {
    %c0_i32 = arith.constant 0 : i32
    %c0_i32_0 = arith.constant 0 : i32
    %c0_i32_1 = arith.constant 0 : i32
    return %arg0, %c0_i32, %c0_i32_0 : i32, i32, i32
  }
  func.func @transform_1(%arg0: i32) -> (i32, i32, i32) {
    %c0_i32 = arith.constant 0 : i32
    %c0_i32_0 = arith.constant 0 : i32
    %c0_i32_1 = arith.constant 0 : i32
    %c0_i32_2 = arith.constant 0 : i32
    return %c0_i32, %c0_i32_0, %c0_i32_1 : i32, i32, i32
  }
  func.func @transform_2(%arg0: i32) -> (i32, i32) {
    %c0_i32 = arith.constant 0 : i32
    %c0_i32_0 = arith.constant 0 : i32
    %c0_i32_1 = arith.constant 0 : i32
    return %c0_i32, %c0_i32_0 : i32, i32
  }
  func.func @transform_3(%arg0: i32) -> (i32, i32) {
    %c0_i32 = arith.constant 0 : i32
    %c0_i32_0 = arith.constant 0 : i32
    %c0_i32_1 = arith.constant 0 : i32
    return %c0_i32, %c0_i32_0 : i32, i32
  }
  func.func @transform_4(%arg0: i32) -> (i32, i32) {
    %c0_i32 = arith.constant 0 : i32
    %c0_i32_0 = arith.constant 0 : i32
    %c0_i32_1 = arith.constant 0 : i32
    return %c0_i32, %c0_i32_0 : i32, i32
  }
  func.func @transform_5(%arg0: i32) -> (i32, i32) {
    %c0_i32 = arith.constant 0 : i32
    %c0_i32_0 = arith.constant 0 : i32
    %c0_i32_1 = arith.constant 0 : i32
    return %c0_i32, %c0_i32_0 : i32, i32
  }
  func.func @transform_6(%arg0: i32) -> (i32, i32) {
    %c0_i32 = arith.constant 0 : i32
    %c0_i32_0 = arith.constant 0 : i32
    %c0_i32_1 = arith.constant 0 : i32
    return %c0_i32, %c0_i32_0 : i32, i32
  }
  func.func @transform_7(%arg0: i32) -> (i32, i32) {
    %c0_i32 = arith.constant 0 : i32
    %c0_i32_0 = arith.constant 0 : i32
    %c0_i32_1 = arith.constant 0 : i32
    return %c0_i32, %c0_i32_0 : i32, i32
  }
  func.func @transform_8(%arg0: i32) -> (i32, i32, i32) {
    %c0_i32 = arith.constant 0 : i32
    %c0_i32_0 = arith.constant 0 : i32
    %c0_i32_1 = arith.constant 0 : i32
    return %arg0, %c0_i32, %c0_i32_0 : i32, i32, i32
  }
  func.func @transform_9(%arg0: i32) -> (i32, i32, i32) {
    %c0_i32 = arith.constant 0 : i32
    %c0_i32_0 = arith.constant 0 : i32
    %c0_i32_1 = arith.constant 0 : i32
    return %arg0, %c0_i32, %c0_i32_0 : i32, i32, i32
  }
}

module attributes {stable_mosaic.version = 11 : i64} {
  func.func @_ln_kernel(%arg0: i32, %arg1: memref<8x32xf32, #tpu.memory_space<vmem>>, %arg2: memref<1x32xf32, #tpu.memory_space<vmem>>, %arg3: memref<1x32xf32, #tpu.memory_space<vmem>>, %arg4: memref<8x32xf32, #tpu.memory_space<vmem>>) attributes {dimension_semantics = [#tpu.dimension_semantics<parallel>], iteration_bounds = array<i64: 2>, scalar_prefetch = 0 : i64, scratch_operands = 0 : i64, tpu.core_type = #tpu.core_type<tc>, window_params = [{transform_indices = @transform_0, window_bounds = array<i64: 8, 32>}, {pipeline_mode = #tpu.pipeline_mode<synchronous>, transform_indices = @transform_1, window_bounds = array<i64: 1, 32>}, {pipeline_mode = #tpu.pipeline_mode<synchronous>, transform_indices = @transform_2, window_bounds = array<i64: 1, 32>}, {transform_indices = @transform_3, window_bounds = array<i64: 8, 32>}]} {
    %c0 = arith.constant 0 : index
    %c0_0 = arith.constant 0 : index
    %0 = vector.load %arg1[%c0, %c0_0] : memref<8x32xf32, #tpu.memory_space<vmem>>, vector<8x32xf32>
    %c0_1 = arith.constant 0 : index
    %c0_2 = arith.constant 0 : index
    %1 = vector.load %arg2[%c0_1, %c0_2] : memref<1x32xf32, #tpu.memory_space<vmem>>, vector<1x32xf32>
    %c0_3 = arith.constant 0 : index
    %c0_4 = arith.constant 0 : index
    %2 = vector.load %arg3[%c0_3, %c0_4] : memref<1x32xf32, #tpu.memory_space<vmem>>, vector<1x32xf32>
    %cst = arith.constant dense<0.000000e+00> : vector<8xf32>
    %3 = vector.multi_reduction <add>, %0, %cst [1] : vector<8x32xf32> to vector<8xf32>
    %4 = vector.shape_cast %3 : vector<8xf32> to vector<8x1xf32>
    %cst_5 = arith.constant 3.200000e+01 : f32
    %5 = vector.broadcast %cst_5 : f32 to vector<8x1xf32>
    %6 = arith.divf %4, %5 : vector<8x1xf32>
    %7 = vector.broadcast %6 : vector<8x1xf32> to vector<8x32xf32>
    %8 = arith.subf %0, %7 : vector<8x32xf32>
    %9 = arith.mulf %8, %8 : vector<8x32xf32>
    %cst_6 = arith.constant dense<0.000000e+00> : vector<8xf32>
    %10 = vector.multi_reduction <add>, %9, %cst_6 [1] : vector<8x32xf32> to vector<8xf32>
    %11 = vector.shape_cast %10 : vector<8xf32> to vector<8x1xf32>
    %cst_7 = arith.constant 0.0322580636 : f32
    %12 = vector.broadcast %cst_7 : f32 to vector<8x1xf32>
    %13 = arith.mulf %11, %12 : vector<8x1xf32>
    %14 = math.sqrt %13 : vector<8x1xf32>
    %cst_8 = arith.constant 9.99999997E-7 : f32
    %15 = vector.broadcast %cst_8 : f32 to vector<8x1xf32>
    %16 = arith.addf %14, %15 : vector<8x1xf32>
    %17 = tpu.reciprocal %16 {approx = true} : vector<8x1xf32> -> vector<8x1xf32>
    %18 = vector.broadcast %17 : vector<8x1xf32> to vector<8x32xf32>
    %19 = arith.mulf %8, %18 : vector<8x32xf32>
    %20 = vector.broadcast %1 : vector<1x32xf32> to vector<8x32xf32>
    %21 = arith.mulf %20, %19 : vector<8x32xf32>
    %22 = vector.broadcast %2 : vector<1x32xf32> to vector<8x32xf32>
    %23 = arith.addf %21, %22 : vector<8x32xf32>
    %c0_9 = arith.constant 0 : index
    %c0_10 = arith.constant 0 : index
    %24 = vector.load %arg4[%c0_9, %c0_10] : memref<8x32xf32, #tpu.memory_space<vmem>>, vector<8x32xf32>
    tpu.vector_store %arg4[%c0_9, %c0_10], %23 {strides = array<i32>} : memref<8x32xf32, #tpu.memory_space<vmem>>, vector<8x32xf32>,
    return
  }
  func.func @transform_0(%arg0: i32) -> (i32, i32) {
    %c0_i32 = arith.constant 0 : i32
    %c0_i32_0 = arith.constant 0 : i32
    return %arg0, %c0_i32 : i32, i32
  }
  func.func @transform_1(%arg0: i32) -> (i32, i32) {
    %c0_i32 = arith.constant 0 : i32
    %c0_i32_0 = arith.constant 0 : i32
    %c0_i32_1 = arith.constant 0 : i32
    return %c0_i32, %c0_i32_0 : i32, i32
  }
  func.func @transform_2(%arg0: i32) -> (i32, i32) {
    %c0_i32 = arith.constant 0 : i32
    %c0_i32_0 = arith.constant 0 : i32
    %c0_i32_1 = arith.constant 0 : i32
    return %c0_i32, %c0_i32_0 : i32, i32
  }
  func.func @transform_3(%arg0: i32) -> (i32, i32) {
    %c0_i32 = arith.constant 0 : i32
    %c0_i32_0 = arith.constant 0 : i32
    return %arg0, %c0_i32 : i32, i32
  }
}

module attributes {stable_mosaic.version = 11 : i64} {
  func.func @_self_block_kernel(%arg0: i32, %arg1: memref<1x8x32xf32, #tpu.memory_space<vmem>>, %arg2: memref<1x32xf32, #tpu.memory_space<vmem>>, %arg3: memref<1x32xf32, #tpu.memory_space<vmem>>, %arg4: memref<32x96xf32, #tpu.memory_space<vmem>>, %arg5: memref<1x96xf32, #tpu.memory_space<vmem>>, %arg6: memref<32x32xf32, #tpu.memory_space<vmem>>, %arg7: memref<1x32xf32, #tpu.memory_space<vmem>>, %arg8: memref<1x1x8xf32, #tpu.memory_space<vmem>>, %arg9: memref<1x8x32xf32, #tpu.memory_space<vmem>>) attributes {dimension_semantics = [#tpu.dimension_semantics<parallel>], iteration_bounds = array<i64: 2>, scalar_prefetch = 0 : i64, scratch_operands = 0 : i64, tpu.core_type = #tpu.core_type<tc>, window_params = [{transform_indices = @transform_0, window_bounds = array<i64: 1, 8, 32>}, {pipeline_mode = #tpu.pipeline_mode<synchronous>, transform_indices = @transform_1, window_bounds = array<i64: 1, 32>}, {pipeline_mode = #tpu.pipeline_mode<synchronous>, transform_indices = @transform_2, window_bounds = array<i64: 1, 32>}, {pipeline_mode = #tpu.pipeline_mode<synchronous>, transform_indices = @transform_3, window_bounds = array<i64: 32, 96>}, {pipeline_mode = #tpu.pipeline_mode<synchronous>, transform_indices = @transform_4, window_bounds = array<i64: 1, 96>}, {pipeline_mode = #tpu.pipeline_mode<synchronous>, transform_indices = @transform_5, window_bounds = array<i64: 32, 32>}, {pipeline_mode = #tpu.pipeline_mode<synchronous>, transform_indices = @transform_6, window_bounds = array<i64: 1, 32>}, {transform_indices = @transform_7, window_bounds = array<i64: 1, 1, 8>}, {transform_indices = @transform_8, window_bounds = array<i64: 1, 8, 32>}]} {
    %c0 = arith.constant 0 : index
    %c0_0 = arith.constant 0 : index
    %c0_1 = arith.constant 0 : index
    %0 = vector.load %arg1[%c0, %c0_0, %c0_1] : memref<1x8x32xf32, #tpu.memory_space<vmem>>, vector<1x8x32xf32>
    %1 = vector.shape_cast %0 : vector<1x8x32xf32> to vector<8x32xf32>
    %c0_2 = arith.constant 0 : index
    %c0_3 = arith.constant 0 : index
    %2 = vector.load %arg2[%c0_2, %c0_3] : memref<1x32xf32, #tpu.memory_space<vmem>>, vector<1x32xf32>
    %c0_4 = arith.constant 0 : index
    %c0_5 = arith.constant 0 : index
    %3 = vector.load %arg3[%c0_4, %c0_5] : memref<1x32xf32, #tpu.memory_space<vmem>>, vector<1x32xf32>
    %c0_6 = arith.constant 0 : index
    %c0_7 = arith.constant 0 : index
    %4 = vector.load %arg4[%c0_6, %c0_7] : memref<32x96xf32, #tpu.memory_space<vmem>>, vector<32x96xf32>
    %c0_8 = arith.constant 0 : index
    %c0_9 = arith.constant 0 : index
    %5 = vector.load %arg5[%c0_8, %c0_9] : memref<1x96xf32, #tpu.memory_space<vmem>>, vector<1x96xf32>
    %c0_10 = arith.constant 0 : index
    %c0_11 = arith.constant 0 : index
    %6 = vector.load %arg6[%c0_10, %c0_11] : memref<32x32xf32, #tpu.memory_space<vmem>>, vector<32x32xf32>
    %c0_12 = arith.constant 0 : index
    %c0_13 = arith.constant 0 : index
    %7 = vector.load %arg7[%c0_12, %c0_13] : memref<1x32xf32, #tpu.memory_space<vmem>>, vector<1x32xf32>
    %c0_14 = arith.constant 0 : index
    %c0_15 = arith.constant 0 : index
    %c0_16 = arith.constant 0 : index
    %8 = vector.load %arg8[%c0_14, %c0_15, %c0_16] : memref<1x1x8xf32, #tpu.memory_space<vmem>>, vector<1x1x8xf32>
    %9 = vector.shape_cast %8 : vector<1x1x8xf32> to vector<1x8xf32>
    %cst = arith.constant dense<0.000000e+00> : vector<8xf32>
    %10 = vector.multi_reduction <add>, %1, %cst [1] : vector<8x32xf32> to vector<8xf32>
    %11 = vector.shape_cast %10 : vector<8xf32> to vector<8x1xf32>
    %cst_17 = arith.constant 3.200000e+01 : f32
    %12 = vector.broadcast %cst_17 : f32 to vector<8x1xf32>
    %13 = arith.divf %11, %12 : vector<8x1xf32>
    %14 = vector.broadcast %13 : vector<8x1xf32> to vector<8x32xf32>
    %15 = arith.subf %1, %14 : vector<8x32xf32>
    %16 = arith.mulf %15, %15 : vector<8x32xf32>
    %cst_18 = arith.constant dense<0.000000e+00> : vector<8xf32>
    %17 = vector.multi_reduction <add>, %16, %cst_18 [1] : vector<8x32xf32> to vector<8xf32>
    %18 = vector.shape_cast %17 : vector<8xf32> to vector<8x1xf32>
    %cst_19 = arith.constant 0.0322580636 : f32
    %19 = vector.broadcast %cst_19 : f32 to vector<8x1xf32>
    %20 = arith.mulf %18, %19 : vector<8x1xf32>
    %21 = math.sqrt %20 : vector<8x1xf32>
    %cst_20 = arith.constant 9.99999997E-7 : f32
    %22 = vector.broadcast %cst_20 : f32 to vector<8x1xf32>
    %23 = arith.addf %21, %22 : vector<8x1xf32>
    %24 = tpu.reciprocal %23 {approx = true} : vector<8x1xf32> -> vector<8x1xf32>
    %25 = vector.broadcast %24 : vector<8x1xf32> to vector<8x32xf32>
    %26 = arith.mulf %15, %25 : vector<8x32xf32>
    %27 = vector.broadcast %2 : vector<1x32xf32> to vector<8x32xf32>
    %28 = arith.mulf %27, %26 : vector<8x32xf32>
    %29 = vector.broadcast %3 : vector<1x32xf32> to vector<8x32xf32>
    %30 = arith.addf %28, %29 : vector<8x32xf32>
    %cst_21 = arith.constant dense<0.000000e+00> : vector<8x96xf32>
    %31 = tpu.matmul %30, %4, %cst_21 {dimension_numbers = #tpu.dot_dimension_numbers<[1], [0], [0], [1], [0, 0, 1, 1], [], []>} : vector<8x32xf32>, vector<32x96xf32>, vector<8x96xf32> -> vector<8x96xf32>
    %32 = vector.broadcast %5 : vector<1x96xf32> to vector<8x96xf32>
    %33 = arith.addf %31, %32 : vector<8x96xf32>
    %34 = vector.extract_strided_slice %33 {offsets = [0, 0], sizes = [8, 32], strides = [1, 1]} : vector<8x96xf32> to vector<8x32xf32>
    %35 = vector.extract_strided_slice %33 {offsets = [0, 32], sizes = [8, 32], strides = [1, 1]} : vector<8x96xf32> to vector<8x32xf32>
    %36 = vector.extract_strided_slice %33 {offsets = [0, 64], sizes = [8, 32], strides = [1, 1]} : vector<8x96xf32> to vector<8x32xf32>
    %cst_22 = arith.constant 0.000000e+00 : f32
    %37 = vector.broadcast %cst_22 : f32 to vector<8x32xf32>
    %38 = vector.extract_strided_slice %34 {offsets = [0, 0], sizes = [8, 8], strides = [1, 1]} : vector<8x32xf32> to vector<8x8xf32>
    %39 = vector.extract_strided_slice %35 {offsets = [0, 0], sizes = [8, 8], strides = [1, 1]} : vector<8x32xf32> to vector<8x8xf32>
    %40 = vector.extract_strided_slice %36 {offsets = [0, 0], sizes = [8, 8], strides = [1, 1]} : vector<8x32xf32> to vector<8x8xf32>
    %cst_23 = arith.constant dense<0.000000e+00> : vector<8x8xf32>
    %41 = tpu.matmul %38, %39, %cst_23 {dimension_numbers = #tpu.dot_dimension_numbers<[1], [1], [0], [0], [0, 0, 1, 0], [], []>} : vector<8x8xf32>, vector<8x8xf32>, vector<8x8xf32> -> vector<8x8xf32>
    %cst_24 = arith.constant 0.353553385 : f32
    %42 = vector.broadcast %cst_24 : f32 to vector<8x8xf32>
    %43 = arith.mulf %41, %42 : vector<8x8xf32>
    %cst_25 = arith.constant 0.000000e+00 : f32
    %44 = vector.broadcast %cst_25 : f32 to vector<1x8xf32>
    %45 = arith.cmpf oeq, %9, %44 : vector<1x8xf32>
    %cst_26 = arith.constant -1.000000e+09 : f32
    %46 = vector.shape_cast %45 : vector<1x8xi1> to vector<1x8xi1>
    %47 = vector.broadcast %46 : vector<1x8xi1> to vector<8x8xi1>
    %48 = vector.broadcast %cst_26 : f32 to vector<8x8xf32>
    %49 = arith.select %47, %48, %43 : vector<8x8xi1>, vector<8x8xf32>
    %cst_27 = arith.constant dense<0xFF800000> : vector<8xf32>
    %50 = vector.multi_reduction <maximumf>, %49, %cst_27 [1] : vector<8x8xf32> to vector<8xf32>
    %51 = vector.shape_cast %50 : vector<8xf32> to vector<8x1xf32>
    %52 = vector.broadcast %51 : vector<8x1xf32> to vector<8x8xf32>
    %53 = arith.subf %49, %52 : vector<8x8xf32>
    %54 = math.exp %53 : vector<8x8xf32>
    %cst_28 = arith.constant dense<0.000000e+00> : vector<8xf32>
    %55 = vector.multi_reduction <add>, %54, %cst_28 [1] : vector<8x8xf32> to vector<8xf32>
    %56 = vector.shape_cast %55 : vector<8xf32> to vector<8x1xf32>
    %57 = tpu.reciprocal %56 {approx = true} : vector<8x1xf32> -> vector<8x1xf32>
    %58 = vector.broadcast %57 : vector<8x1xf32> to vector<8x8xf32>
    %59 = arith.mulf %54, %58 : vector<8x8xf32>
    %cst_29 = arith.constant dense<0.000000e+00> : vector<8x8xf32>
    %60 = tpu.matmul %59, %40, %cst_29 {dimension_numbers = #tpu.dot_dimension_numbers<[1], [0], [0], [1], [0, 0, 1, 1], [], []>} : vector<8x8xf32>, vector<8x8xf32>, vector<8x8xf32> -> vector<8x8xf32>
    %61 = vector.extract_strided_slice %6 {offsets = [0, 0], sizes = [8, 32], strides = [1, 1]} : vector<32x32xf32> to vector<8x32xf32>
    %cst_30 = arith.constant dense<0.000000e+00> : vector<8x32xf32>
    %62 = tpu.matmul %60, %61, %cst_30 {dimension_numbers = #tpu.dot_dimension_numbers<[1], [0], [0], [1], [0, 0, 1, 1], [], []>} : vector<8x8xf32>, vector<8x32xf32>, vector<8x32xf32> -> vector<8x32xf32>
    %63 = arith.addf %37, %62 : vector<8x32xf32>
    %64 = vector.extract_strided_slice %34 {offsets = [0, 8], sizes = [8, 8], strides = [1, 1]} : vector<8x32xf32> to vector<8x8xf32>
    %65 = vector.extract_strided_slice %35 {offsets = [0, 8], sizes = [8, 8], strides = [1, 1]} : vector<8x32xf32> to vector<8x8xf32>
    %66 = vector.extract_strided_slice %36 {offsets = [0, 8], sizes = [8, 8], strides = [1, 1]} : vector<8x32xf32> to vector<8x8xf32>
    %cst_31 = arith.constant dense<0.000000e+00> : vector<8x8xf32>
    %67 = tpu.matmul %64, %65, %cst_31 {dimension_numbers = #tpu.dot_dimension_numbers<[1], [1], [0], [0], [0, 0, 1, 0], [], []>} : vector<8x8xf32>, vector<8x8xf32>, vector<8x8xf32> -> vector<8x8xf32>
    %cst_32 = arith.constant 0.353553385 : f32
    %68 = vector.broadcast %cst_32 : f32 to vector<8x8xf32>
    %69 = arith.mulf %67, %68 : vector<8x8xf32>
    %cst_33 = arith.constant 0.000000e+00 : f32
    %70 = vector.broadcast %cst_33 : f32 to vector<1x8xf32>
    %71 = arith.cmpf oeq, %9, %70 : vector<1x8xf32>
    %cst_34 = arith.constant -1.000000e+09 : f32
    %72 = vector.shape_cast %71 : vector<1x8xi1> to vector<1x8xi1>
    %73 = vector.broadcast %72 : vector<1x8xi1> to vector<8x8xi1>
    %74 = vector.broadcast %cst_34 : f32 to vector<8x8xf32>
    %75 = arith.select %73, %74, %69 : vector<8x8xi1>, vector<8x8xf32>
    %cst_35 = arith.constant dense<0xFF800000> : vector<8xf32>
    %76 = vector.multi_reduction <maximumf>, %75, %cst_35 [1] : vector<8x8xf32> to vector<8xf32>
    %77 = vector.shape_cast %76 : vector<8xf32> to vector<8x1xf32>
    %78 = vector.broadcast %77 : vector<8x1xf32> to vector<8x8xf32>
    %79 = arith.subf %75, %78 : vector<8x8xf32>
    %80 = math.exp %79 : vector<8x8xf32>
    %cst_36 = arith.constant dense<0.000000e+00> : vector<8xf32>
    %81 = vector.multi_reduction <add>, %80, %cst_36 [1] : vector<8x8xf32> to vector<8xf32>
    %82 = vector.shape_cast %81 : vector<8xf32> to vector<8x1xf32>
    %83 = tpu.reciprocal %82 {approx = true} : vector<8x1xf32> -> vector<8x1xf32>
    %84 = vector.broadcast %83 : vector<8x1xf32> to vector<8x8xf32>
    %85 = arith.mulf %80, %84 : vector<8x8xf32>
    %cst_37 = arith.constant dense<0.000000e+00> : vector<8x8xf32>
    %86 = tpu.matmul %85, %66, %cst_37 {dimension_numbers = #tpu.dot_dimension_numbers<[1], [0], [0], [1], [0, 0, 1, 1], [], []>} : vector<8x8xf32>, vector<8x8xf32>, vector<8x8xf32> -> vector<8x8xf32>
    %87 = vector.extract_strided_slice %6 {offsets = [8, 0], sizes = [8, 32], strides = [1, 1]} : vector<32x32xf32> to vector<8x32xf32>
    %cst_38 = arith.constant dense<0.000000e+00> : vector<8x32xf32>
    %88 = tpu.matmul %86, %87, %cst_38 {dimension_numbers = #tpu.dot_dimension_numbers<[1], [0], [0], [1], [0, 0, 1, 1], [], []>} : vector<8x8xf32>, vector<8x32xf32>, vector<8x32xf32> -> vector<8x32xf32>
    %89 = arith.addf %63, %88 : vector<8x32xf32>
    %90 = vector.extract_strided_slice %34 {offsets = [0, 16], sizes = [8, 8], strides = [1, 1]} : vector<8x32xf32> to vector<8x8xf32>
    %91 = vector.extract_strided_slice %35 {offsets = [0, 16], sizes = [8, 8], strides = [1, 1]} : vector<8x32xf32> to vector<8x8xf32>
    %92 = vector.extract_strided_slice %36 {offsets = [0, 16], sizes = [8, 8], strides = [1, 1]} : vector<8x32xf32> to vector<8x8xf32>
    %cst_39 = arith.constant dense<0.000000e+00> : vector<8x8xf32>
    %93 = tpu.matmul %90, %91, %cst_39 {dimension_numbers = #tpu.dot_dimension_numbers<[1], [1], [0], [0], [0, 0, 1, 0], [], []>} : vector<8x8xf32>, vector<8x8xf32>, vector<8x8xf32> -> vector<8x8xf32>
    %cst_40 = arith.constant 0.353553385 : f32
    %94 = vector.broadcast %cst_40 : f32 to vector<8x8xf32>
    %95 = arith.mulf %93, %94 : vector<8x8xf32>
    %cst_41 = arith.constant 0.000000e+00 : f32
    %96 = vector.broadcast %cst_41 : f32 to vector<1x8xf32>
    %97 = arith.cmpf oeq, %9, %96 : vector<1x8xf32>
    %cst_42 = arith.constant -1.000000e+09 : f32
    %98 = vector.shape_cast %97 : vector<1x8xi1> to vector<1x8xi1>
    %99 = vector.broadcast %98 : vector<1x8xi1> to vector<8x8xi1>
    %100 = vector.broadcast %cst_42 : f32 to vector<8x8xf32>
    %101 = arith.select %99, %100, %95 : vector<8x8xi1>, vector<8x8xf32>
    %cst_43 = arith.constant dense<0xFF800000> : vector<8xf32>
    %102 = vector.multi_reduction <maximumf>, %101, %cst_43 [1] : vector<8x8xf32> to vector<8xf32>
    %103 = vector.shape_cast %102 : vector<8xf32> to vector<8x1xf32>
    %104 = vector.broadcast %103 : vector<8x1xf32> to vector<8x8xf32>
    %105 = arith.subf %101, %104 : vector<8x8xf32>
    %106 = math.exp %105 : vector<8x8xf32>
    %cst_44 = arith.constant dense<0.000000e+00> : vector<8xf32>
    %107 = vector.multi_reduction <add>, %106, %cst_44 [1] : vector<8x8xf32> to vector<8xf32>
    %108 = vector.shape_cast %107 : vector<8xf32> to vector<8x1xf32>
    %109 = tpu.reciprocal %108 {approx = true} : vector<8x1xf32> -> vector<8x1xf32>
    %110 = vector.broadcast %109 : vector<8x1xf32> to vector<8x8xf32>
    %111 = arith.mulf %106, %110 : vector<8x8xf32>
    %cst_45 = arith.constant dense<0.000000e+00> : vector<8x8xf32>
    %112 = tpu.matmul %111, %92, %cst_45 {dimension_numbers = #tpu.dot_dimension_numbers<[1], [0], [0], [1], [0, 0, 1, 1], [], []>} : vector<8x8xf32>, vector<8x8xf32>, vector<8x8xf32> -> vector<8x8xf32>
    %113 = vector.extract_strided_slice %6 {offsets = [16, 0], sizes = [8, 32], strides = [1, 1]} : vector<32x32xf32> to vector<8x32xf32>
    %cst_46 = arith.constant dense<0.000000e+00> : vector<8x32xf32>
    %114 = tpu.matmul %112, %113, %cst_46 {dimension_numbers = #tpu.dot_dimension_numbers<[1], [0], [0], [1], [0, 0, 1, 1], [], []>} : vector<8x8xf32>, vector<8x32xf32>, vector<8x32xf32> -> vector<8x32xf32>
    %115 = arith.addf %89, %114 : vector<8x32xf32>
    %116 = vector.extract_strided_slice %34 {offsets = [0, 24], sizes = [8, 8], strides = [1, 1]} : vector<8x32xf32> to vector<8x8xf32>
    %117 = vector.extract_strided_slice %35 {offsets = [0, 24], sizes = [8, 8], strides = [1, 1]} : vector<8x32xf32> to vector<8x8xf32>
    %118 = vector.extract_strided_slice %36 {offsets = [0, 24], sizes = [8, 8], strides = [1, 1]} : vector<8x32xf32> to vector<8x8xf32>
    %cst_47 = arith.constant dense<0.000000e+00> : vector<8x8xf32>
    %119 = tpu.matmul %116, %117, %cst_47 {dimension_numbers = #tpu.dot_dimension_numbers<[1], [1], [0], [0], [0, 0, 1, 0], [], []>} : vector<8x8xf32>, vector<8x8xf32>, vector<8x8xf32> -> vector<8x8xf32>
    %cst_48 = arith.constant 0.353553385 : f32
    %120 = vector.broadcast %cst_48 : f32 to vector<8x8xf32>
    %121 = arith.mulf %119, %120 : vector<8x8xf32>
    %cst_49 = arith.constant 0.000000e+00 : f32
    %122 = vector.broadcast %cst_49 : f32 to vector<1x8xf32>
    %123 = arith.cmpf oeq, %9, %122 : vector<1x8xf32>
    %cst_50 = arith.constant -1.000000e+09 : f32
    %124 = vector.shape_cast %123 : vector<1x8xi1> to vector<1x8xi1>
    %125 = vector.broadcast %124 : vector<1x8xi1> to vector<8x8xi1>
    %126 = vector.broadcast %cst_50 : f32 to vector<8x8xf32>
    %127 = arith.select %125, %126, %121 : vector<8x8xi1>, vector<8x8xf32>
    %cst_51 = arith.constant dense<0xFF800000> : vector<8xf32>
    %128 = vector.multi_reduction <maximumf>, %127, %cst_51 [1] : vector<8x8xf32> to vector<8xf32>
    %129 = vector.shape_cast %128 : vector<8xf32> to vector<8x1xf32>
    %130 = vector.broadcast %129 : vector<8x1xf32> to vector<8x8xf32>
    %131 = arith.subf %127, %130 : vector<8x8xf32>
    %132 = math.exp %131 : vector<8x8xf32>
    %cst_52 = arith.constant dense<0.000000e+00> : vector<8xf32>
    %133 = vector.multi_reduction <add>, %132, %cst_52 [1] : vector<8x8xf32> to vector<8xf32>
    %134 = vector.shape_cast %133 : vector<8xf32> to vector<8x1xf32>
    %135 = tpu.reciprocal %134 {approx = true} : vector<8x1xf32> -> vector<8x1xf32>
    %136 = vector.broadcast %135 : vector<8x1xf32> to vector<8x8xf32>
    %137 = arith.mulf %132, %136 : vector<8x8xf32>
    %cst_53 = arith.constant dense<0.000000e+00> : vector<8x8xf32>
    %138 = tpu.matmul %137, %118, %cst_53 {dimension_numbers = #tpu.dot_dimension_numbers<[1], [0], [0], [1], [0, 0, 1, 1], [], []>} : vector<8x8xf32>, vector<8x8xf32>, vector<8x8xf32> -> vector<8x8xf32>
    %139 = vector.extract_strided_slice %6 {offsets = [24, 0], sizes = [8, 32], strides = [1, 1]} : vector<32x32xf32> to vector<8x32xf32>
    %cst_54 = arith.constant dense<0.000000e+00> : vector<8x32xf32>
    %140 = tpu.matmul %138, %139, %cst_54 {dimension_numbers = #tpu.dot_dimension_numbers<[1], [0], [0], [1], [0, 0, 1, 1], [], []>} : vector<8x8xf32>, vector<8x32xf32>, vector<8x32xf32> -> vector<8x32xf32>
    %141 = arith.addf %115, %140 : vector<8x32xf32>
    %142 = vector.broadcast %7 : vector<1x32xf32> to vector<8x32xf32>
    %143 = arith.addf %141, %142 : vector<8x32xf32>
    %144 = arith.addf %1, %143 : vector<8x32xf32>
    %c0_55 = arith.constant 0 : index
    %c0_56 = arith.constant 0 : index
    %c0_57 = arith.constant 0 : index
    %145 = vector.load %arg9[%c0_55, %c0_56, %c0_57] : memref<1x8x32xf32, #tpu.memory_space<vmem>>, vector<1x8x32xf32>
    %146 = vector.shape_cast %145 : vector<1x8x32xf32> to vector<8x32xf32>
    %147 = vector.shape_cast %144 : vector<8x32xf32> to vector<1x8x32xf32>
    tpu.vector_store %arg9[%c0_55, %c0_56, %c0_57], %147 {strides = array<i32>} : memref<1x8x32xf32, #tpu.memory_space<vmem>>, vector<1x8x32xf32>,
    return
  }
  func.func @transform_0(%arg0: i32) -> (i32, i32, i32) {
    %c0_i32 = arith.constant 0 : i32
    %c0_i32_0 = arith.constant 0 : i32
    %c0_i32_1 = arith.constant 0 : i32
    return %arg0, %c0_i32, %c0_i32_0 : i32, i32, i32
  }
  func.func @transform_1(%arg0: i32) -> (i32, i32) {
    %c0_i32 = arith.constant 0 : i32
    %c0_i32_0 = arith.constant 0 : i32
    %c0_i32_1 = arith.constant 0 : i32
    return %c0_i32, %c0_i32_0 : i32, i32
  }
  func.func @transform_2(%arg0: i32) -> (i32, i32) {
    %c0_i32 = arith.constant 0 : i32
    %c0_i32_0 = arith.constant 0 : i32
    %c0_i32_1 = arith.constant 0 : i32
    return %c0_i32, %c0_i32_0 : i32, i32
  }
  func.func @transform_3(%arg0: i32) -> (i32, i32) {
    %c0_i32 = arith.constant 0 : i32
    %c0_i32_0 = arith.constant 0 : i32
    %c0_i32_1 = arith.constant 0 : i32
    return %c0_i32, %c0_i32_0 : i32, i32
  }
  func.func @transform_4(%arg0: i32) -> (i32, i32) {
    %c0_i32 = arith.constant 0 : i32
    %c0_i32_0 = arith.constant 0 : i32
    %c0_i32_1 = arith.constant 0 : i32
    return %c0_i32, %c0_i32_0 : i32, i32
  }
  func.func @transform_5(%arg0: i32) -> (i32, i32) {
    %c0_i32 = arith.constant 0 : i32
    %c0_i32_0 = arith.constant 0 : i32
    %c0_i32_1 = arith.constant 0 : i32
    return %c0_i32, %c0_i32_0 : i32, i32
  }
  func.func @transform_6(%arg0: i32) -> (i32, i32) {
    %c0_i32 = arith.constant 0 : i32
    %c0_i32_0 = arith.constant 0 : i32
    %c0_i32_1 = arith.constant 0 : i32
    return %c0_i32, %c0_i32_0 : i32, i32
  }
  func.func @transform_7(%arg0: i32) -> (i32, i32, i32) {
    %c0_i32 = arith.constant 0 : i32
    %c0_i32_0 = arith.constant 0 : i32
    %c0_i32_1 = arith.constant 0 : i32
    return %arg0, %c0_i32, %c0_i32_0 : i32, i32, i32
  }
  func.func @transform_8(%arg0: i32) -> (i32, i32, i32) {
    %c0_i32 = arith.constant 0 : i32
    %c0_i32_0 = arith.constant 0 : i32
    %c0_i32_1 = arith.constant 0 : i32
    return %arg0, %c0_i32, %c0_i32_0 : i32, i32, i32
  }
}

module attributes {stable_mosaic.version = 11 : i64} {
  func.func @_self_block_pe_kernel(%arg0: i32, %arg1: memref<1x8x32xf32, #tpu.memory_space<vmem>>, %arg2: memref<1x8x32xf32, #tpu.memory_space<vmem>>, %arg3: memref<1x32xf32, #tpu.memory_space<vmem>>, %arg4: memref<1x32xf32, #tpu.memory_space<vmem>>, %arg5: memref<32x96xf32, #tpu.memory_space<vmem>>, %arg6: memref<1x96xf32, #tpu.memory_space<vmem>>, %arg7: memref<32x32xf32, #tpu.memory_space<vmem>>, %arg8: memref<1x32xf32, #tpu.memory_space<vmem>>, %arg9: memref<1x8x8xf32, #tpu.memory_space<vmem>>, %arg10: memref<1x8x32xf32, #tpu.memory_space<vmem>>) attributes {dimension_semantics = [#tpu.dimension_semantics<parallel>], iteration_bounds = array<i64: 2>, scalar_prefetch = 0 : i64, scratch_operands = 0 : i64, tpu.core_type = #tpu.core_type<tc>, window_params = [{transform_indices = @transform_0, window_bounds = array<i64: 1, 8, 32>}, {pipeline_mode = #tpu.pipeline_mode<synchronous>, transform_indices = @transform_1, window_bounds = array<i64: 1, 8, 32>}, {pipeline_mode = #tpu.pipeline_mode<synchronous>, transform_indices = @transform_2, window_bounds = array<i64: 1, 32>}, {pipeline_mode = #tpu.pipeline_mode<synchronous>, transform_indices = @transform_3, window_bounds = array<i64: 1, 32>}, {pipeline_mode = #tpu.pipeline_mode<synchronous>, transform_indices = @transform_4, window_bounds = array<i64: 32, 96>}, {pipeline_mode = #tpu.pipeline_mode<synchronous>, transform_indices = @transform_5, window_bounds = array<i64: 1, 96>}, {pipeline_mode = #tpu.pipeline_mode<synchronous>, transform_indices = @transform_6, window_bounds = array<i64: 32, 32>}, {pipeline_mode = #tpu.pipeline_mode<synchronous>, transform_indices = @transform_7, window_bounds = array<i64: 1, 32>}, {transform_indices = @transform_8, window_bounds = array<i64: 1, 8, 8>}, {transform_indices = @transform_9, window_bounds = array<i64: 1, 8, 32>}]} {
    %c0 = arith.constant 0 : index
    %c0_0 = arith.constant 0 : index
    %c0_1 = arith.constant 0 : index
    %0 = vector.load %arg1[%c0, %c0_0, %c0_1] : memref<1x8x32xf32, #tpu.memory_space<vmem>>, vector<1x8x32xf32>
    %1 = vector.shape_cast %0 : vector<1x8x32xf32> to vector<8x32xf32>
    %c0_2 = arith.constant 0 : index
    %c0_3 = arith.constant 0 : index
    %c0_4 = arith.constant 0 : index
    %2 = vector.load %arg2[%c0_2, %c0_3, %c0_4] : memref<1x8x32xf32, #tpu.memory_space<vmem>>, vector<1x8x32xf32>
    %3 = vector.shape_cast %2 : vector<1x8x32xf32> to vector<8x32xf32>
    %c0_5 = arith.constant 0 : index
    %c0_6 = arith.constant 0 : index
    %4 = vector.load %arg3[%c0_5, %c0_6] : memref<1x32xf32, #tpu.memory_space<vmem>>, vector<1x32xf32>
    %c0_7 = arith.constant 0 : index
    %c0_8 = arith.constant 0 : index
    %5 = vector.load %arg4[%c0_7, %c0_8] : memref<1x32xf32, #tpu.memory_space<vmem>>, vector<1x32xf32>
    %c0_9 = arith.constant 0 : index
    %c0_10 = arith.constant 0 : index
    %6 = vector.load %arg5[%c0_9, %c0_10] : memref<32x96xf32, #tpu.memory_space<vmem>>, vector<32x96xf32>
    %c0_11 = arith.constant 0 : index
    %c0_12 = arith.constant 0 : index
    %7 = vector.load %arg6[%c0_11, %c0_12] : memref<1x96xf32, #tpu.memory_space<vmem>>, vector<1x96xf32>
    %c0_13 = arith.constant 0 : index
    %c0_14 = arith.constant 0 : index
    %8 = vector.load %arg7[%c0_13, %c0_14] : memref<32x32xf32, #tpu.memory_space<vmem>>, vector<32x32xf32>
    %c0_15 = arith.constant 0 : index
    %c0_16 = arith.constant 0 : index
    %9 = vector.load %arg8[%c0_15, %c0_16] : memref<1x32xf32, #tpu.memory_space<vmem>>, vector<1x32xf32>
    %c0_17 = arith.constant 0 : index
    %c0_18 = arith.constant 0 : index
    %c0_19 = arith.constant 0 : index
    %10 = vector.load %arg9[%c0_17, %c0_18, %c0_19] : memref<1x8x8xf32, #tpu.memory_space<vmem>>, vector<1x8x8xf32>
    %11 = vector.shape_cast %10 : vector<1x8x8xf32> to vector<8x8xf32>
    %cst = arith.constant 5.65685415 : f32
    %12 = vector.broadcast %cst : f32 to vector<8x32xf32>
    %13 = arith.mulf %1, %12 : vector<8x32xf32>
    %14 = arith.addf %13, %3 : vector<8x32xf32>
    %cst_20 = arith.constant dense<0.000000e+00> : vector<8xf32>
    %15 = vector.multi_reduction <add>, %14, %cst_20 [1] : vector<8x32xf32> to vector<8xf32>
    %16 = vector.shape_cast %15 : vector<8xf32> to vector<8x1xf32>
    %cst_21 = arith.constant 3.200000e+01 : f32
    %17 = vector.broadcast %cst_21 : f32 to vector<8x1xf32>
    %18 = arith.divf %16, %17 : vector<8x1xf32>
    %19 = vector.broadcast %18 : vector<8x1xf32> to vector<8x32xf32>
    %20 = arith.subf %14, %19 : vector<8x32xf32>
    %21 = arith.mulf %20, %20 : vector<8x32xf32>
    %cst_22 = arith.constant dense<0.000000e+00> : vector<8xf32>
    %22 = vector.multi_reduction <add>, %21, %cst_22 [1] : vector<8x32xf32> to vector<8xf32>
    %23 = vector.shape_cast %22 : vector<8xf32> to vector<8x1xf32>
    %cst_23 = arith.constant 0.0322580636 : f32
    %24 = vector.broadcast %cst_23 : f32 to vector<8x1xf32>
    %25 = arith.mulf %23, %24 : vector<8x1xf32>
    %26 = math.sqrt %25 : vector<8x1xf32>
    %cst_24 = arith.constant 9.99999997E-7 : f32
    %27 = vector.broadcast %cst_24 : f32 to vector<8x1xf32>
    %28 = arith.addf %26, %27 : vector<8x1xf32>
    %29 = tpu.reciprocal %28 {approx = true} : vector<8x1xf32> -> vector<8x1xf32>
    %30 = vector.broadcast %29 : vector<8x1xf32> to vector<8x32xf32>
    %31 = arith.mulf %20, %30 : vector<8x32xf32>
    %32 = vector.broadcast %4 : vector<1x32xf32> to vector<8x32xf32>
    %33 = arith.mulf %32, %31 : vector<8x32xf32>
    %34 = vector.broadcast %5 : vector<1x32xf32> to vector<8x32xf32>
    %35 = arith.addf %33, %34 : vector<8x32xf32>
    %cst_25 = arith.constant dense<0.000000e+00> : vector<8x96xf32>
    %36 = tpu.matmul %35, %6, %cst_25 {dimension_numbers = #tpu.dot_dimension_numbers<[1], [0], [0], [1], [0, 0, 1, 1], [], []>} : vector<8x32xf32>, vector<32x96xf32>, vector<8x96xf32> -> vector<8x96xf32>
    %37 = vector.broadcast %7 : vector<1x96xf32> to vector<8x96xf32>
    %38 = arith.addf %36, %37 : vector<8x96xf32>
    %39 = vector.extract_strided_slice %38 {offsets = [0, 0], sizes = [8, 32], strides = [1, 1]} : vector<8x96xf32> to vector<8x32xf32>
    %40 = vector.extract_strided_slice %38 {offsets = [0, 32], sizes = [8, 32], strides = [1, 1]} : vector<8x96xf32> to vector<8x32xf32>
    %41 = vector.extract_strided_slice %38 {offsets = [0, 64], sizes = [8, 32], strides = [1, 1]} : vector<8x96xf32> to vector<8x32xf32>
    %cst_26 = arith.constant 0.000000e+00 : f32
    %42 = vector.broadcast %cst_26 : f32 to vector<8x32xf32>
    %43 = vector.extract_strided_slice %39 {offsets = [0, 0], sizes = [8, 8], strides = [1, 1]} : vector<8x32xf32> to vector<8x8xf32>
    %44 = vector.extract_strided_slice %40 {offsets = [0, 0], sizes = [8, 8], strides = [1, 1]} : vector<8x32xf32> to vector<8x8xf32>
    %45 = vector.extract_strided_slice %41 {offsets = [0, 0], sizes = [8, 8], strides = [1, 1]} : vector<8x32xf32> to vector<8x8xf32>
    %cst_27 = arith.constant dense<0.000000e+00> : vector<8x8xf32>
    %46 = tpu.matmul %43, %44, %cst_27 {dimension_numbers = #tpu.dot_dimension_numbers<[1], [1], [0], [0], [0, 0, 1, 0], [], []>} : vector<8x8xf32>, vector<8x8xf32>, vector<8x8xf32> -> vector<8x8xf32>
    %cst_28 = arith.constant 0.353553385 : f32
    %47 = vector.broadcast %cst_28 : f32 to vector<8x8xf32>
    %48 = arith.mulf %46, %47 : vector<8x8xf32>
    %cst_29 = arith.constant 0.000000e+00 : f32
    %49 = vector.broadcast %cst_29 : f32 to vector<8x8xf32>
    %50 = arith.cmpf oeq, %11, %49 : vector<8x8xf32>
    %cst_30 = arith.constant -1.000000e+09 : f32
    %51 = vector.broadcast %cst_30 : f32 to vector<8x8xf32>
    %52 = arith.select %50, %51, %48 : vector<8x8xi1>, vector<8x8xf32>
    %cst_31 = arith.constant dense<0xFF800000> : vector<8xf32>
    %53 = vector.multi_reduction <maximumf>, %52, %cst_31 [1] : vector<8x8xf32> to vector<8xf32>
    %54 = vector.shape_cast %53 : vector<8xf32> to vector<8x1xf32>
    %55 = vector.broadcast %54 : vector<8x1xf32> to vector<8x8xf32>
    %56 = arith.subf %52, %55 : vector<8x8xf32>
    %57 = math.exp %56 : vector<8x8xf32>
    %cst_32 = arith.constant dense<0.000000e+00> : vector<8xf32>
    %58 = vector.multi_reduction <add>, %57, %cst_32 [1] : vector<8x8xf32> to vector<8xf32>
    %59 = vector.shape_cast %58 : vector<8xf32> to vector<8x1xf32>
    %60 = tpu.reciprocal %59 {approx = true} : vector<8x1xf32> -> vector<8x1xf32>
    %61 = vector.broadcast %60 : vector<8x1xf32> to vector<8x8xf32>
    %62 = arith.mulf %57, %61 : vector<8x8xf32>
    %cst_33 = arith.constant dense<0.000000e+00> : vector<8x8xf32>
    %63 = tpu.matmul %62, %45, %cst_33 {dimension_numbers = #tpu.dot_dimension_numbers<[1], [0], [0], [1], [0, 0, 1, 1], [], []>} : vector<8x8xf32>, vector<8x8xf32>, vector<8x8xf32> -> vector<8x8xf32>
    %64 = vector.extract_strided_slice %8 {offsets = [0, 0], sizes = [8, 32], strides = [1, 1]} : vector<32x32xf32> to vector<8x32xf32>
    %cst_34 = arith.constant dense<0.000000e+00> : vector<8x32xf32>
    %65 = tpu.matmul %63, %64, %cst_34 {dimension_numbers = #tpu.dot_dimension_numbers<[1], [0], [0], [1], [0, 0, 1, 1], [], []>} : vector<8x8xf32>, vector<8x32xf32>, vector<8x32xf32> -> vector<8x32xf32>
    %66 = arith.addf %42, %65 : vector<8x32xf32>
    %67 = vector.extract_strided_slice %39 {offsets = [0, 8], sizes = [8, 8], strides = [1, 1]} : vector<8x32xf32> to vector<8x8xf32>
    %68 = vector.extract_strided_slice %40 {offsets = [0, 8], sizes = [8, 8], strides = [1, 1]} : vector<8x32xf32> to vector<8x8xf32>
    %69 = vector.extract_strided_slice %41 {offsets = [0, 8], sizes = [8, 8], strides = [1, 1]} : vector<8x32xf32> to vector<8x8xf32>
    %cst_35 = arith.constant dense<0.000000e+00> : vector<8x8xf32>
    %70 = tpu.matmul %67, %68, %cst_35 {dimension_numbers = #tpu.dot_dimension_numbers<[1], [1], [0], [0], [0, 0, 1, 0], [], []>} : vector<8x8xf32>, vector<8x8xf32>, vector<8x8xf32> -> vector<8x8xf32>
    %cst_36 = arith.constant 0.353553385 : f32
    %71 = vector.broadcast %cst_36 : f32 to vector<8x8xf32>
    %72 = arith.mulf %70, %71 : vector<8x8xf32>
    %cst_37 = arith.constant 0.000000e+00 : f32
    %73 = vector.broadcast %cst_37 : f32 to vector<8x8xf32>
    %74 = arith.cmpf oeq, %11, %73 : vector<8x8xf32>
    %cst_38 = arith.constant -1.000000e+09 : f32
    %75 = vector.broadcast %cst_38 : f32 to vector<8x8xf32>
    %76 = arith.select %74, %75, %72 : vector<8x8xi1>, vector<8x8xf32>
    %cst_39 = arith.constant dense<0xFF800000> : vector<8xf32>
    %77 = vector.multi_reduction <maximumf>, %76, %cst_39 [1] : vector<8x8xf32> to vector<8xf32>
    %78 = vector.shape_cast %77 : vector<8xf32> to vector<8x1xf32>
    %79 = vector.broadcast %78 : vector<8x1xf32> to vector<8x8xf32>
    %80 = arith.subf %76, %79 : vector<8x8xf32>
    %81 = math.exp %80 : vector<8x8xf32>
    %cst_40 = arith.constant dense<0.000000e+00> : vector<8xf32>
    %82 = vector.multi_reduction <add>, %81, %cst_40 [1] : vector<8x8xf32> to vector<8xf32>
    %83 = vector.shape_cast %82 : vector<8xf32> to vector<8x1xf32>
    %84 = tpu.reciprocal %83 {approx = true} : vector<8x1xf32> -> vector<8x1xf32>
    %85 = vector.broadcast %84 : vector<8x1xf32> to vector<8x8xf32>
    %86 = arith.mulf %81, %85 : vector<8x8xf32>
    %cst_41 = arith.constant dense<0.000000e+00> : vector<8x8xf32>
    %87 = tpu.matmul %86, %69, %cst_41 {dimension_numbers = #tpu.dot_dimension_numbers<[1], [0], [0], [1], [0, 0, 1, 1], [], []>} : vector<8x8xf32>, vector<8x8xf32>, vector<8x8xf32> -> vector<8x8xf32>
    %88 = vector.extract_strided_slice %8 {offsets = [8, 0], sizes = [8, 32], strides = [1, 1]} : vector<32x32xf32> to vector<8x32xf32>
    %cst_42 = arith.constant dense<0.000000e+00> : vector<8x32xf32>
    %89 = tpu.matmul %87, %88, %cst_42 {dimension_numbers = #tpu.dot_dimension_numbers<[1], [0], [0], [1], [0, 0, 1, 1], [], []>} : vector<8x8xf32>, vector<8x32xf32>, vector<8x32xf32> -> vector<8x32xf32>
    %90 = arith.addf %66, %89 : vector<8x32xf32>
    %91 = vector.extract_strided_slice %39 {offsets = [0, 16], sizes = [8, 8], strides = [1, 1]} : vector<8x32xf32> to vector<8x8xf32>
    %92 = vector.extract_strided_slice %40 {offsets = [0, 16], sizes = [8, 8], strides = [1, 1]} : vector<8x32xf32> to vector<8x8xf32>
    %93 = vector.extract_strided_slice %41 {offsets = [0, 16], sizes = [8, 8], strides = [1, 1]} : vector<8x32xf32> to vector<8x8xf32>
    %cst_43 = arith.constant dense<0.000000e+00> : vector<8x8xf32>
    %94 = tpu.matmul %91, %92, %cst_43 {dimension_numbers = #tpu.dot_dimension_numbers<[1], [1], [0], [0], [0, 0, 1, 0], [], []>} : vector<8x8xf32>, vector<8x8xf32>, vector<8x8xf32> -> vector<8x8xf32>
    %cst_44 = arith.constant 0.353553385 : f32
    %95 = vector.broadcast %cst_44 : f32 to vector<8x8xf32>
    %96 = arith.mulf %94, %95 : vector<8x8xf32>
    %cst_45 = arith.constant 0.000000e+00 : f32
    %97 = vector.broadcast %cst_45 : f32 to vector<8x8xf32>
    %98 = arith.cmpf oeq, %11, %97 : vector<8x8xf32>
    %cst_46 = arith.constant -1.000000e+09 : f32
    %99 = vector.broadcast %cst_46 : f32 to vector<8x8xf32>
    %100 = arith.select %98, %99, %96 : vector<8x8xi1>, vector<8x8xf32>
    %cst_47 = arith.constant dense<0xFF800000> : vector<8xf32>
    %101 = vector.multi_reduction <maximumf>, %100, %cst_47 [1] : vector<8x8xf32> to vector<8xf32>
    %102 = vector.shape_cast %101 : vector<8xf32> to vector<8x1xf32>
    %103 = vector.broadcast %102 : vector<8x1xf32> to vector<8x8xf32>
    %104 = arith.subf %100, %103 : vector<8x8xf32>
    %105 = math.exp %104 : vector<8x8xf32>
    %cst_48 = arith.constant dense<0.000000e+00> : vector<8xf32>
    %106 = vector.multi_reduction <add>, %105, %cst_48 [1] : vector<8x8xf32> to vector<8xf32>
    %107 = vector.shape_cast %106 : vector<8xf32> to vector<8x1xf32>
    %108 = tpu.reciprocal %107 {approx = true} : vector<8x1xf32> -> vector<8x1xf32>
    %109 = vector.broadcast %108 : vector<8x1xf32> to vector<8x8xf32>
    %110 = arith.mulf %105, %109 : vector<8x8xf32>
    %cst_49 = arith.constant dense<0.000000e+00> : vector<8x8xf32>
    %111 = tpu.matmul %110, %93, %cst_49 {dimension_numbers = #tpu.dot_dimension_numbers<[1], [0], [0], [1], [0, 0, 1, 1], [], []>} : vector<8x8xf32>, vector<8x8xf32>, vector<8x8xf32> -> vector<8x8xf32>
    %112 = vector.extract_strided_slice %8 {offsets = [16, 0], sizes = [8, 32], strides = [1, 1]} : vector<32x32xf32> to vector<8x32xf32>
    %cst_50 = arith.constant dense<0.000000e+00> : vector<8x32xf32>
    %113 = tpu.matmul %111, %112, %cst_50 {dimension_numbers = #tpu.dot_dimension_numbers<[1], [0], [0], [1], [0, 0, 1, 1], [], []>} : vector<8x8xf32>, vector<8x32xf32>, vector<8x32xf32> -> vector<8x32xf32>
    %114 = arith.addf %90, %113 : vector<8x32xf32>
    %115 = vector.extract_strided_slice %39 {offsets = [0, 24], sizes = [8, 8], strides = [1, 1]} : vector<8x32xf32> to vector<8x8xf32>
    %116 = vector.extract_strided_slice %40 {offsets = [0, 24], sizes = [8, 8], strides = [1, 1]} : vector<8x32xf32> to vector<8x8xf32>
    %117 = vector.extract_strided_slice %41 {offsets = [0, 24], sizes = [8, 8], strides = [1, 1]} : vector<8x32xf32> to vector<8x8xf32>
    %cst_51 = arith.constant dense<0.000000e+00> : vector<8x8xf32>
    %118 = tpu.matmul %115, %116, %cst_51 {dimension_numbers = #tpu.dot_dimension_numbers<[1], [1], [0], [0], [0, 0, 1, 0], [], []>} : vector<8x8xf32>, vector<8x8xf32>, vector<8x8xf32> -> vector<8x8xf32>
    %cst_52 = arith.constant 0.353553385 : f32
    %119 = vector.broadcast %cst_52 : f32 to vector<8x8xf32>
    %120 = arith.mulf %118, %119 : vector<8x8xf32>
    %cst_53 = arith.constant 0.000000e+00 : f32
    %121 = vector.broadcast %cst_53 : f32 to vector<8x8xf32>
    %122 = arith.cmpf oeq, %11, %121 : vector<8x8xf32>
    %cst_54 = arith.constant -1.000000e+09 : f32
    %123 = vector.broadcast %cst_54 : f32 to vector<8x8xf32>
    %124 = arith.select %122, %123, %120 : vector<8x8xi1>, vector<8x8xf32>
    %cst_55 = arith.constant dense<0xFF800000> : vector<8xf32>
    %125 = vector.multi_reduction <maximumf>, %124, %cst_55 [1] : vector<8x8xf32> to vector<8xf32>
    %126 = vector.shape_cast %125 : vector<8xf32> to vector<8x1xf32>
    %127 = vector.broadcast %126 : vector<8x1xf32> to vector<8x8xf32>
    %128 = arith.subf %124, %127 : vector<8x8xf32>
    %129 = math.exp %128 : vector<8x8xf32>
    %cst_56 = arith.constant dense<0.000000e+00> : vector<8xf32>
    %130 = vector.multi_reduction <add>, %129, %cst_56 [1] : vector<8x8xf32> to vector<8xf32>
    %131 = vector.shape_cast %130 : vector<8xf32> to vector<8x1xf32>
    %132 = tpu.reciprocal %131 {approx = true} : vector<8x1xf32> -> vector<8x1xf32>
    %133 = vector.broadcast %132 : vector<8x1xf32> to vector<8x8xf32>
    %134 = arith.mulf %129, %133 : vector<8x8xf32>
    %cst_57 = arith.constant dense<0.000000e+00> : vector<8x8xf32>
    %135 = tpu.matmul %134, %117, %cst_57 {dimension_numbers = #tpu.dot_dimension_numbers<[1], [0], [0], [1], [0, 0, 1, 1], [], []>} : vector<8x8xf32>, vector<8x8xf32>, vector<8x8xf32> -> vector<8x8xf32>
    %136 = vector.extract_strided_slice %8 {offsets = [24, 0], sizes = [8, 32], strides = [1, 1]} : vector<32x32xf32> to vector<8x32xf32>
    %cst_58 = arith.constant dense<0.000000e+00> : vector<8x32xf32>
    %137 = tpu.matmul %135, %136, %cst_58 {dimension_numbers = #tpu.dot_dimension_numbers<[1], [0], [0], [1], [0, 0, 1, 1], [], []>} : vector<8x8xf32>, vector<8x32xf32>, vector<8x32xf32> -> vector<8x32xf32>
    %138 = arith.addf %114, %137 : vector<8x32xf32>
    %139 = vector.broadcast %9 : vector<1x32xf32> to vector<8x32xf32>
    %140 = arith.addf %138, %139 : vector<8x32xf32>
    %141 = arith.addf %14, %140 : vector<8x32xf32>
    %c0_59 = arith.constant 0 : index
    %c0_60 = arith.constant 0 : index
    %c0_61 = arith.constant 0 : index
    %142 = vector.load %arg10[%c0_59, %c0_60, %c0_61] : memref<1x8x32xf32, #tpu.memory_space<vmem>>, vector<1x8x32xf32>
    %143 = vector.shape_cast %142 : vector<1x8x32xf32> to vector<8x32xf32>
    %144 = vector.shape_cast %141 : vector<8x32xf32> to vector<1x8x32xf32>
    tpu.vector_store %arg10[%c0_59, %c0_60, %c0_61], %144 {strides = array<i32>} : memref<1x8x32xf32, #tpu.memory_space<vmem>>, vector<1x8x32xf32>,
    return
  }
  func.func @transform_0(%arg0: i32) -> (i32, i32, i32) {
    %c0_i32 = arith.constant 0 : i32
    %c0_i32_0 = arith.constant 0 : i32
    %c0_i32_1 = arith.constant 0 : i32
    return %arg0, %c0_i32, %c0_i32_0 : i32, i32, i32
  }
  func.func @transform_1(%arg0: i32) -> (i32, i32, i32) {
    %c0_i32 = arith.constant 0 : i32
    %c0_i32_0 = arith.constant 0 : i32
    %c0_i32_1 = arith.constant 0 : i32
    %c0_i32_2 = arith.constant 0 : i32
    return %c0_i32, %c0_i32_0, %c0_i32_1 : i32, i32, i32
  }
  func.func @transform_2(%arg0: i32) -> (i32, i32) {
    %c0_i32 = arith.constant 0 : i32
    %c0_i32_0 = arith.constant 0 : i32
    %c0_i32_1 = arith.constant 0 : i32
    return %c0_i32, %c0_i32_0 : i32, i32
  }
  func.func @transform_3(%arg0: i32) -> (i32, i32) {
    %c0_i32 = arith.constant 0 : i32
    %c0_i32_0 = arith.constant 0 : i32
    %c0_i32_1 = arith.constant 0 : i32
    return %c0_i32, %c0_i32_0 : i32, i32
  }
  func.func @transform_4(%arg0: i32) -> (i32, i32) {
    %c0_i32 = arith.constant 0 : i32
    %c0_i32_0 = arith.constant 0 : i32
    %c0_i32_1 = arith.constant 0 : i32
    return %c0_i32, %c0_i32_0 : i32, i32
  }
  func.func @transform_5(%arg0: i32) -> (i32, i32) {
    %c0_i32 = arith.constant 0 : i32
    %c0_i32_0 = arith.constant 0 : i32
    %c0_i32_1 = arith.constant 0 : i32
    return %c0_i32, %c0_i32_0 : i32, i32
  }
  func.func @transform_6(%arg0: i32) -> (i32, i32) {
    %c0_i32 = arith.constant 0 : i32
    %c0_i32_0 = arith.constant 0 : i32
    %c0_i32_1 = arith.constant 0 : i32
    return %c0_i32, %c0_i32_0 : i32, i32
  }
  func.func @transform_7(%arg0: i32) -> (i32, i32) {
    %c0_i32 = arith.constant 0 : i32
    %c0_i32_0 = arith.constant 0 : i32
    %c0_i32_1 = arith.constant 0 : i32
    return %c0_i32, %c0_i32_0 : i32, i32
  }
  func.func @transform_8(%arg0: i32) -> (i32, i32, i32) {
    %c0_i32 = arith.constant 0 : i32
    %c0_i32_0 = arith.constant 0 : i32
    %c0_i32_1 = arith.constant 0 : i32
    return %arg0, %c0_i32, %c0_i32_0 : i32, i32, i32
  }
  func.func @transform_9(%arg0: i32) -> (i32, i32, i32) {
    %c0_i32 = arith.constant 0 : i32
    %c0_i32_0 = arith.constant 0 : i32
    %c0_i32_1 = arith.constant 0 : i32
    return %arg0, %c0_i32, %c0_i32_0 : i32, i32, i32
  }
}

module attributes {stable_mosaic.version = 11 : i64} {
  func.func @_self_block_kernel(%arg0: i32, %arg1: memref<1x8x32xf32, #tpu.memory_space<vmem>>, %arg2: memref<1x32xf32, #tpu.memory_space<vmem>>, %arg3: memref<1x32xf32, #tpu.memory_space<vmem>>, %arg4: memref<32x96xf32, #tpu.memory_space<vmem>>, %arg5: memref<1x96xf32, #tpu.memory_space<vmem>>, %arg6: memref<32x32xf32, #tpu.memory_space<vmem>>, %arg7: memref<1x32xf32, #tpu.memory_space<vmem>>, %arg8: memref<1x8x8xf32, #tpu.memory_space<vmem>>, %arg9: memref<1x8x32xf32, #tpu.memory_space<vmem>>) attributes {dimension_semantics = [#tpu.dimension_semantics<parallel>], iteration_bounds = array<i64: 2>, scalar_prefetch = 0 : i64, scratch_operands = 0 : i64, tpu.core_type = #tpu.core_type<tc>, window_params = [{transform_indices = @transform_0, window_bounds = array<i64: 1, 8, 32>}, {pipeline_mode = #tpu.pipeline_mode<synchronous>, transform_indices = @transform_1, window_bounds = array<i64: 1, 32>}, {pipeline_mode = #tpu.pipeline_mode<synchronous>, transform_indices = @transform_2, window_bounds = array<i64: 1, 32>}, {pipeline_mode = #tpu.pipeline_mode<synchronous>, transform_indices = @transform_3, window_bounds = array<i64: 32, 96>}, {pipeline_mode = #tpu.pipeline_mode<synchronous>, transform_indices = @transform_4, window_bounds = array<i64: 1, 96>}, {pipeline_mode = #tpu.pipeline_mode<synchronous>, transform_indices = @transform_5, window_bounds = array<i64: 32, 32>}, {pipeline_mode = #tpu.pipeline_mode<synchronous>, transform_indices = @transform_6, window_bounds = array<i64: 1, 32>}, {transform_indices = @transform_7, window_bounds = array<i64: 1, 8, 8>}, {transform_indices = @transform_8, window_bounds = array<i64: 1, 8, 32>}]} {
    %c0 = arith.constant 0 : index
    %c0_0 = arith.constant 0 : index
    %c0_1 = arith.constant 0 : index
    %0 = vector.load %arg1[%c0, %c0_0, %c0_1] : memref<1x8x32xf32, #tpu.memory_space<vmem>>, vector<1x8x32xf32>
    %1 = vector.shape_cast %0 : vector<1x8x32xf32> to vector<8x32xf32>
    %c0_2 = arith.constant 0 : index
    %c0_3 = arith.constant 0 : index
    %2 = vector.load %arg2[%c0_2, %c0_3] : memref<1x32xf32, #tpu.memory_space<vmem>>, vector<1x32xf32>
    %c0_4 = arith.constant 0 : index
    %c0_5 = arith.constant 0 : index
    %3 = vector.load %arg3[%c0_4, %c0_5] : memref<1x32xf32, #tpu.memory_space<vmem>>, vector<1x32xf32>
    %c0_6 = arith.constant 0 : index
    %c0_7 = arith.constant 0 : index
    %4 = vector.load %arg4[%c0_6, %c0_7] : memref<32x96xf32, #tpu.memory_space<vmem>>, vector<32x96xf32>
    %c0_8 = arith.constant 0 : index
    %c0_9 = arith.constant 0 : index
    %5 = vector.load %arg5[%c0_8, %c0_9] : memref<1x96xf32, #tpu.memory_space<vmem>>, vector<1x96xf32>
    %c0_10 = arith.constant 0 : index
    %c0_11 = arith.constant 0 : index
    %6 = vector.load %arg6[%c0_10, %c0_11] : memref<32x32xf32, #tpu.memory_space<vmem>>, vector<32x32xf32>
    %c0_12 = arith.constant 0 : index
    %c0_13 = arith.constant 0 : index
    %7 = vector.load %arg7[%c0_12, %c0_13] : memref<1x32xf32, #tpu.memory_space<vmem>>, vector<1x32xf32>
    %c0_14 = arith.constant 0 : index
    %c0_15 = arith.constant 0 : index
    %c0_16 = arith.constant 0 : index
    %8 = vector.load %arg8[%c0_14, %c0_15, %c0_16] : memref<1x8x8xf32, #tpu.memory_space<vmem>>, vector<1x8x8xf32>
    %9 = vector.shape_cast %8 : vector<1x8x8xf32> to vector<8x8xf32>
    %cst = arith.constant dense<0.000000e+00> : vector<8xf32>
    %10 = vector.multi_reduction <add>, %1, %cst [1] : vector<8x32xf32> to vector<8xf32>
    %11 = vector.shape_cast %10 : vector<8xf32> to vector<8x1xf32>
    %cst_17 = arith.constant 3.200000e+01 : f32
    %12 = vector.broadcast %cst_17 : f32 to vector<8x1xf32>
    %13 = arith.divf %11, %12 : vector<8x1xf32>
    %14 = vector.broadcast %13 : vector<8x1xf32> to vector<8x32xf32>
    %15 = arith.subf %1, %14 : vector<8x32xf32>
    %16 = arith.mulf %15, %15 : vector<8x32xf32>
    %cst_18 = arith.constant dense<0.000000e+00> : vector<8xf32>
    %17 = vector.multi_reduction <add>, %16, %cst_18 [1] : vector<8x32xf32> to vector<8xf32>
    %18 = vector.shape_cast %17 : vector<8xf32> to vector<8x1xf32>
    %cst_19 = arith.constant 0.0322580636 : f32
    %19 = vector.broadcast %cst_19 : f32 to vector<8x1xf32>
    %20 = arith.mulf %18, %19 : vector<8x1xf32>
    %21 = math.sqrt %20 : vector<8x1xf32>
    %cst_20 = arith.constant 9.99999997E-7 : f32
    %22 = vector.broadcast %cst_20 : f32 to vector<8x1xf32>
    %23 = arith.addf %21, %22 : vector<8x1xf32>
    %24 = tpu.reciprocal %23 {approx = true} : vector<8x1xf32> -> vector<8x1xf32>
    %25 = vector.broadcast %24 : vector<8x1xf32> to vector<8x32xf32>
    %26 = arith.mulf %15, %25 : vector<8x32xf32>
    %27 = vector.broadcast %2 : vector<1x32xf32> to vector<8x32xf32>
    %28 = arith.mulf %27, %26 : vector<8x32xf32>
    %29 = vector.broadcast %3 : vector<1x32xf32> to vector<8x32xf32>
    %30 = arith.addf %28, %29 : vector<8x32xf32>
    %cst_21 = arith.constant dense<0.000000e+00> : vector<8x96xf32>
    %31 = tpu.matmul %30, %4, %cst_21 {dimension_numbers = #tpu.dot_dimension_numbers<[1], [0], [0], [1], [0, 0, 1, 1], [], []>} : vector<8x32xf32>, vector<32x96xf32>, vector<8x96xf32> -> vector<8x96xf32>
    %32 = vector.broadcast %5 : vector<1x96xf32> to vector<8x96xf32>
    %33 = arith.addf %31, %32 : vector<8x96xf32>
    %34 = vector.extract_strided_slice %33 {offsets = [0, 0], sizes = [8, 32], strides = [1, 1]} : vector<8x96xf32> to vector<8x32xf32>
    %35 = vector.extract_strided_slice %33 {offsets = [0, 32], sizes = [8, 32], strides = [1, 1]} : vector<8x96xf32> to vector<8x32xf32>
    %36 = vector.extract_strided_slice %33 {offsets = [0, 64], sizes = [8, 32], strides = [1, 1]} : vector<8x96xf32> to vector<8x32xf32>
    %cst_22 = arith.constant 0.000000e+00 : f32
    %37 = vector.broadcast %cst_22 : f32 to vector<8x32xf32>
    %38 = vector.extract_strided_slice %34 {offsets = [0, 0], sizes = [8, 8], strides = [1, 1]} : vector<8x32xf32> to vector<8x8xf32>
    %39 = vector.extract_strided_slice %35 {offsets = [0, 0], sizes = [8, 8], strides = [1, 1]} : vector<8x32xf32> to vector<8x8xf32>
    %40 = vector.extract_strided_slice %36 {offsets = [0, 0], sizes = [8, 8], strides = [1, 1]} : vector<8x32xf32> to vector<8x8xf32>
    %cst_23 = arith.constant dense<0.000000e+00> : vector<8x8xf32>
    %41 = tpu.matmul %38, %39, %cst_23 {dimension_numbers = #tpu.dot_dimension_numbers<[1], [1], [0], [0], [0, 0, 1, 0], [], []>} : vector<8x8xf32>, vector<8x8xf32>, vector<8x8xf32> -> vector<8x8xf32>
    %cst_24 = arith.constant 0.353553385 : f32
    %42 = vector.broadcast %cst_24 : f32 to vector<8x8xf32>
    %43 = arith.mulf %41, %42 : vector<8x8xf32>
    %cst_25 = arith.constant 0.000000e+00 : f32
    %44 = vector.broadcast %cst_25 : f32 to vector<8x8xf32>
    %45 = arith.cmpf oeq, %9, %44 : vector<8x8xf32>
    %cst_26 = arith.constant -1.000000e+09 : f32
    %46 = vector.broadcast %cst_26 : f32 to vector<8x8xf32>
    %47 = arith.select %45, %46, %43 : vector<8x8xi1>, vector<8x8xf32>
    %cst_27 = arith.constant dense<0xFF800000> : vector<8xf32>
    %48 = vector.multi_reduction <maximumf>, %47, %cst_27 [1] : vector<8x8xf32> to vector<8xf32>
    %49 = vector.shape_cast %48 : vector<8xf32> to vector<8x1xf32>
    %50 = vector.broadcast %49 : vector<8x1xf32> to vector<8x8xf32>
    %51 = arith.subf %47, %50 : vector<8x8xf32>
    %52 = math.exp %51 : vector<8x8xf32>
    %cst_28 = arith.constant dense<0.000000e+00> : vector<8xf32>
    %53 = vector.multi_reduction <add>, %52, %cst_28 [1] : vector<8x8xf32> to vector<8xf32>
    %54 = vector.shape_cast %53 : vector<8xf32> to vector<8x1xf32>
    %55 = tpu.reciprocal %54 {approx = true} : vector<8x1xf32> -> vector<8x1xf32>
    %56 = vector.broadcast %55 : vector<8x1xf32> to vector<8x8xf32>
    %57 = arith.mulf %52, %56 : vector<8x8xf32>
    %cst_29 = arith.constant dense<0.000000e+00> : vector<8x8xf32>
    %58 = tpu.matmul %57, %40, %cst_29 {dimension_numbers = #tpu.dot_dimension_numbers<[1], [0], [0], [1], [0, 0, 1, 1], [], []>} : vector<8x8xf32>, vector<8x8xf32>, vector<8x8xf32> -> vector<8x8xf32>
    %59 = vector.extract_strided_slice %6 {offsets = [0, 0], sizes = [8, 32], strides = [1, 1]} : vector<32x32xf32> to vector<8x32xf32>
    %cst_30 = arith.constant dense<0.000000e+00> : vector<8x32xf32>
    %60 = tpu.matmul %58, %59, %cst_30 {dimension_numbers = #tpu.dot_dimension_numbers<[1], [0], [0], [1], [0, 0, 1, 1], [], []>} : vector<8x8xf32>, vector<8x32xf32>, vector<8x32xf32> -> vector<8x32xf32>
    %61 = arith.addf %37, %60 : vector<8x32xf32>
    %62 = vector.extract_strided_slice %34 {offsets = [0, 8], sizes = [8, 8], strides = [1, 1]} : vector<8x32xf32> to vector<8x8xf32>
    %63 = vector.extract_strided_slice %35 {offsets = [0, 8], sizes = [8, 8], strides = [1, 1]} : vector<8x32xf32> to vector<8x8xf32>
    %64 = vector.extract_strided_slice %36 {offsets = [0, 8], sizes = [8, 8], strides = [1, 1]} : vector<8x32xf32> to vector<8x8xf32>
    %cst_31 = arith.constant dense<0.000000e+00> : vector<8x8xf32>
    %65 = tpu.matmul %62, %63, %cst_31 {dimension_numbers = #tpu.dot_dimension_numbers<[1], [1], [0], [0], [0, 0, 1, 0], [], []>} : vector<8x8xf32>, vector<8x8xf32>, vector<8x8xf32> -> vector<8x8xf32>
    %cst_32 = arith.constant 0.353553385 : f32
    %66 = vector.broadcast %cst_32 : f32 to vector<8x8xf32>
    %67 = arith.mulf %65, %66 : vector<8x8xf32>
    %cst_33 = arith.constant 0.000000e+00 : f32
    %68 = vector.broadcast %cst_33 : f32 to vector<8x8xf32>
    %69 = arith.cmpf oeq, %9, %68 : vector<8x8xf32>
    %cst_34 = arith.constant -1.000000e+09 : f32
    %70 = vector.broadcast %cst_34 : f32 to vector<8x8xf32>
    %71 = arith.select %69, %70, %67 : vector<8x8xi1>, vector<8x8xf32>
    %cst_35 = arith.constant dense<0xFF800000> : vector<8xf32>
    %72 = vector.multi_reduction <maximumf>, %71, %cst_35 [1] : vector<8x8xf32> to vector<8xf32>
    %73 = vector.shape_cast %72 : vector<8xf32> to vector<8x1xf32>
    %74 = vector.broadcast %73 : vector<8x1xf32> to vector<8x8xf32>
    %75 = arith.subf %71, %74 : vector<8x8xf32>
    %76 = math.exp %75 : vector<8x8xf32>
    %cst_36 = arith.constant dense<0.000000e+00> : vector<8xf32>
    %77 = vector.multi_reduction <add>, %76, %cst_36 [1] : vector<8x8xf32> to vector<8xf32>
    %78 = vector.shape_cast %77 : vector<8xf32> to vector<8x1xf32>
    %79 = tpu.reciprocal %78 {approx = true} : vector<8x1xf32> -> vector<8x1xf32>
    %80 = vector.broadcast %79 : vector<8x1xf32> to vector<8x8xf32>
    %81 = arith.mulf %76, %80 : vector<8x8xf32>
    %cst_37 = arith.constant dense<0.000000e+00> : vector<8x8xf32>
    %82 = tpu.matmul %81, %64, %cst_37 {dimension_numbers = #tpu.dot_dimension_numbers<[1], [0], [0], [1], [0, 0, 1, 1], [], []>} : vector<8x8xf32>, vector<8x8xf32>, vector<8x8xf32> -> vector<8x8xf32>
    %83 = vector.extract_strided_slice %6 {offsets = [8, 0], sizes = [8, 32], strides = [1, 1]} : vector<32x32xf32> to vector<8x32xf32>
    %cst_38 = arith.constant dense<0.000000e+00> : vector<8x32xf32>
    %84 = tpu.matmul %82, %83, %cst_38 {dimension_numbers = #tpu.dot_dimension_numbers<[1], [0], [0], [1], [0, 0, 1, 1], [], []>} : vector<8x8xf32>, vector<8x32xf32>, vector<8x32xf32> -> vector<8x32xf32>
    %85 = arith.addf %61, %84 : vector<8x32xf32>
    %86 = vector.extract_strided_slice %34 {offsets = [0, 16], sizes = [8, 8], strides = [1, 1]} : vector<8x32xf32> to vector<8x8xf32>
    %87 = vector.extract_strided_slice %35 {offsets = [0, 16], sizes = [8, 8], strides = [1, 1]} : vector<8x32xf32> to vector<8x8xf32>
    %88 = vector.extract_strided_slice %36 {offsets = [0, 16], sizes = [8, 8], strides = [1, 1]} : vector<8x32xf32> to vector<8x8xf32>
    %cst_39 = arith.constant dense<0.000000e+00> : vector<8x8xf32>
    %89 = tpu.matmul %86, %87, %cst_39 {dimension_numbers = #tpu.dot_dimension_numbers<[1], [1], [0], [0], [0, 0, 1, 0], [], []>} : vector<8x8xf32>, vector<8x8xf32>, vector<8x8xf32> -> vector<8x8xf32>
    %cst_40 = arith.constant 0.353553385 : f32
    %90 = vector.broadcast %cst_40 : f32 to vector<8x8xf32>
    %91 = arith.mulf %89, %90 : vector<8x8xf32>
    %cst_41 = arith.constant 0.000000e+00 : f32
    %92 = vector.broadcast %cst_41 : f32 to vector<8x8xf32>
    %93 = arith.cmpf oeq, %9, %92 : vector<8x8xf32>
    %cst_42 = arith.constant -1.000000e+09 : f32
    %94 = vector.broadcast %cst_42 : f32 to vector<8x8xf32>
    %95 = arith.select %93, %94, %91 : vector<8x8xi1>, vector<8x8xf32>
    %cst_43 = arith.constant dense<0xFF800000> : vector<8xf32>
    %96 = vector.multi_reduction <maximumf>, %95, %cst_43 [1] : vector<8x8xf32> to vector<8xf32>
    %97 = vector.shape_cast %96 : vector<8xf32> to vector<8x1xf32>
    %98 = vector.broadcast %97 : vector<8x1xf32> to vector<8x8xf32>
    %99 = arith.subf %95, %98 : vector<8x8xf32>
    %100 = math.exp %99 : vector<8x8xf32>
    %cst_44 = arith.constant dense<0.000000e+00> : vector<8xf32>
    %101 = vector.multi_reduction <add>, %100, %cst_44 [1] : vector<8x8xf32> to vector<8xf32>
    %102 = vector.shape_cast %101 : vector<8xf32> to vector<8x1xf32>
    %103 = tpu.reciprocal %102 {approx = true} : vector<8x1xf32> -> vector<8x1xf32>
    %104 = vector.broadcast %103 : vector<8x1xf32> to vector<8x8xf32>
    %105 = arith.mulf %100, %104 : vector<8x8xf32>
    %cst_45 = arith.constant dense<0.000000e+00> : vector<8x8xf32>
    %106 = tpu.matmul %105, %88, %cst_45 {dimension_numbers = #tpu.dot_dimension_numbers<[1], [0], [0], [1], [0, 0, 1, 1], [], []>} : vector<8x8xf32>, vector<8x8xf32>, vector<8x8xf32> -> vector<8x8xf32>
    %107 = vector.extract_strided_slice %6 {offsets = [16, 0], sizes = [8, 32], strides = [1, 1]} : vector<32x32xf32> to vector<8x32xf32>
    %cst_46 = arith.constant dense<0.000000e+00> : vector<8x32xf32>
    %108 = tpu.matmul %106, %107, %cst_46 {dimension_numbers = #tpu.dot_dimension_numbers<[1], [0], [0], [1], [0, 0, 1, 1], [], []>} : vector<8x8xf32>, vector<8x32xf32>, vector<8x32xf32> -> vector<8x32xf32>
    %109 = arith.addf %85, %108 : vector<8x32xf32>
    %110 = vector.extract_strided_slice %34 {offsets = [0, 24], sizes = [8, 8], strides = [1, 1]} : vector<8x32xf32> to vector<8x8xf32>
    %111 = vector.extract_strided_slice %35 {offsets = [0, 24], sizes = [8, 8], strides = [1, 1]} : vector<8x32xf32> to vector<8x8xf32>
    %112 = vector.extract_strided_slice %36 {offsets = [0, 24], sizes = [8, 8], strides = [1, 1]} : vector<8x32xf32> to vector<8x8xf32>
    %cst_47 = arith.constant dense<0.000000e+00> : vector<8x8xf32>
    %113 = tpu.matmul %110, %111, %cst_47 {dimension_numbers = #tpu.dot_dimension_numbers<[1], [1], [0], [0], [0, 0, 1, 0], [], []>} : vector<8x8xf32>, vector<8x8xf32>, vector<8x8xf32> -> vector<8x8xf32>
    %cst_48 = arith.constant 0.353553385 : f32
    %114 = vector.broadcast %cst_48 : f32 to vector<8x8xf32>
    %115 = arith.mulf %113, %114 : vector<8x8xf32>
    %cst_49 = arith.constant 0.000000e+00 : f32
    %116 = vector.broadcast %cst_49 : f32 to vector<8x8xf32>
    %117 = arith.cmpf oeq, %9, %116 : vector<8x8xf32>
    %cst_50 = arith.constant -1.000000e+09 : f32
    %118 = vector.broadcast %cst_50 : f32 to vector<8x8xf32>
    %119 = arith.select %117, %118, %115 : vector<8x8xi1>, vector<8x8xf32>
    %cst_51 = arith.constant dense<0xFF800000> : vector<8xf32>
    %120 = vector.multi_reduction <maximumf>, %119, %cst_51 [1] : vector<8x8xf32> to vector<8xf32>
    %121 = vector.shape_cast %120 : vector<8xf32> to vector<8x1xf32>
    %122 = vector.broadcast %121 : vector<8x1xf32> to vector<8x8xf32>
    %123 = arith.subf %119, %122 : vector<8x8xf32>
    %124 = math.exp %123 : vector<8x8xf32>
    %cst_52 = arith.constant dense<0.000000e+00> : vector<8xf32>
    %125 = vector.multi_reduction <add>, %124, %cst_52 [1] : vector<8x8xf32> to vector<8xf32>
    %126 = vector.shape_cast %125 : vector<8xf32> to vector<8x1xf32>
    %127 = tpu.reciprocal %126 {approx = true} : vector<8x1xf32> -> vector<8x1xf32>
    %128 = vector.broadcast %127 : vector<8x1xf32> to vector<8x8xf32>
    %129 = arith.mulf %124, %128 : vector<8x8xf32>
    %cst_53 = arith.constant dense<0.000000e+00> : vector<8x8xf32>
    %130 = tpu.matmul %129, %112, %cst_53 {dimension_numbers = #tpu.dot_dimension_numbers<[1], [0], [0], [1], [0, 0, 1, 1], [], []>} : vector<8x8xf32>, vector<8x8xf32>, vector<8x8xf32> -> vector<8x8xf32>
    %131 = vector.extract_strided_slice %6 {offsets = [24, 0], sizes = [8, 32], strides = [1, 1]} : vector<32x32xf32> to vector<8x32xf32>
    %cst_54 = arith.constant dense<0.000000e+00> : vector<8x32xf32>
    %132 = tpu.matmul %130, %131, %cst_54 {dimension_numbers = #tpu.dot_dimension_numbers<[1], [0], [0], [1], [0, 0, 1, 1], [], []>} : vector<8x8xf32>, vector<8x32xf32>, vector<8x32xf32> -> vector<8x32xf32>
    %133 = arith.addf %109, %132 : vector<8x32xf32>
    %134 = vector.broadcast %7 : vector<1x32xf32> to vector<8x32xf32>
    %135 = arith.addf %133, %134 : vector<8x32xf32>
    %136 = arith.addf %1, %135 : vector<8x32xf32>
    %c0_55 = arith.constant 0 : index
    %c0_56 = arith.constant 0 : index
    %c0_57 = arith.constant 0 : index
    %137 = vector.load %arg9[%c0_55, %c0_56, %c0_57] : memref<1x8x32xf32, #tpu.memory_space<vmem>>, vector<1x8x32xf32>
    %138 = vector.shape_cast %137 : vector<1x8x32xf32> to vector<8x32xf32>
    %139 = vector.shape_cast %136 : vector<8x32xf32> to vector<1x8x32xf32>
    tpu.vector_store %arg9[%c0_55, %c0_56, %c0_57], %139 {strides = array<i32>} : memref<1x8x32xf32, #tpu.memory_space<vmem>>, vector<1x8x32xf32>,
    return
  }
  func.func @transform_0(%arg0: i32) -> (i32, i32, i32) {
    %c0_i32 = arith.constant 0 : i32
    %c0_i32_0 = arith.constant 0 : i32
    %c0_i32_1 = arith.constant 0 : i32
    return %arg0, %c0_i32, %c0_i32_0 : i32, i32, i32
  }
  func.func @transform_1(%arg0: i32) -> (i32, i32) {
    %c0_i32 = arith.constant 0 : i32
    %c0_i32_0 = arith.constant 0 : i32
    %c0_i32_1 = arith.constant 0 : i32
    return %c0_i32, %c0_i32_0 : i32, i32
  }
  func.func @transform_2(%arg0: i32) -> (i32, i32) {
    %c0_i32 = arith.constant 0 : i32
    %c0_i32_0 = arith.constant 0 : i32
    %c0_i32_1 = arith.constant 0 : i32
    return %c0_i32, %c0_i32_0 : i32, i32
  }
  func.func @transform_3(%arg0: i32) -> (i32, i32) {
    %c0_i32 = arith.constant 0 : i32
    %c0_i32_0 = arith.constant 0 : i32
    %c0_i32_1 = arith.constant 0 : i32
    return %c0_i32, %c0_i32_0 : i32, i32
  }
  func.func @transform_4(%arg0: i32) -> (i32, i32) {
    %c0_i32 = arith.constant 0 : i32
    %c0_i32_0 = arith.constant 0 : i32
    %c0_i32_1 = arith.constant 0 : i32
    return %c0_i32, %c0_i32_0 : i32, i32
  }
  func.func @transform_5(%arg0: i32) -> (i32, i32) {
    %c0_i32 = arith.constant 0 : i32
    %c0_i32_0 = arith.constant 0 : i32
    %c0_i32_1 = arith.constant 0 : i32
    return %c0_i32, %c0_i32_0 : i32, i32
  }
  func.func @transform_6(%arg0: i32) -> (i32, i32) {
    %c0_i32 = arith.constant 0 : i32
    %c0_i32_0 = arith.constant 0 : i32
    %c0_i32_1 = arith.constant 0 : i32
    return %c0_i32, %c0_i32_0 : i32, i32
  }
  func.func @transform_7(%arg0: i32) -> (i32, i32, i32) {
    %c0_i32 = arith.constant 0 : i32
    %c0_i32_0 = arith.constant 0 : i32
    %c0_i32_1 = arith.constant 0 : i32
    return %arg0, %c0_i32, %c0_i32_0 : i32, i32, i32
  }
  func.func @transform_8(%arg0: i32) -> (i32, i32, i32) {
    %c0_i32 = arith.constant 0 : i32
    %c0_i32_0 = arith.constant 0 : i32
    %c0_i32_1 = arith.constant 0 : i32
    return %arg0, %c0_i32, %c0_i32_0 : i32, i32, i32
  }
}

module attributes {stable_mosaic.version = 11 : i64} {
  func.func @_cross_block_kernel(%arg0: i32, %arg1: memref<1x8x32xf32, #tpu.memory_space<vmem>>, %arg2: memref<1x8x32xf32, #tpu.memory_space<vmem>>, %arg3: memref<1x32xf32, #tpu.memory_space<vmem>>, %arg4: memref<1x32xf32, #tpu.memory_space<vmem>>, %arg5: memref<32x32xf32, #tpu.memory_space<vmem>>, %arg6: memref<1x32xf32, #tpu.memory_space<vmem>>, %arg7: memref<32x64xf32, #tpu.memory_space<vmem>>, %arg8: memref<1x64xf32, #tpu.memory_space<vmem>>, %arg9: memref<32x32xf32, #tpu.memory_space<vmem>>, %arg10: memref<1x32xf32, #tpu.memory_space<vmem>>, %arg11: memref<1x1x8xf32, #tpu.memory_space<vmem>>, %arg12: memref<1x8x32xf32, #tpu.memory_space<vmem>>) attributes {dimension_semantics = [#tpu.dimension_semantics<parallel>], iteration_bounds = array<i64: 2>, scalar_prefetch = 0 : i64, scratch_operands = 0 : i64, tpu.core_type = #tpu.core_type<tc>, window_params = [{transform_indices = @transform_0, window_bounds = array<i64: 1, 8, 32>}, {transform_indices = @transform_1, window_bounds = array<i64: 1, 8, 32>}, {pipeline_mode = #tpu.pipeline_mode<synchronous>, transform_indices = @transform_2, window_bounds = array<i64: 1, 32>}, {pipeline_mode = #tpu.pipeline_mode<synchronous>, transform_indices = @transform_3, window_bounds = array<i64: 1, 32>}, {pipeline_mode = #tpu.pipeline_mode<synchronous>, transform_indices = @transform_4, window_bounds = array<i64: 32, 32>}, {pipeline_mode = #tpu.pipeline_mode<synchronous>, transform_indices = @transform_5, window_bounds = array<i64: 1, 32>}, {pipeline_mode = #tpu.pipeline_mode<synchronous>, transform_indices = @transform_6, window_bounds = array<i64: 32, 64>}, {pipeline_mode = #tpu.pipeline_mode<synchronous>, transform_indices = @transform_7, window_bounds = array<i64: 1, 64>}, {pipeline_mode = #tpu.pipeline_mode<synchronous>, transform_indices = @transform_8, window_bounds = array<i64: 32, 32>}, {pipeline_mode = #tpu.pipeline_mode<synchronous>, transform_indices = @transform_9, window_bounds = array<i64: 1, 32>}, {transform_indices = @transform_10, window_bounds = array<i64: 1, 1, 8>}, {transform_indices = @transform_11, window_bounds = array<i64: 1, 8, 32>}]} {
    %c0 = arith.constant 0 : index
    %c0_0 = arith.constant 0 : index
    %c0_1 = arith.constant 0 : index
    %0 = vector.load %arg1[%c0, %c0_0, %c0_1] : memref<1x8x32xf32, #tpu.memory_space<vmem>>, vector<1x8x32xf32>
    %1 = vector.shape_cast %0 : vector<1x8x32xf32> to vector<8x32xf32>
    %c0_2 = arith.constant 0 : index
    %c0_3 = arith.constant 0 : index
    %2 = vector.load %arg3[%c0_2, %c0_3] : memref<1x32xf32, #tpu.memory_space<vmem>>, vector<1x32xf32>
    %c0_4 = arith.constant 0 : index
    %c0_5 = arith.constant 0 : index
    %3 = vector.load %arg4[%c0_4, %c0_5] : memref<1x32xf32, #tpu.memory_space<vmem>>, vector<1x32xf32>
    %cst = arith.constant dense<0.000000e+00> : vector<8xf32>
    %4 = vector.multi_reduction <add>, %1, %cst [1] : vector<8x32xf32> to vector<8xf32>
    %5 = vector.shape_cast %4 : vector<8xf32> to vector<8x1xf32>
    %cst_6 = arith.constant 3.200000e+01 : f32
    %6 = vector.broadcast %cst_6 : f32 to vector<8x1xf32>
    %7 = arith.divf %5, %6 : vector<8x1xf32>
    %8 = vector.broadcast %7 : vector<8x1xf32> to vector<8x32xf32>
    %9 = arith.subf %1, %8 : vector<8x32xf32>
    %10 = arith.mulf %9, %9 : vector<8x32xf32>
    %cst_7 = arith.constant dense<0.000000e+00> : vector<8xf32>
    %11 = vector.multi_reduction <add>, %10, %cst_7 [1] : vector<8x32xf32> to vector<8xf32>
    %12 = vector.shape_cast %11 : vector<8xf32> to vector<8x1xf32>
    %cst_8 = arith.constant 0.0322580636 : f32
    %13 = vector.broadcast %cst_8 : f32 to vector<8x1xf32>
    %14 = arith.mulf %12, %13 : vector<8x1xf32>
    %15 = math.sqrt %14 : vector<8x1xf32>
    %cst_9 = arith.constant 9.99999997E-7 : f32
    %16 = vector.broadcast %cst_9 : f32 to vector<8x1xf32>
    %17 = arith.addf %15, %16 : vector<8x1xf32>
    %18 = tpu.reciprocal %17 {approx = true} : vector<8x1xf32> -> vector<8x1xf32>
    %19 = vector.broadcast %18 : vector<8x1xf32> to vector<8x32xf32>
    %20 = arith.mulf %9, %19 : vector<8x32xf32>
    %21 = vector.broadcast %2 : vector<1x32xf32> to vector<8x32xf32>
    %22 = arith.mulf %21, %20 : vector<8x32xf32>
    %23 = vector.broadcast %3 : vector<1x32xf32> to vector<8x32xf32>
    %24 = arith.addf %22, %23 : vector<8x32xf32>
    %c0_10 = arith.constant 0 : index
    %c0_11 = arith.constant 0 : index
    %25 = vector.load %arg5[%c0_10, %c0_11] : memref<32x32xf32, #tpu.memory_space<vmem>>, vector<32x32xf32>
    %cst_12 = arith.constant dense<0.000000e+00> : vector<8x32xf32>
    %26 = tpu.matmul %24, %25, %cst_12 {dimension_numbers = #tpu.dot_dimension_numbers<[1], [0], [0], [1], [0, 0, 1, 1], [], []>} : vector<8x32xf32>, vector<32x32xf32>, vector<8x32xf32> -> vector<8x32xf32>
    %c0_13 = arith.constant 0 : index
    %c0_14 = arith.constant 0 : index
    %27 = vector.load %arg6[%c0_13, %c0_14] : memref<1x32xf32, #tpu.memory_space<vmem>>, vector<1x32xf32>
    %28 = vector.broadcast %27 : vector<1x32xf32> to vector<8x32xf32>
    %29 = arith.addf %26, %28 : vector<8x32xf32>
    %c0_15 = arith.constant 0 : index
    %c0_16 = arith.constant 0 : index
    %c0_17 = arith.constant 0 : index
    %30 = vector.load %arg2[%c0_15, %c0_16, %c0_17] : memref<1x8x32xf32, #tpu.memory_space<vmem>>, vector<1x8x32xf32>
    %31 = vector.shape_cast %30 : vector<1x8x32xf32> to vector<8x32xf32>
    %c0_18 = arith.constant 0 : index
    %c0_19 = arith.constant 0 : index
    %32 = vector.load %arg7[%c0_18, %c0_19] : memref<32x64xf32, #tpu.memory_space<vmem>>, vector<32x64xf32>
    %cst_20 = arith.constant dense<0.000000e+00> : vector<8x64xf32>
    %33 = tpu.matmul %31, %32, %cst_20 {dimension_numbers = #tpu.dot_dimension_numbers<[1], [0], [0], [1], [0, 0, 1, 1], [], []>} : vector<8x32xf32>, vector<32x64xf32>, vector<8x64xf32> -> vector<8x64xf32>
    %c0_21 = arith.constant 0 : index
    %c0_22 = arith.constant 0 : index
    %34 = vector.load %arg8[%c0_21, %c0_22] : memref<1x64xf32, #tpu.memory_space<vmem>>, vector<1x64xf32>
    %35 = vector.broadcast %34 : vector<1x64xf32> to vector<8x64xf32>
    %36 = arith.addf %33, %35 : vector<8x64xf32>
    %37 = vector.extract_strided_slice %36 {offsets = [0, 0], sizes = [8, 32], strides = [1, 1]} : vector<8x64xf32> to vector<8x32xf32>
    %38 = vector.extract_strided_slice %36 {offsets = [0, 32], sizes = [8, 32], strides = [1, 1]} : vector<8x64xf32> to vector<8x32xf32>
    %c0_23 = arith.constant 0 : index
    %c0_24 = arith.constant 0 : index
    %c0_25 = arith.constant 0 : index
    %39 = vector.load %arg11[%c0_23, %c0_24, %c0_25] : memref<1x1x8xf32, #tpu.memory_space<vmem>>, vector<1x1x8xf32>
    %40 = vector.shape_cast %39 : vector<1x1x8xf32> to vector<1x8xf32>
    %c0_26 = arith.constant 0 : index
    %c0_27 = arith.constant 0 : index
    %41 = vector.load %arg9[%c0_26, %c0_27] : memref<32x32xf32, #tpu.memory_space<vmem>>, vector<32x32xf32>
    %c0_28 = arith.constant 0 : index
    %c0_29 = arith.constant 0 : index
    %42 = vector.load %arg10[%c0_28, %c0_29] : memref<1x32xf32, #tpu.memory_space<vmem>>, vector<1x32xf32>
    %cst_30 = arith.constant 0.000000e+00 : f32
    %43 = vector.broadcast %cst_30 : f32 to vector<8x32xf32>
    %44 = vector.extract_strided_slice %29 {offsets = [0, 0], sizes = [8, 8], strides = [1, 1]} : vector<8x32xf32> to vector<8x8xf32>
    %45 = vector.extract_strided_slice %37 {offsets = [0, 0], sizes = [8, 8], strides = [1, 1]} : vector<8x32xf32> to vector<8x8xf32>
    %46 = vector.extract_strided_slice %38 {offsets = [0, 0], sizes = [8, 8], strides = [1, 1]} : vector<8x32xf32> to vector<8x8xf32>
    %cst_31 = arith.constant dense<0.000000e+00> : vector<8x8xf32>
    %47 = tpu.matmul %44, %45, %cst_31 {dimension_numbers = #tpu.dot_dimension_numbers<[1], [1], [0], [0], [0, 0, 1, 0], [], []>} : vector<8x8xf32>, vector<8x8xf32>, vector<8x8xf32> -> vector<8x8xf32>
    %cst_32 = arith.constant 0.353553385 : f32
    %48 = vector.broadcast %cst_32 : f32 to vector<8x8xf32>
    %49 = arith.mulf %47, %48 : vector<8x8xf32>
    %cst_33 = arith.constant 0.000000e+00 : f32
    %50 = vector.broadcast %cst_33 : f32 to vector<1x8xf32>
    %51 = arith.cmpf oeq, %40, %50 : vector<1x8xf32>
    %cst_34 = arith.constant -1.000000e+09 : f32
    %52 = vector.shape_cast %51 : vector<1x8xi1> to vector<1x8xi1>
    %53 = vector.broadcast %52 : vector<1x8xi1> to vector<8x8xi1>
    %54 = vector.broadcast %cst_34 : f32 to vector<8x8xf32>
    %55 = arith.select %53, %54, %49 : vector<8x8xi1>, vector<8x8xf32>
    %cst_35 = arith.constant dense<0xFF800000> : vector<8xf32>
    %56 = vector.multi_reduction <maximumf>, %55, %cst_35 [1] : vector<8x8xf32> to vector<8xf32>
    %57 = vector.shape_cast %56 : vector<8xf32> to vector<8x1xf32>
    %58 = vector.broadcast %57 : vector<8x1xf32> to vector<8x8xf32>
    %59 = arith.subf %55, %58 : vector<8x8xf32>
    %60 = math.exp %59 : vector<8x8xf32>
    %cst_36 = arith.constant dense<0.000000e+00> : vector<8xf32>
    %61 = vector.multi_reduction <add>, %60, %cst_36 [1] : vector<8x8xf32> to vector<8xf32>
    %62 = vector.shape_cast %61 : vector<8xf32> to vector<8x1xf32>
    %63 = tpu.reciprocal %62 {approx = true} : vector<8x1xf32> -> vector<8x1xf32>
    %64 = vector.broadcast %63 : vector<8x1xf32> to vector<8x8xf32>
    %65 = arith.mulf %60, %64 : vector<8x8xf32>
    %cst_37 = arith.constant dense<0.000000e+00> : vector<8x8xf32>
    %66 = tpu.matmul %65, %46, %cst_37 {dimension_numbers = #tpu.dot_dimension_numbers<[1], [0], [0], [1], [0, 0, 1, 1], [], []>} : vector<8x8xf32>, vector<8x8xf32>, vector<8x8xf32> -> vector<8x8xf32>
    %67 = vector.extract_strided_slice %41 {offsets = [0, 0], sizes = [8, 32], strides = [1, 1]} : vector<32x32xf32> to vector<8x32xf32>
    %cst_38 = arith.constant dense<0.000000e+00> : vector<8x32xf32>
    %68 = tpu.matmul %66, %67, %cst_38 {dimension_numbers = #tpu.dot_dimension_numbers<[1], [0], [0], [1], [0, 0, 1, 1], [], []>} : vector<8x8xf32>, vector<8x32xf32>, vector<8x32xf32> -> vector<8x32xf32>
    %69 = arith.addf %43, %68 : vector<8x32xf32>
    %70 = vector.extract_strided_slice %29 {offsets = [0, 8], sizes = [8, 8], strides = [1, 1]} : vector<8x32xf32> to vector<8x8xf32>
    %71 = vector.extract_strided_slice %37 {offsets = [0, 8], sizes = [8, 8], strides = [1, 1]} : vector<8x32xf32> to vector<8x8xf32>
    %72 = vector.extract_strided_slice %38 {offsets = [0, 8], sizes = [8, 8], strides = [1, 1]} : vector<8x32xf32> to vector<8x8xf32>
    %cst_39 = arith.constant dense<0.000000e+00> : vector<8x8xf32>
    %73 = tpu.matmul %70, %71, %cst_39 {dimension_numbers = #tpu.dot_dimension_numbers<[1], [1], [0], [0], [0, 0, 1, 0], [], []>} : vector<8x8xf32>, vector<8x8xf32>, vector<8x8xf32> -> vector<8x8xf32>
    %cst_40 = arith.constant 0.353553385 : f32
    %74 = vector.broadcast %cst_40 : f32 to vector<8x8xf32>
    %75 = arith.mulf %73, %74 : vector<8x8xf32>
    %cst_41 = arith.constant 0.000000e+00 : f32
    %76 = vector.broadcast %cst_41 : f32 to vector<1x8xf32>
    %77 = arith.cmpf oeq, %40, %76 : vector<1x8xf32>
    %cst_42 = arith.constant -1.000000e+09 : f32
    %78 = vector.shape_cast %77 : vector<1x8xi1> to vector<1x8xi1>
    %79 = vector.broadcast %78 : vector<1x8xi1> to vector<8x8xi1>
    %80 = vector.broadcast %cst_42 : f32 to vector<8x8xf32>
    %81 = arith.select %79, %80, %75 : vector<8x8xi1>, vector<8x8xf32>
    %cst_43 = arith.constant dense<0xFF800000> : vector<8xf32>
    %82 = vector.multi_reduction <maximumf>, %81, %cst_43 [1] : vector<8x8xf32> to vector<8xf32>
    %83 = vector.shape_cast %82 : vector<8xf32> to vector<8x1xf32>
    %84 = vector.broadcast %83 : vector<8x1xf32> to vector<8x8xf32>
    %85 = arith.subf %81, %84 : vector<8x8xf32>
    %86 = math.exp %85 : vector<8x8xf32>
    %cst_44 = arith.constant dense<0.000000e+00> : vector<8xf32>
    %87 = vector.multi_reduction <add>, %86, %cst_44 [1] : vector<8x8xf32> to vector<8xf32>
    %88 = vector.shape_cast %87 : vector<8xf32> to vector<8x1xf32>
    %89 = tpu.reciprocal %88 {approx = true} : vector<8x1xf32> -> vector<8x1xf32>
    %90 = vector.broadcast %89 : vector<8x1xf32> to vector<8x8xf32>
    %91 = arith.mulf %86, %90 : vector<8x8xf32>
    %cst_45 = arith.constant dense<0.000000e+00> : vector<8x8xf32>
    %92 = tpu.matmul %91, %72, %cst_45 {dimension_numbers = #tpu.dot_dimension_numbers<[1], [0], [0], [1], [0, 0, 1, 1], [], []>} : vector<8x8xf32>, vector<8x8xf32>, vector<8x8xf32> -> vector<8x8xf32>
    %93 = vector.extract_strided_slice %41 {offsets = [8, 0], sizes = [8, 32], strides = [1, 1]} : vector<32x32xf32> to vector<8x32xf32>
    %cst_46 = arith.constant dense<0.000000e+00> : vector<8x32xf32>
    %94 = tpu.matmul %92, %93, %cst_46 {dimension_numbers = #tpu.dot_dimension_numbers<[1], [0], [0], [1], [0, 0, 1, 1], [], []>} : vector<8x8xf32>, vector<8x32xf32>, vector<8x32xf32> -> vector<8x32xf32>
    %95 = arith.addf %69, %94 : vector<8x32xf32>
    %96 = vector.extract_strided_slice %29 {offsets = [0, 16], sizes = [8, 8], strides = [1, 1]} : vector<8x32xf32> to vector<8x8xf32>
    %97 = vector.extract_strided_slice %37 {offsets = [0, 16], sizes = [8, 8], strides = [1, 1]} : vector<8x32xf32> to vector<8x8xf32>
    %98 = vector.extract_strided_slice %38 {offsets = [0, 16], sizes = [8, 8], strides = [1, 1]} : vector<8x32xf32> to vector<8x8xf32>
    %cst_47 = arith.constant dense<0.000000e+00> : vector<8x8xf32>
    %99 = tpu.matmul %96, %97, %cst_47 {dimension_numbers = #tpu.dot_dimension_numbers<[1], [1], [0], [0], [0, 0, 1, 0], [], []>} : vector<8x8xf32>, vector<8x8xf32>, vector<8x8xf32> -> vector<8x8xf32>
    %cst_48 = arith.constant 0.353553385 : f32
    %100 = vector.broadcast %cst_48 : f32 to vector<8x8xf32>
    %101 = arith.mulf %99, %100 : vector<8x8xf32>
    %cst_49 = arith.constant 0.000000e+00 : f32
    %102 = vector.broadcast %cst_49 : f32 to vector<1x8xf32>
    %103 = arith.cmpf oeq, %40, %102 : vector<1x8xf32>
    %cst_50 = arith.constant -1.000000e+09 : f32
    %104 = vector.shape_cast %103 : vector<1x8xi1> to vector<1x8xi1>
    %105 = vector.broadcast %104 : vector<1x8xi1> to vector<8x8xi1>
    %106 = vector.broadcast %cst_50 : f32 to vector<8x8xf32>
    %107 = arith.select %105, %106, %101 : vector<8x8xi1>, vector<8x8xf32>
    %cst_51 = arith.constant dense<0xFF800000> : vector<8xf32>
    %108 = vector.multi_reduction <maximumf>, %107, %cst_51 [1] : vector<8x8xf32> to vector<8xf32>
    %109 = vector.shape_cast %108 : vector<8xf32> to vector<8x1xf32>
    %110 = vector.broadcast %109 : vector<8x1xf32> to vector<8x8xf32>
    %111 = arith.subf %107, %110 : vector<8x8xf32>
    %112 = math.exp %111 : vector<8x8xf32>
    %cst_52 = arith.constant dense<0.000000e+00> : vector<8xf32>
    %113 = vector.multi_reduction <add>, %112, %cst_52 [1] : vector<8x8xf32> to vector<8xf32>
    %114 = vector.shape_cast %113 : vector<8xf32> to vector<8x1xf32>
    %115 = tpu.reciprocal %114 {approx = true} : vector<8x1xf32> -> vector<8x1xf32>
    %116 = vector.broadcast %115 : vector<8x1xf32> to vector<8x8xf32>
    %117 = arith.mulf %112, %116 : vector<8x8xf32>
    %cst_53 = arith.constant dense<0.000000e+00> : vector<8x8xf32>
    %118 = tpu.matmul %117, %98, %cst_53 {dimension_numbers = #tpu.dot_dimension_numbers<[1], [0], [0], [1], [0, 0, 1, 1], [], []>} : vector<8x8xf32>, vector<8x8xf32>, vector<8x8xf32> -> vector<8x8xf32>
    %119 = vector.extract_strided_slice %41 {offsets = [16, 0], sizes = [8, 32], strides = [1, 1]} : vector<32x32xf32> to vector<8x32xf32>
    %cst_54 = arith.constant dense<0.000000e+00> : vector<8x32xf32>
    %120 = tpu.matmul %118, %119, %cst_54 {dimension_numbers = #tpu.dot_dimension_numbers<[1], [0], [0], [1], [0, 0, 1, 1], [], []>} : vector<8x8xf32>, vector<8x32xf32>, vector<8x32xf32> -> vector<8x32xf32>
    %121 = arith.addf %95, %120 : vector<8x32xf32>
    %122 = vector.extract_strided_slice %29 {offsets = [0, 24], sizes = [8, 8], strides = [1, 1]} : vector<8x32xf32> to vector<8x8xf32>
    %123 = vector.extract_strided_slice %37 {offsets = [0, 24], sizes = [8, 8], strides = [1, 1]} : vector<8x32xf32> to vector<8x8xf32>
    %124 = vector.extract_strided_slice %38 {offsets = [0, 24], sizes = [8, 8], strides = [1, 1]} : vector<8x32xf32> to vector<8x8xf32>
    %cst_55 = arith.constant dense<0.000000e+00> : vector<8x8xf32>
    %125 = tpu.matmul %122, %123, %cst_55 {dimension_numbers = #tpu.dot_dimension_numbers<[1], [1], [0], [0], [0, 0, 1, 0], [], []>} : vector<8x8xf32>, vector<8x8xf32>, vector<8x8xf32> -> vector<8x8xf32>
    %cst_56 = arith.constant 0.353553385 : f32
    %126 = vector.broadcast %cst_56 : f32 to vector<8x8xf32>
    %127 = arith.mulf %125, %126 : vector<8x8xf32>
    %cst_57 = arith.constant 0.000000e+00 : f32
    %128 = vector.broadcast %cst_57 : f32 to vector<1x8xf32>
    %129 = arith.cmpf oeq, %40, %128 : vector<1x8xf32>
    %cst_58 = arith.constant -1.000000e+09 : f32
    %130 = vector.shape_cast %129 : vector<1x8xi1> to vector<1x8xi1>
    %131 = vector.broadcast %130 : vector<1x8xi1> to vector<8x8xi1>
    %132 = vector.broadcast %cst_58 : f32 to vector<8x8xf32>
    %133 = arith.select %131, %132, %127 : vector<8x8xi1>, vector<8x8xf32>
    %cst_59 = arith.constant dense<0xFF800000> : vector<8xf32>
    %134 = vector.multi_reduction <maximumf>, %133, %cst_59 [1] : vector<8x8xf32> to vector<8xf32>
    %135 = vector.shape_cast %134 : vector<8xf32> to vector<8x1xf32>
    %136 = vector.broadcast %135 : vector<8x1xf32> to vector<8x8xf32>
    %137 = arith.subf %133, %136 : vector<8x8xf32>
    %138 = math.exp %137 : vector<8x8xf32>
    %cst_60 = arith.constant dense<0.000000e+00> : vector<8xf32>
    %139 = vector.multi_reduction <add>, %138, %cst_60 [1] : vector<8x8xf32> to vector<8xf32>
    %140 = vector.shape_cast %139 : vector<8xf32> to vector<8x1xf32>
    %141 = tpu.reciprocal %140 {approx = true} : vector<8x1xf32> -> vector<8x1xf32>
    %142 = vector.broadcast %141 : vector<8x1xf32> to vector<8x8xf32>
    %143 = arith.mulf %138, %142 : vector<8x8xf32>
    %cst_61 = arith.constant dense<0.000000e+00> : vector<8x8xf32>
    %144 = tpu.matmul %143, %124, %cst_61 {dimension_numbers = #tpu.dot_dimension_numbers<[1], [0], [0], [1], [0, 0, 1, 1], [], []>} : vector<8x8xf32>, vector<8x8xf32>, vector<8x8xf32> -> vector<8x8xf32>
    %145 = vector.extract_strided_slice %41 {offsets = [24, 0], sizes = [8, 32], strides = [1, 1]} : vector<32x32xf32> to vector<8x32xf32>
    %cst_62 = arith.constant dense<0.000000e+00> : vector<8x32xf32>
    %146 = tpu.matmul %144, %145, %cst_62 {dimension_numbers = #tpu.dot_dimension_numbers<[1], [0], [0], [1], [0, 0, 1, 1], [], []>} : vector<8x8xf32>, vector<8x32xf32>, vector<8x32xf32> -> vector<8x32xf32>
    %147 = arith.addf %121, %146 : vector<8x32xf32>
    %148 = vector.broadcast %42 : vector<1x32xf32> to vector<8x32xf32>
    %149 = arith.addf %147, %148 : vector<8x32xf32>
    %150 = arith.addf %1, %149 : vector<8x32xf32>
    %c0_63 = arith.constant 0 : index
    %c0_64 = arith.constant 0 : index
    %c0_65 = arith.constant 0 : index
    %151 = vector.load %arg12[%c0_63, %c0_64, %c0_65] : memref<1x8x32xf32, #tpu.memory_space<vmem>>, vector<1x8x32xf32>
    %152 = vector.shape_cast %151 : vector<1x8x32xf32> to vector<8x32xf32>
    %153 = vector.shape_cast %150 : vector<8x32xf32> to vector<1x8x32xf32>
    tpu.vector_store %arg12[%c0_63, %c0_64, %c0_65], %153 {strides = array<i32>} : memref<1x8x32xf32, #tpu.memory_space<vmem>>, vector<1x8x32xf32>,
    return
  }
  func.func @transform_0(%arg0: i32) -> (i32, i32, i32) {
    %c0_i32 = arith.constant 0 : i32
    %c0_i32_0 = arith.constant 0 : i32
    %c0_i32_1 = arith.constant 0 : i32
    return %arg0, %c0_i32, %c0_i32_0 : i32, i32, i32
  }
  func.func @transform_1(%arg0: i32) -> (i32, i32, i32) {
    %c0_i32 = arith.constant 0 : i32
    %c0_i32_0 = arith.constant 0 : i32
    %c0_i32_1 = arith.constant 0 : i32
    return %arg0, %c0_i32, %c0_i32_0 : i32, i32, i32
  }
  func.func @transform_2(%arg0: i32) -> (i32, i32) {
    %c0_i32 = arith.constant 0 : i32
    %c0_i32_0 = arith.constant 0 : i32
    %c0_i32_1 = arith.constant 0 : i32
    return %c0_i32, %c0_i32_0 : i32, i32
  }
  func.func @transform_3(%arg0: i32) -> (i32, i32) {
    %c0_i32 = arith.constant 0 : i32
    %c0_i32_0 = arith.constant 0 : i32
    %c0_i32_1 = arith.constant 0 : i32
    return %c0_i32, %c0_i32_0 : i32, i32
  }
  func.func @transform_4(%arg0: i32) -> (i32, i32) {
    %c0_i32 = arith.constant 0 : i32
    %c0_i32_0 = arith.constant 0 : i32
    %c0_i32_1 = arith.constant 0 : i32
    return %c0_i32, %c0_i32_0 : i32, i32
  }
  func.func @transform_5(%arg0: i32) -> (i32, i32) {
    %c0_i32 = arith.constant 0 : i32
    %c0_i32_0 = arith.constant 0 : i32
    %c0_i32_1 = arith.constant 0 : i32
    return %c0_i32, %c0_i32_0 : i32, i32
  }
  func.func @transform_6(%arg0: i32) -> (i32, i32) {
    %c0_i32 = arith.constant 0 : i32
    %c0_i32_0 = arith.constant 0 : i32
    %c0_i32_1 = arith.constant 0 : i32
    return %c0_i32, %c0_i32_0 : i32, i32
  }
  func.func @transform_7(%arg0: i32) -> (i32, i32) {
    %c0_i32 = arith.constant 0 : i32
    %c0_i32_0 = arith.constant 0 : i32
    %c0_i32_1 = arith.constant 0 : i32
    return %c0_i32, %c0_i32_0 : i32, i32
  }
  func.func @transform_8(%arg0: i32) -> (i32, i32) {
    %c0_i32 = arith.constant 0 : i32
    %c0_i32_0 = arith.constant 0 : i32
    %c0_i32_1 = arith.constant 0 : i32
    return %c0_i32, %c0_i32_0 : i32, i32
  }
  func.func @transform_9(%arg0: i32) -> (i32, i32) {
    %c0_i32 = arith.constant 0 : i32
    %c0_i32_0 = arith.constant 0 : i32
    %c0_i32_1 = arith.constant 0 : i32
    return %c0_i32, %c0_i32_0 : i32, i32
  }
  func.func @transform_10(%arg0: i32) -> (i32, i32, i32) {
    %c0_i32 = arith.constant 0 : i32
    %c0_i32_0 = arith.constant 0 : i32
    %c0_i32_1 = arith.constant 0 : i32
    return %arg0, %c0_i32, %c0_i32_0 : i32, i32, i32
  }
  func.func @transform_11(%arg0: i32) -> (i32, i32, i32) {
    %c0_i32 = arith.constant 0 : i32
    %c0_i32_0 = arith.constant 0 : i32
    %c0_i32_1 = arith.constant 0 : i32
    return %arg0, %c0_i32, %c0_i32_0 : i32, i32, i32
  }
}

module attributes {stable_mosaic.version = 11 : i64} {
  func.func @_final_kernel(%arg0: i32, %arg1: memref<8x32xf32, #tpu.memory_space<vmem>>, %arg2: memref<1x32xf32, #tpu.memory_space<vmem>>, %arg3: memref<1x32xf32, #tpu.memory_space<vmem>>, %arg4: memref<32x128xf32, #tpu.memory_space<vmem>>, %arg5: memref<1x128xf32, #tpu.memory_space<vmem>>, %arg6: memref<8x128xf32, #tpu.memory_space<vmem>>) attributes {dimension_semantics = [#tpu.dimension_semantics<parallel>], iteration_bounds = array<i64: 2>, scalar_prefetch = 0 : i64, scratch_operands = 0 : i64, tpu.core_type = #tpu.core_type<tc>, window_params = [{transform_indices = @transform_0, window_bounds = array<i64: 8, 32>}, {pipeline_mode = #tpu.pipeline_mode<synchronous>, transform_indices = @transform_1, window_bounds = array<i64: 1, 32>}, {pipeline_mode = #tpu.pipeline_mode<synchronous>, transform_indices = @transform_2, window_bounds = array<i64: 1, 32>}, {pipeline_mode = #tpu.pipeline_mode<synchronous>, transform_indices = @transform_3, window_bounds = array<i64: 32, 128>}, {pipeline_mode = #tpu.pipeline_mode<synchronous>, transform_indices = @transform_4, window_bounds = array<i64: 1, 128>}, {transform_indices = @transform_5, window_bounds = array<i64: 8, 128>}]} {
    %c0 = arith.constant 0 : index
    %c0_0 = arith.constant 0 : index
    %0 = vector.load %arg1[%c0, %c0_0] : memref<8x32xf32, #tpu.memory_space<vmem>>, vector<8x32xf32>
    %c0_1 = arith.constant 0 : index
    %c0_2 = arith.constant 0 : index
    %1 = vector.load %arg2[%c0_1, %c0_2] : memref<1x32xf32, #tpu.memory_space<vmem>>, vector<1x32xf32>
    %c0_3 = arith.constant 0 : index
    %c0_4 = arith.constant 0 : index
    %2 = vector.load %arg3[%c0_3, %c0_4] : memref<1x32xf32, #tpu.memory_space<vmem>>, vector<1x32xf32>
    %cst = arith.constant dense<0.000000e+00> : vector<8xf32>
    %3 = vector.multi_reduction <add>, %0, %cst [1] : vector<8x32xf32> to vector<8xf32>
    %4 = vector.shape_cast %3 : vector<8xf32> to vector<8x1xf32>
    %cst_5 = arith.constant 3.200000e+01 : f32
    %5 = vector.broadcast %cst_5 : f32 to vector<8x1xf32>
    %6 = arith.divf %4, %5 : vector<8x1xf32>
    %7 = vector.broadcast %6 : vector<8x1xf32> to vector<8x32xf32>
    %8 = arith.subf %0, %7 : vector<8x32xf32>
    %9 = arith.mulf %8, %8 : vector<8x32xf32>
    %cst_6 = arith.constant dense<0.000000e+00> : vector<8xf32>
    %10 = vector.multi_reduction <add>, %9, %cst_6 [1] : vector<8x32xf32> to vector<8xf32>
    %11 = vector.shape_cast %10 : vector<8xf32> to vector<8x1xf32>
    %cst_7 = arith.constant 0.0322580636 : f32
    %12 = vector.broadcast %cst_7 : f32 to vector<8x1xf32>
    %13 = arith.mulf %11, %12 : vector<8x1xf32>
    %14 = math.sqrt %13 : vector<8x1xf32>
    %cst_8 = arith.constant 9.99999997E-7 : f32
    %15 = vector.broadcast %cst_8 : f32 to vector<8x1xf32>
    %16 = arith.addf %14, %15 : vector<8x1xf32>
    %17 = tpu.reciprocal %16 {approx = true} : vector<8x1xf32> -> vector<8x1xf32>
    %18 = vector.broadcast %17 : vector<8x1xf32> to vector<8x32xf32>
    %19 = arith.mulf %8, %18 : vector<8x32xf32>
    %20 = vector.broadcast %1 : vector<1x32xf32> to vector<8x32xf32>
    %21 = arith.mulf %20, %19 : vector<8x32xf32>
    %22 = vector.broadcast %2 : vector<1x32xf32> to vector<8x32xf32>
    %23 = arith.addf %21, %22 : vector<8x32xf32>
    %c0_9 = arith.constant 0 : index
    %c0_10 = arith.constant 0 : index
    %24 = vector.load %arg4[%c0_9, %c0_10] : memref<32x128xf32, #tpu.memory_space<vmem>>, vector<32x128xf32>
    %cst_11 = arith.constant dense<0.000000e+00> : vector<8x128xf32>
    %25 = tpu.matmul %23, %24, %cst_11 {dimension_numbers = #tpu.dot_dimension_numbers<[1], [0], [0], [1], [0, 0, 1, 1], [], []>} : vector<8x32xf32>, vector<32x128xf32>, vector<8x128xf32> -> vector<8x128xf32>
    %c0_12 = arith.constant 0 : index
    %c0_13 = arith.constant 0 : index
    %26 = vector.load %arg5[%c0_12, %c0_13] : memref<1x128xf32, #tpu.memory_space<vmem>>, vector<1x128xf32>
    %27 = vector.broadcast %26 : vector<1x128xf32> to vector<8x128xf32>
    %28 = arith.addf %25, %27 : vector<8x128xf32>
    %c0_14 = arith.constant 0 : index
    %c0_15 = arith.constant 0 : index
    %29 = vector.load %arg6[%c0_14, %c0_15] : memref<8x128xf32, #tpu.memory_space<vmem>>, vector<8x128xf32>
    tpu.vector_store %arg6[%c0_14, %c0_15], %28 {strides = array<i32>} : memref<8x128xf32, #tpu.memory_space<vmem>>, vector<8x128xf32>,
    return
  }
  func.func @transform_0(%arg0: i32) -> (i32, i32) {
    %c0_i32 = arith.constant 0 : i32
    %c0_i32_0 = arith.constant 0 : i32
    return %arg0, %c0_i32 : i32, i32
  }
  func.func @transform_1(%arg0: i32) -> (i32, i32) {
    %c0_i32 = arith.constant 0 : i32
    %c0_i32_0 = arith.constant 0 : i32
    %c0_i32_1 = arith.constant 0 : i32
    return %c0_i32, %c0_i32_0 : i32, i32
  }
  func.func @transform_2(%arg0: i32) -> (i32, i32) {
    %c0_i32 = arith.constant 0 : i32
    %c0_i32_0 = arith.constant 0 : i32
    %c0_i32_1 = arith.constant 0 : i32
    return %c0_i32, %c0_i32_0 : i32, i32
  }
  func.func @transform_3(%arg0: i32) -> (i32, i32) {
    %c0_i32 = arith.constant 0 : i32
    %c0_i32_0 = arith.constant 0 : i32
    %c0_i32_1 = arith.constant 0 : i32
    return %c0_i32, %c0_i32_0 : i32, i32
  }
  func.func @transform_4(%arg0: i32) -> (i32, i32) {
    %c0_i32 = arith.constant 0 : i32
    %c0_i32_0 = arith.constant 0 : i32
    %c0_i32_1 = arith.constant 0 : i32
    return %c0_i32, %c0_i32_0 : i32, i32
  }
  func.func @transform_5(%arg0: i32) -> (i32, i32) {
    %c0_i32 = arith.constant 0 : i32
    %c0_i32_0 = arith.constant 0 : i32
    return %arg0, %c0_i32 : i32, i32
  }
}

</mosaic_0001>

<bundles_post_ra>
// kernel: _lambda_.16
= control target key start
LH: loop header
LB: loop body
LE: loop exit
PB: predicated region body
PF: predicated region fallthrough
CT: control target
= control target key end

     0   :  { %s310_s12 = smov 0   ;;  %s343_s0 = inlined_call_operand.vmem [shape: f32[16,32], index: 0, kind: input, shape index: {}]   ;;  %s344_s1 = inlined_call_operand.vmem [shape: f32[1,32], index: 1, kind: input, shape index: {}]   ;;  %s345_s2 = inlined_call_operand.vmem [shape: f32[1,32], index: 2, kind: input, shape index: {}]   ;;  %s346_s3 = inlined_call_operand.vmem [shape: f32[16,32], index: 3, kind: output, shape index: {}]  }
   0x1 LB: > { %s259_s13 = sadd.s32 4294967295, %s288_s12   ;;  %p263_p0 = scmp.ge.s32.totalorder %s288_s12, 1  ;;  %s288_s12 = sphi %s310_s12, %s13_s12  }
   0x2   : > { %p136_p1 = scmp.lt.s32.totalorder %s288_s12, 3 }
   0x4   : > { %p137_p2 = pnand %p263_p0, %p136_p1 }
   0x5   : > { %p158_p3 = scmp.lt.s32.totalorder (!%p137_p2), %s259_s13, 1 }
   0x6   : > { %140 = sbr.rel (%p137_p2) target bundleno = 342 (0x156), region = 32 }
   0xb   : > { %s348_s13 = smov (!%p158_p3, %s259_s13), 1  ;;  %vm169_vm0 = vcmask 261120   ;;  %v266_v16 = vld [vmem:[%s344_s1] ss:$0 sm:$0xff] }
   0xc   : > { %s264_s14 = sshll.u32 %s348_s13, 3  ;;  %v267_v18 = vld [vmem:[%s345_s2] ss:$0 sm:$0xff] }
   0xd   : > { %s161_s17 = scalar_lea.vmem %s343_s0, %s264_s14  ;;  %s165_s24 = scalar_lea.vmem %s346_s3, %s264_s14 }
   0xe   : > { %v166_v0 = vld [vmem:[%s161_s17] sm:$0xff] }
   0xf   : > { %v170_v1 = vsel %vm169_vm0, %v166_v0, 0.0 }
  0x10   : > { %171 = vadd.xlane.f32.xlu0 %v170_v1 }
  0x99   : > { %v172_v2 = vpop.xlane.xlu0 %171 }
  0x9a   : > { %v174_v3 = vmul.f32 0.03125, %v172_v2 }
  0x9c   : > { %v175_v4 = vsub.f32 %v166_v0, %v174_v3 }
  0x9e   : > { %v176_v5 = vmul.f32 %v175_v4, %v175_v4 }
  0xa0   : > { %v177_v6 = vsel %vm169_vm0, %v176_v5, 0.0 }
  0xa1   : > { %178 = vadd.xlane.f32.xlu0 %v177_v6 }
 0x12a   : > { %v179_v7 = vpop.xlane.xlu0 %178 }
 0x12b   : > { %v180_v8 = vmul.f32 0.032258064, %v179_v7 }
 0x12d   : > { %278 = vrsqrt.f32 %v180_v8  ;;  %vm183_vm1 = vcmp.eq.f32.partialorder %v180_v8, inf  ;;  %v186_v11 = vand.u32 2147483648, %v180_v8  ;;  %vm185_vm2 = vcmp.eq.f32.partialorder %v180_v8, 0.0 }
 0x13a   : > { %v279_v9 = vpop.eup %278 }
 0x13b   : > { %v182_v10 = vmul.f32 %v279_v9, %v180_v8 }
 0x13d   : > { %v184_v12 = vsel %vm183_vm1, %v180_v8, %v182_v10 }
 0x13e   : > { %v187_v13 = vsel %vm185_vm2, %v186_v11, %v184_v12 }
 0x13f   : > { %v188_v14 = vadd.f32 1e-06, %v187_v13 }
 0x141   : > { %280 = vrcp.f32 %v188_v14 }
 0x14e   : > { %v281_v15 = vpop.eup %280 }
 0x14f   : > { %v190_v17 = vmul.f32 %v281_v15, %v175_v4 }
 0x151   : > { %v197_v19 = vmul.f32 %v266_v16, %v190_v17 }
 0x153   : > { %v204_v20 = vadd.f32 %v267_v18, %v197_v19 }
 0x155   : > { %205 = vst.msk [vmem:[%s165_s24] sm:$0xff] %vm169_vm0, %v204_v20 }
 0x156 PF: > { %s13_s12 = sadd.s32 1, %s288_s12  }
 0x157   : > { %p10_p4 = scmp.ge.s32.totalorder %s13_s12, 4  }
 0x159   :  { %12 = sbr.rel (!%p10_p4) target bundleno = 1 (0x1), region = 62 }

// kernel: _lambda_.13
= control target key start
LH: loop header
LB: loop body
LE: loop exit
PB: predicated region body
PF: predicated region fallthrough
CT: control target
= control target key end

     0   :  { %s666_s24 = smov 0   ;;  %s747_s0 = inlined_call_operand.vmem [shape: f32[16,32], index: 0, kind: input, shape index: {}]   ;;  %s748_s1 = inlined_call_operand.vmem [shape: f32[1,32], index: 1, kind: input, shape index: {}]   ;;  %s749_s2 = inlined_call_operand.vmem [shape: f32[1,32], index: 2, kind: input, shape index: {}]   ;;  %s750_s3 = inlined_call_operand.vmem [shape: f32[32,64], index: 3, kind: input, shape index: {}]   ;;  %s751_s4 = inlined_call_operand.vmem [shape: f32[1,64], index: 4, kind: input, shape index: {}]   ;;  %s752_s5 = inlined_call_operand.vmem [shape: f32[64,32], index: 5, kind: input, shape index: {}]   ;;  %s753_s6 = inlined_call_operand.vmem [shape: f32[1,32], index: 6, kind: input, shape index: {}]   ;;  %s754_s7 = inlined_call_operand.vmem [shape: f32[16,32], index: 7, kind: output, shape index: {}]  }
   0x1 LB: > { %s543_s25 = sadd.s32 4294967295, %s622_s24   ;;  %p547_p0 = scmp.ge.s32.totalorder %s622_s24, 1  ;;  %s622_s24 = sphi %s666_s24, %s17_s24  }
   0x2   : > { %p236_p1 = scmp.lt.s32.totalorder %s622_s24, 3 }
   0x4   : > { %p237_p2 = pnand %p547_p0, %p236_p1 }
   0x5   : > { %p266_p3 = scmp.lt.s32.totalorder (!%p237_p2), %s543_s25, 1 }
   0x6   : > { %240 = sbr.rel (%p237_p2) target bundleno = 736 (0x2e0), region = 48 }
   0xb   : > { %s756_s25 = smov (!%p266_p3, %s543_s25), 1  ;;  %vm277_vm0 = vcmask 261120   ;;  %v316_v7 = vld [vmem:[%s750_s3 + $0x18] sm:$0xff]  ;;  %v624_v8 = vmov 0.0   ;;  %v315_v9 = vld [vmem:[%s750_s3 + $0x10] sm:$0xff]  ;;  %vm625_vm1 = vmmov 0  }
   0xc   : > { %s548_s26 = sshll.u32 %s756_s25, 3  ;;  %572 = vmatprep.subr.mxu0 %v624_v8  ;;  %580 = vmatprep.mubr.msk.f32.mxu0 %vm625_vm1, %v624_v8  ;;  %v314_v10 = vld [vmem:[%s750_s3 + $0x8] sm:$0xff]  ;;  %v313_v11 = vld [vmem:[%s750_s3] sm:$0xff]  ;;  %v405_v12 = vld [vmem:[%s752_s5 + $0x38] sm:$0xff]  ;;  %vm406_vm4 = vcmask 523264  }
   0xd   : > { %s269_s29 = scalar_lea.vmem %s747_s0, %s548_s26  ;;  %573 = vmatpush3.msra.mxu0 %v316_v7  ;;  %583 = vmatprep.subr.mxu1 %v624_v8  ;;  %v404_v13 = vld [vmem:[%s752_s5 + $0x30] sm:$0xff]  ;;  %v403_v14 = vld [vmem:[%s752_s5 + $0x28] sm:$0xff]  ;;  %v402_v15 = vld [vmem:[%s752_s5 + $0x20] sm:$0xff]  ;;  %s273_s21 = scalar_lea.vmem %s754_s7, %s548_s26 }
   0xe   : > { %v682_v0 = vld [vmem:[%s269_s29] sm:$0xff]  ;;  %574 = vmatprep.subr.mxu0 %v624_v8  ;;  %599 = vmatprep.mubr.msk.f32.mxu1 %vm625_vm1, %v624_v8  ;;  %v401_v16 = vld [vmem:[%s752_s5 + $0x18] sm:$0xff]  ;;  %v400_v31 = vld [vmem:[%s752_s5 + $0x10] sm:$0xff] }
   0xf   : > { %v278_v1 = vsel %vm277_vm0, %v682_v0, 0.0  ;;  %575 = vmatpush3.msra.mxu0 %v315_v9  ;;  %584 = vmatpush3.msra.mxu1 %v405_v12  ;;  %v550_v26 = vld [vmem:[%s748_s1] ss:$0 sm:$0xff]  ;;  %v399_v32 = vld [vmem:[%s752_s5 + $0x8] sm:$0xff] }
  0x10   : > { %279 = vadd.xlane.f32.xlu0 %v278_v1  ;;  %576 = vmatprep.subr.mxu0 %v624_v8  ;;  %v551_v28 = vld [vmem:[%s749_s2] ss:$0 sm:$0xff] }
  0x11   : > { %577 = vmatpush3.msra.mxu0 %v314_v10  ;;  %585 = vmatprep.subr.mxu1 %v624_v8  ;;  %v398_v33 = vld [vmem:[%s752_s5] sm:$0xff] }
  0x12   : > { %578 = vmatprep.subr.mxu0 %v624_v8  ;;  %586 = vmatpush3.msra.mxu1 %v404_v13  ;;  %v552_v34 = vld [vmem:[%s751_s4] ss:$0 sm:$0xff] }
  0x13   : > { %579 = vmatpush3.msra.mxu0 %v313_v11  ;;  %587 = vmatprep.subr.mxu1 %v624_v8  ;;  %v555_v40 = vld [vmem:[%s753_s6] ss:$0 sm:$0xff] }
  0x14   : > { %588 = vmatpush3.msra.mxu1 %v403_v14 }
  0x15   : > { %589 = vmatprep.subr.mxu1 %v624_v8 }
  0x16   : > { %590 = vmatpush3.msra.mxu1 %v402_v15 }
  0x17   : > { %591 = vmatprep.subr.mxu1 %v624_v8 }
  0x18   : > { %592 = vmatpush3.msra.mxu1 %v401_v16 }
  0x19   : > { %593 = vmatprep.subr.mxu1 %v624_v8 }
  0x1a   : > { %594 = vmatpush3.msra.mxu1 %v400_v31 }
  0x1b   : > { %595 = vmatprep.subr.mxu1 %v624_v8 }
  0x1c   : > { %596 = vmatpush3.msra.mxu1 %v399_v32 }
  0x1d   : > { %597 = vmatprep.subr.mxu1 %v624_v8 }
  0x1e   : > { %598 = vmatpush3.msra.mxu1 %v398_v33 }
  0x99   : > { %v280_v2 = vpop.xlane.xlu0 %279 }
  0x9a   : > { %v282_v3 = vmul.f32 0.03125, %v280_v2 }
  0x9c   : > { %v283_v4 = vsub.f32 %v682_v0, %v282_v3 }
  0x9e   : > { %v284_v5 = vmul.f32 %v283_v4, %v283_v4 }
  0xa0   : > { %v285_v6 = vsel %vm277_vm0, %v284_v5, 0.0 }
  0xa1   : > { %286 = vadd.xlane.f32.xlu0 %v285_v6 }
 0x12a   : > { %v287_v17 = vpop.xlane.xlu0 %286 }
 0x12b   : > { %v288_v18 = vmul.f32 0.032258064, %v287_v17 }
 0x12d   : > { %612 = vrsqrt.f32 %v288_v18  ;;  %vm291_vm2 = vcmp.eq.f32.partialorder %v288_v18, inf  ;;  %v294_v21 = vand.u32 2147483648, %v288_v18  ;;  %vm293_vm3 = vcmp.eq.f32.partialorder %v288_v18, 0.0 }
 0x13a   : > { %v613_v19 = vpop.eup %612 }
 0x13b   : > { %v290_v20 = vmul.f32 %v613_v19, %v288_v18 }
 0x13d   : > { %v292_v22 = vsel %vm291_vm2, %v288_v18, %v290_v20 }
 0x13e   : > { %v295_v23 = vsel %vm293_vm3, %v294_v21, %v292_v22 }
 0x13f   : > { %v296_v24 = vadd.f32 1e-06, %v295_v23 }
 0x141   : > { %614 = vrcp.f32 %v296_v24 }
 0x14e   : > { %v615_v25 = vpop.eup %614 }
 0x14f   : > { %v298_v27 = vmul.f32 %v615_v25, %v283_v4 }
 0x151   : > { %v305_v29 = vmul.f32 %v550_v26, %v298_v27 }
 0x153   : > { %v312_v30 = vadd.f32 %v551_v28, %v305_v29 }
 0x155   : > { %581 = vmatmul.mubr.msk.f32.vlgmr.msra.gmra.mxu0 %vm277_vm0, %v312_v30 }
 0x215   : > { %v393_v35 = vpop.f32.mrf.mxu0 }
 0x216   : > { %v394_v36 = vadd.f32 %v552_v34, %v393_v35 }
 0x217   : > { %v582_v37 = vpop.f32.mrf.mxu0 }
 0x218   : > { %v397_v38 = vmax.f32 %v394_v36, 0.0 }
 0x21a   : > { %600 = vmatmul.mubr.msk.f32.vlgmr.msra.gmra.mxu1 %vm406_vm4, %v397_v38 }
 0x2da   : > { %v476_v39 = vpop.f32.mrf.mxu1 }
 0x2db   : > { %v480_v41 = vadd.f32 %v476_v39, %v682_v0 }
 0x2dc   : > { %v601_v42 = vpop.f32.mrf.mxu1 }
 0x2dd   : > { %v488_v43 = vadd.f32 %v555_v40, %v480_v41 }
 0x2df   : > { %489 = vst.msk [vmem:[%s273_s21] sm:$0xff] %vm277_vm0, %v488_v43 }
 0x2e0 PF: > { %s17_s24 = sadd.s32 1, %s622_s24  }
 0x2e1   : > { %p14_p4 = scmp.ge.s32.totalorder %s17_s24, 4  }
 0x2e3   :  { %16 = sbr.rel (!%p14_p4) target bundleno = 1 (0x1), region = 78 }

// kernel: _lambda_.14
= control target key start
LH: loop header
LB: loop body
LE: loop exit
PB: predicated region body
PF: predicated region fallthrough
CT: control target
= control target key end

     0   :  { %s1723_s27 = smov 0   ;;  %s1887_s0 = inlined_call_operand.vmem [shape: f32[2,8,32], index: 0, kind: input, shape index: {}]   ;;  %s1888_s1 = inlined_call_operand.vmem [shape: f32[1,32], index: 1, kind: input, shape index: {}]   ;;  %s1889_s2 = inlined_call_operand.vmem [shape: f32[1,32], index: 2, kind: input, shape index: {}]   ;;  %s1890_s3 = inlined_call_operand.vmem [shape: f32[32,96], index: 3, kind: input, shape index: {}]   ;;  %s1891_s4 = inlined_call_operand.vmem [shape: f32[1,96], index: 4, kind: input, shape index: {}]   ;;  %s1892_s5 = inlined_call_operand.vmem [shape: f32[32,32], index: 5, kind: input, shape index: {}]   ;;  %s1893_s6 = inlined_call_operand.vmem [shape: f32[1,32], index: 6, kind: input, shape index: {}]   ;;  %s1894_s7 = inlined_call_operand.vmem [shape: f32[2,1,8], index: 7, kind: input, shape index: {}]   ;;  %s1895_s8 = inlined_call_operand.vmem [shape: f32[2,8,32], index: 8, kind: output, shape index: {}]  }
   0x1 LB: > { %s1484_s28 = sadd.s32 4294967295, %s1662_s27   ;;  %p1488_p0 = scmp.ge.s32.totalorder %s1662_s27, 1  ;;  %s1662_s27 = sphi %s1723_s27, %s18_s27  }
   0x2   : > { %p269_p1 = scmp.lt.s32.totalorder %s1662_s27, 3 }
   0x4   : > { %p270_p2 = pnand %p1488_p0, %p269_p1 }
   0x5   : > { %p304_p3 = scmp.lt.s32.totalorder (!%p270_p2), %s1484_s28, 1  ;;  %s1666_s25 = smov (!%p270_p2), 120  }
   0x6   : > { %273 = sbr.rel (%p270_p2) target bundleno = 2776 (0xad8), region = 52  ;;  %s1667_s26 = smov (!%p270_p2), 96  }
   0x7   : > { %s1668_s30 = smov (!%p270_p2), 88   ;;  %s1670_s12 = smov (!%p270_p2), 56  }
   0x8   : > { %s1671_s13 = smov (!%p270_p2), 64   ;;  %s1672_s14 = smov (!%p270_p2), 80  }
   0x9   : > { %s1673_s15 = smov (!%p270_p2), 112   ;;  %s1674_s20 = smov (!%p270_p2), 48  }
   0xa   : > { %s1675_s21 = smov (!%p270_p2), 104   ;;  %s1676_s22 = smov (!%p270_p2), 72  }
   0xb   : > { %s1897_s28 = smov (!%p304_p3, %s1484_s28), 1  ;;  %vm329_vm0 = vcmask 261120   ;;  %v321_v7 = vld [vmem:[%s1890_s3 + $0x18] sm:$0xff]  ;;  %v1664_v8 = vmov 0.0   ;;  %v320_v9 = vld [vmem:[%s1890_s3 + $0x10] sm:$0xff]  ;;  %vm1665_vm1 = vmmov 0   ;;  %v525_v33 = vlaneseq }
   0xc   : > { %s1489_s29 = sshll.u32 %s1897_s28, 3  ;;  %1543 = vmatprep.subr.mxu0 %v1664_v8  ;;  %1551 = vmatprep.mubr.msk.f32.mxu0 %vm1665_vm1, %v1664_v8  ;;  %v319_v10 = vld [vmem:[%s1890_s3 + $0x8] sm:$0xff]  ;;  %v318_v11 = vld [vmem:[%s1890_s3] sm:$0xff]  ;;  %vm447_vm4 = vcmask 64512   ;;  %s310_s11 = scalar_lea.vmem %s1894_s7, %s1897_s28  ;;  %v1669_v37 = vmov 0  }
   0xd   : > { %s307_s10 = scalar_lea.vmem %s1887_s0, %s1489_s29  ;;  %1544 = vmatpush3.msra.mxu0 %v321_v7  ;;  %1554 = vmatprep.subr.mxu1 %v1664_v8  ;;  %v1491_v21 = vld [vmem:[%s1888_s1] ss:$0 sm:$0xff]  ;;  %v526_v35 = vshrl.u32 %v525_v33, 7 }
   0xe   : > { %v1739_v0 = vld [vmem:[%s307_s10] sm:$0xff]  ;;  %1545 = vmatprep.subr.mxu0 %v1664_v8  ;;  %1556 = vmatprep.mubr.msk.f32.mxu1 %vm1665_vm1, %v1664_v8 }
   0xf   : > { %v330_v1 = vsel %vm329_vm0, %v1739_v0, 0.0  ;;  %1546 = vmatpush3.msra.mxu0 %v320_v9  ;;  %v1492_v23 = vld [vmem:[%s1889_s2] ss:$0 sm:$0xff]  ;;  %v527_v36 = vsub.s32 0, %v526_v35 }
  0x10   : > { %331 = vadd.xlane.f32.xlu0 %v330_v1  ;;  %1547 = vmatprep.subr.mxu0 %v1664_v8  ;;  %v1493_v26 = vld [vmem:[%s1891_s4] ss:$0 sm:$0xff] }
  0x11   : > { %1548 = vmatpush3.msra.mxu0 %v319_v10  ;;  %v328_v34 = vld [vmem:[%s310_s11] sm:$0x1] }
  0x12   : > { %1549 = vmatprep.subr.mxu0 %v1664_v8  ;;  %vm523_vm5 = vcmp.eq.f32.partialorder %v328_v34, 0.0 }
  0x13   : > { %1550 = vmatpush3.msra.mxu0 %v318_v11  ;;  %v524_v38 = vsel %vm523_vm5, 1, %v1669_v37 }
  0x14   : > { %1564 = vmatprep.subr.mxu0 %v1664_v8  ;;  %v1799_v39 = vrot.slane %v524_v38, %v527_v36  ;;  %v325_v36 = vld [vmem:[%s1892_s5 + $0x10] sm:$0xff] }
  0x16   : > { %vm529_vm6 = vcmp.eq.s32.totalorder %v1799_v39, 1 }
  0x99   : > { %v332_v2 = vpop.xlane.xlu0 %331 }
  0x9a   : > { %v334_v3 = vmul.f32 0.03125, %v332_v2 }
  0x9c   : > { %v335_v4 = vsub.f32 %v1739_v0, %v334_v3 }
  0x9e   : > { %v336_v5 = vmul.f32 %v335_v4, %v335_v4 }
  0xa0   : > { %v337_v6 = vsel %vm329_vm0, %v336_v5, 0.0  ;;  %v323_v5 = vld [vmem:[%s1892_s5] sm:$0xff] }
  0xa1   : > { %338 = vadd.xlane.f32.xlu0 %v337_v6  ;;  %v324_v6 = vld [vmem:[%s1892_s5 + $0x8] sm:$0xff] }
 0x12a   : > { %v339_v12 = vpop.xlane.xlu0 %338 }
 0x12b   : > { %v340_v13 = vmul.f32 0.032258064, %v339_v12 }
 0x12d   : > { %1636 = vrsqrt.f32 %v340_v13  ;;  %vm343_vm2 = vcmp.eq.f32.partialorder %v340_v13, inf  ;;  %v346_v16 = vand.u32 2147483648, %v340_v13  ;;  %vm345_vm3 = vcmp.eq.f32.partialorder %v340_v13, 0.0 }
 0x13a   : > { %v1637_v14 = vpop.eup %1636 }
 0x13b   : > { %v342_v15 = vmul.f32 %v1637_v14, %v340_v13 }
 0x13d   : > { %v344_v17 = vsel %vm343_vm2, %v340_v13, %v342_v15 }
 0x13e   : > { %v347_v18 = vsel %vm345_vm3, %v346_v16, %v344_v17 }
 0x13f   : > { %v348_v19 = vadd.f32 1e-06, %v347_v18 }
 0x141   : > { %1638 = vrcp.f32 %v348_v19 }
 0x14e   : > { %v1639_v20 = vpop.eup %1638 }
 0x14f   : > { %v350_v22 = vmul.f32 %v1639_v20, %v335_v4 }
 0x151   : > { %v357_v24 = vmul.f32 %v1491_v21, %v350_v22 }
 0x153   : > { %v364_v25 = vadd.f32 %v1492_v23, %v357_v24 }
 0x155   : > { %1552 = vmatmul.mubr.msk.f32.vlgmr.msra.gmra.mxu0 %vm329_vm0, %v364_v25 }
 0x156   : > { %1566 = vmatprep.mubr.msk.f32.mxu0 %vm1665_vm1, %v1664_v8 }
 0x215   : > { %v440_v27 = vpop.f32.mrf.mxu0 }
 0x216   : > { %v1779_v28 = vadd.f32 %v1493_v26, %v440_v27 }
 0x217   : > { %v1553_v29 = vpop.f32.mrf.mxu0 }
 0x218   : > { %618 = vrot.lane.b32.xlu0 %v1779_v28, %s1666_s25  ;;  %445 = vrot.lane.b32.xlu1 %v1779_v28, %s1667_s26  ;;  %s1677_s25 = smov 40  }
 0x21c   : > { %620 = vrot.lane.b32.xlu1 %v1779_v28, %s1668_s30 }
 0x28a   : > { %v446_v30 = vpop.permute.xlu1 %445  ;;  %v619_v32 = vpop.permute.xlu0 %618 }
 0x28b   : > { %1555 = vmatpush3.xpose.msk.msra.mxu1 %vm447_vm4, %v446_v30 }
 0x28c   : > { %1559 = vmatprep.subr.mxu1 %v1664_v8 }
 0x28e   : > { %1557 = vmatmul.mubr.msk.f32.vlgmr.msra.gmra.mxu1 %vm447_vm4, %v1779_v28  ;;  %v621_v31 = vpop.permute.xlu1 %620 }
 0x28f   : > { %1565 = vmatpush3.xpose.msk.msra.mxu0 %vm447_vm4, %v621_v31  ;;  %1561 = vmatprep.mubr.msk.f32.mxu1 %vm1665_vm1, %v1664_v8 }
 0x290   : > { %1574 = vmatprep.subr.mxu0 %v1664_v8 }
 0x292   : > { %1567 = vmatmul.mubr.msk.f32.vlgmr.msra.gmra.mxu0 %vm447_vm4, %v619_v32 }
 0x293   : > { %1576 = vmatprep.mubr.msk.f32.mxu0 %vm1665_vm1, %v1664_v8  ;;  %1575 = vmatpush3.msra.mxu0 %v324_v6 }
 0x294   : > { %1584 = vmatprep.subr.mxu0 %v1664_v8 }
 0x34e   : > { %v518_v40 = vpop.f32.mrf.mxu1 }
 0x34f   : > { %v522_v41 = vmul.f32 0.35355338, %v518_v40 }
 0x350   : > { %v1558_v42 = vpop.f32.mrf.mxu1 }
 0x351   : > { %v530_v43 = vsel %vm529_vm6, -1e+09, %v522_v41 }
 0x352   : > { %v692_v44 = vpop.f32.mrf.mxu0  ;;  %v531_v45 = vsel %vm447_vm4, %v530_v43, -inf }
 0x353   : > { %v696_v46 = vmul.f32 0.35355338, %v692_v44  ;;  %532 = vmax.xlane.f32.xlu1 %v531_v45 }
 0x354   : > { %v1568_v47 = vpop.f32.mrf.mxu0 }
 0x355   : > { %v697_v48 = vsel %vm529_vm6, -1e+09, %v696_v46 }
 0x356   : > { %v698_v49 = vsel %vm447_vm4, %v697_v48, -inf }
 0x357   : > { %699 = vmax.xlane.f32.xlu0 %v698_v49 }
 0x36d   : > { %709 = vrot.lane.b32.xlu0 %v1779_v28, %s1670_s12 }
 0x3dc   : > { %v533_v50 = vpop.xlane.xlu1 %532 }
 0x3dd   : > { %v534_v51 = vsub.f32 %v530_v43, %v533_v50 }
 0x3df   : > { %v535_v52 = vmul.f32 1.442695, %v534_v51 }
 0x3e0   : > { %v700_v53 = vpop.xlane.xlu0 %699 }
 0x3e1   : > { %1640 = vpow2.f32 %v535_v52  ;;  %v701_v54 = vsub.f32 %v697_v48, %v700_v53 }
 0x3e3   : > { %v702_v55 = vmul.f32 1.442695, %v701_v54 }
 0x3e4   : > { %v710_v2 = vpop.permute.xlu0 %709 }
 0x3e5   : > { %1642 = vpow2.f32 %v702_v55 }
 0x3ee   : > { %v1641_v56 = vpop.eup %1640 }
 0x3ef   : > { %v537_v57 = vsel %vm447_vm4, %v1641_v56, 0.0 }
 0x3f0   : > { %538 = vadd.xlane.f32.xlu1 %v537_v57  ;;  %v1511_v57 = vld [vmem:[%s1893_s6] ss:$0 sm:$0xff] }
 0x3f2   : > { %v1643_v58 = vpop.eup %1642 }
 0x3f3   : > { %v704_v59 = vsel %vm447_vm4, %v1643_v58, 0.0 }
 0x3f4   : > { %705 = vadd.xlane.f32.xlu1 %v704_v59 }
 0x405   : > { %542 = vrot.lane.b32.xlu1 %v1779_v28, %s1671_s13  ;;  %s314_s13 = scalar_lea.vmem %s1895_s8, %s1489_s29 }
 0x409   : > { %933 = vrot.lane.b32.xlu1 %v1779_v28, %s1672_s14 }
 0x40d   : > { %931 = vrot.lane.b32.xlu1 %v1779_v28, %s1673_s15 }
 0x479   : > { %v539_v60 = vpop.xlane.xlu1 %538 }
 0x47a   : > { %1644 = vrcp.f32 %v539_v60 }
 0x47d   : > { %v706_v61 = vpop.xlane.xlu1 %705 }
 0x47e   : > { %1646 = vrcp.f32 %v706_v61 }
 0x481   : > { %v543_v62 = vpop.permute.xlu1 %542 }
 0x482   : > { %1560 = vmatpush3.msra.mxu1 %v543_v62 }
 0x483   : > { %1569 = vmatprep.subr.mxu1 %v1664_v8 }
 0x485   : > { %v934_v9 = vpop.permute.xlu1 %933 }
 0x487   : > { %v1645_v63 = vpop.eup %1644 }
 0x488   : > { %v541_v1 = vmul.f32 %v1645_v63, %v1641_v56 }
 0x489   : > { %v932_v13 = vpop.permute.xlu1 %931 }
 0x48a   : > { %1562 = vmatmul.mubr.msk.f32.vlgmr.msra.gmra.mxu1 %vm447_vm4, %v541_v1 }
 0x48b   : > { %v1647_v3 = vpop.eup %1646  ;;  %1570 = vmatpush3.msra.mxu1 %v710_v2  ;;  %1571 = vmatprep.mubr.msk.f32.mxu1 %vm1665_vm1, %v1664_v8 }
 0x48c   : > { %v708_v4 = vmul.f32 %v1647_v3, %v1643_v58  ;;  %1579 = vmatprep.subr.mxu1 %v1664_v8 }
 0x48e   : > { %1572 = vmatmul.mubr.msk.f32.vlgmr.msra.gmra.mxu1 %vm447_vm4, %v708_v4 }
 0x48f   : > { %1581 = vmatprep.mubr.msk.f32.mxu1 %vm1665_vm1, %v1664_v8  ;;  %1580 = vmatpush3.msra.mxu1 %v323_v5 }
 0x490   : > { %1589 = vmatprep.subr.mxu1 %v1664_v8 }
 0x54a   : > { %v614_v7 = vpop.f32.mrf.mxu1 }
 0x54b   : > { %1582 = vmatmul.mubr.msk.f32.vlgmr.msra.gmra.mxu1 %vm447_vm4, %v614_v7 }
 0x54c   : > { %v1563_v10 = vpop.f32.mrf.mxu1  ;;  %1591 = vmatprep.mubr.msk.f32.mxu1 %vm1665_vm1, %v1664_v8 }
 0x54e   : > { %v781_v11 = vpop.f32.mrf.mxu1 }
 0x54f   : > { %1577 = vmatmul.mubr.msk.f32.vlgmr.msra.gmra.mxu0 %vm447_vm4, %v781_v11 }
 0x550   : > { %1585 = vmatpush3.xpose.msk.msra.mxu0 %vm447_vm4, %v934_v9  ;;  %v1573_v12 = vpop.f32.mrf.mxu1  ;;  %1586 = vmatprep.mubr.msk.f32.mxu0 %vm1665_vm1, %v1664_v8 }
 0x551   : > { %1594 = vmatprep.subr.mxu0 %v1664_v8 }
 0x553   : > { %1587 = vmatmul.mubr.msk.f32.vlgmr.msra.gmra.mxu0 %vm447_vm4, %v932_v13 }
 0x554   : > { %1596 = vmatprep.mubr.msk.f32.mxu0 %vm1665_vm1, %v1664_v8  ;;  %1595 = vmatpush3.msra.mxu0 %v325_v36 }
 0x555   : > { %1604 = vmatprep.subr.mxu0 %v1664_v8 }
 0x60b   : > { %v927_v14 = vpop.f32.mrf.mxu1 }
 0x60d   : > { %v1583_v15 = vpop.f32.mrf.mxu1 }
 0x60f   : > { %v854_v16 = vpop.f32.mrf.mxu0 }
 0x610   : > { %v928_v17 = vadd.f32 %v927_v14, %v854_v16 }
 0x611   : > { %v1578_v18 = vpop.f32.mrf.mxu0 }
 0x613   : > { %v1005_v19 = vpop.f32.mrf.mxu0 }
 0x614   : > { %v1009_v20 = vmul.f32 0.35355338, %v1005_v19 }
 0x615   : > { %v1588_v21 = vpop.f32.mrf.mxu0 }
 0x616   : > { %v1010_v22 = vsel %vm529_vm6, -1e+09, %v1009_v20 }
 0x617   : > { %v1011_v23 = vsel %vm447_vm4, %v1010_v22, -inf }
 0x618   : > { %1012 = vmax.xlane.f32.xlu1 %v1011_v23 }
 0x629   : > { %1022 = vrot.lane.b32.xlu1 %v1779_v28, %s1674_s20 }
 0x62d   : > { %1172 = vrot.lane.b32.xlu1 %v1779_v28, %s1675_s21 }
 0x6a1   : > { %v1013_v24 = vpop.xlane.xlu1 %1012 }
 0x6a2   : > { %v1014_v25 = vsub.f32 %v1010_v22, %v1013_v24 }
 0x6a4   : > { %v1015_v26 = vmul.f32 1.442695, %v1014_v25 }
 0x6a5   : > { %v1023_v27 = vpop.permute.xlu1 %1022 }
 0x6a6   : > { %1648 = vpow2.f32 %v1015_v26  ;;  %1590 = vmatpush3.msra.mxu1 %v1023_v27 }
 0x6a7   : > { %1599 = vmatprep.subr.mxu1 %v1664_v8 }
 0x6a9   : > { %v1173_v35 = vpop.permute.xlu1 %1172 }
 0x6b3   : > { %v1649_v29 = vpop.eup %1648 }
 0x6b4   : > { %v1017_v30 = vsel %vm447_vm4, %v1649_v29, 0.0 }
 0x6b5   : > { %1018 = vadd.xlane.f32.xlu0 %v1017_v30 }
 0x6cb   : > { %1174 = vrot.lane.b32.xlu0 %v1779_v28, %s1676_s22 }
 0x73e   : > { %v1019_v31 = vpop.xlane.xlu0 %1018 }
 0x73f   : > { %1650 = vrcp.f32 %v1019_v31 }
 0x742   : > { %v1175_v34 = vpop.permute.xlu0 %1174 }
 0x74c   : > { %v1651_v32 = vpop.eup %1650 }
 0x74d   : > { %v1021_v33 = vmul.f32 %v1651_v32, %v1649_v29 }
 0x74f   : > { %1592 = vmatmul.mubr.msk.f32.vlgmr.msra.gmra.mxu1 %vm447_vm4, %v1021_v33 }
 0x750   : > { %1600 = vmatpush3.xpose.msk.msra.mxu1 %vm447_vm4, %v1175_v34  ;;  %1601 = vmatprep.mubr.msk.f32.mxu1 %vm1665_vm1, %v1664_v8 }
 0x751   : > { %1609 = vmatprep.subr.mxu1 %v1664_v8 }
 0x753   : > { %1602 = vmatmul.mubr.msk.f32.vlgmr.msra.gmra.mxu1 %vm447_vm4, %v1173_v35 }
 0x754   : > { %1611 = vmatprep.mubr.msk.f32.mxu1 %vm1665_vm1, %v1664_v8 }
 0x80f   : > { %v1094_v37 = vpop.f32.mrf.mxu1 }
 0x810   : > { %1597 = vmatmul.mubr.msk.f32.vlgmr.msra.gmra.mxu0 %vm447_vm4, %v1094_v37 }
 0x811   : > { %v1593_v38 = vpop.f32.mrf.mxu1  ;;  %1606 = vmatprep.mubr.msk.f32.mxu0 %vm1665_vm1, %v1664_v8  ;;  %v326_v8 = vld [vmem:[%s1892_s5 + $0x18] sm:$0xff] }
 0x812   : > { %1610 = vmatpush3.msra.mxu1 %v326_v8 }
 0x813   : > { %v1246_v40 = vpop.f32.mrf.mxu1 }
 0x814   : > { %v1250_v41 = vmul.f32 0.35355338, %v1246_v40 }
 0x815   : > { %v1603_v42 = vpop.f32.mrf.mxu1 }
 0x816   : > { %v1251_v43 = vsel %vm529_vm6, -1e+09, %v1250_v41 }
 0x817   : > { %v1252_v44 = vsel %vm447_vm4, %v1251_v43, -inf }
 0x818   : > { %1253 = vmax.xlane.f32.xlu1 %v1252_v44 }
 0x8a1   : > { %v1254_v45 = vpop.xlane.xlu1 %1253 }
 0x8a2   : > { %v1255_v46 = vsub.f32 %v1251_v43, %v1254_v45 }
 0x8a4   : > { %v1256_v47 = vmul.f32 1.442695, %v1255_v46 }
 0x8a6   : > { %1652 = vpow2.f32 %v1256_v47 }
 0x8b3   : > { %v1653_v48 = vpop.eup %1652 }
 0x8b4   : > { %v1258_v49 = vsel %vm447_vm4, %v1653_v48, 0.0 }
 0x8b5   : > { %1259 = vadd.xlane.f32.xlu0 %v1258_v49 }
 0x8cb   : > { %1263 = vrot.lane.b32.xlu0 %v1779_v28, %s1677_s25 }
 0x8d0   : > { %v1167_v39 = vpop.f32.mrf.mxu0 }
 0x8d1   : > { %v1171_v50 = vadd.f32 %v1167_v39, %v928_v17 }
 0x8d2   : > { %v1598_v51 = vpop.f32.mrf.mxu0 }
 0x93e   : > { %v1260_v52 = vpop.xlane.xlu0 %1259 }
 0x93f   : > { %1654 = vrcp.f32 %v1260_v52 }
 0x942   : > { %v1264_v53 = vpop.permute.xlu0 %1263 }
 0x943   : > { %1605 = vmatpush3.msra.mxu0 %v1264_v53 }
 0x94c   : > { %v1655_v54 = vpop.eup %1654 }
 0x94d   : > { %v1262_v55 = vmul.f32 %v1655_v54, %v1653_v48 }
 0x94f   : > { %1607 = vmatmul.mubr.msk.f32.vlgmr.msra.gmra.mxu0 %vm447_vm4, %v1262_v55 }
 0xa0f   : > { %v1335_v56 = vpop.f32.mrf.mxu0 }
 0xa10   : > { %1612 = vmatmul.mubr.msk.f32.vlgmr.msra.gmra.mxu1 %vm447_vm4, %v1335_v56 }
 0xa11   : > { %v1608_v28 = vpop.f32.mrf.mxu0 }
 0xad0   : > { %v1408_v58 = vpop.f32.mrf.mxu1 }
 0xad1   : > { %v1412_v59 = vadd.f32 %v1408_v58, %v1171_v50 }
 0xad2   : > { %v1613_v60 = vpop.f32.mrf.mxu1 }
 0xad3   : > { %v1419_v61 = vadd.f32 %v1511_v57, %v1412_v59 }
 0xad5   : > { %v1420_v62 = vadd.f32 %v1419_v61, %v1739_v0 }
 0xad7   : > { %1421 = vst.msk [vmem:[%s314_s13] sm:$0xff] %vm329_vm0, %v1420_v62 }
 0xad8 PF: > { %s18_s27 = sadd.s32 1, %s1662_s27  }
 0xad9   : > { %p15_p4 = scmp.ge.s32.totalorder %s18_s27, 4  }
 0xadb   :  { %17 = sbr.rel (!%p15_p4) target bundleno = 1 (0x1), region = 85 }

// kernel: _lambda_.12
= control target key start
LH: loop header
LB: loop body
LE: loop exit
PB: predicated region body
PF: predicated region fallthrough
CT: control target
= control target key end

     0   :  { %s1758_s30 = smov 0   ;;  %s1925_s0 = inlined_call_operand.vmem [shape: f32[2,8,32], index: 0, kind: input, shape index: {}]   ;;  %s1926_s1 = inlined_call_operand.vmem [shape: f32[1,8,32], index: 1, kind: input, shape index: {}]   ;;  %s1927_s2 = inlined_call_operand.vmem [shape: f32[1,32], index: 2, kind: input, shape index: {}]   ;;  %s1928_s3 = inlined_call_operand.vmem [shape: f32[1,32], index: 3, kind: input, shape index: {}]   ;;  %s1929_s4 = inlined_call_operand.vmem [shape: f32[32,96], index: 4, kind: input, shape index: {}]   ;;  %s1930_s5 = inlined_call_operand.vmem [shape: f32[1,96], index: 5, kind: input, shape index: {}]   ;;  %s1931_s6 = inlined_call_operand.vmem [shape: f32[32,32], index: 6, kind: input, shape index: {}]   ;;  %s1932_s7 = inlined_call_operand.vmem [shape: f32[1,32], index: 7, kind: input, shape index: {}]   ;;  %s1933_s8 = inlined_call_operand.vmem [shape: f32[2,1,8], index: 8, kind: input, shape index: {}]   ;;  %s1934_s9 = inlined_call_operand.vmem [shape: f32[2,8,32], index: 9, kind: output, shape index: {}]  }
   0x1 LB: > { %s1514_s10 = sadd.s32 4294967295, %s1692_s30   ;;  %p1518_p0 = scmp.ge.s32.totalorder %s1692_s30, 1  ;;  %s1692_s30 = sphi %s1758_s30, %s19_s30  }
   0x2   : > { %p294_p1 = scmp.lt.s32.totalorder %s1692_s30, 3 }
   0x4   : > { %p295_p2 = pnand %p1518_p0, %p294_p1 }
   0x5   : > { %p331_p3 = scmp.lt.s32.totalorder (!%p295_p2), %s1514_s10, 1  ;;  %s1696_s13 = smov (!%p295_p2), 120  }
   0x6   : > { %298 = sbr.rel (%p295_p2) target bundleno = 2780 (0xadc), region = 56  ;;  %s1698_s15 = smov (!%p295_p2), 88  }
   0x7   : > { %s1700_s19 = smov (!%p295_p2), 56   ;;  %s1701_s20 = smov (!%p295_p2), 64  }
   0x8   : > { %s1702_s21 = smov (!%p295_p2), 80   ;;  %s1703_s22 = smov (!%p295_p2), 112  }
   0x9   : > { %s1704_s27 = smov (!%p295_p2), 48   ;;  %s1705_s28 = smov (!%p295_p2), 104  }
   0xa   : > { %s1706_s29 = smov (!%p295_p2), 72  }
   0xb   : > { %s1936_s10 = smov (!%p331_p3, %s1514_s10), 1  ;;  %v343_v1 = vld [vmem:[%s1926_s1] sm:$0xff]  ;;  %vm359_vm0 = vcmask 261120   ;;  %v349_v10 = vld [vmem:[%s1929_s4 + $0x18] sm:$0xff]  ;;  %v1694_v11 = vmov 0.0   ;;  %v348_v12 = vld [vmem:[%s1929_s4 + $0x10] sm:$0xff]  ;;  %v555_v36 = vlaneseq }
   0xc   : > { %s1519_s11 = sshll.u32 %s1936_s10, 3  ;;  %1573 = vmatprep.subr.mxu0 %v1694_v11  ;;  %vm1695_vm1 = vmmov 0   ;;  %1584 = vmatprep.subr.mxu1 %v1694_v11  ;;  %v347_v13 = vld [vmem:[%s1929_s4 + $0x8] sm:$0xff]  ;;  %v346_v14 = vld [vmem:[%s1929_s4] sm:$0xff]  ;;  %vm477_vm4 = vcmask 64512   ;;  %s337_s18 = scalar_lea.vmem %s1933_s8, %s1936_s10  ;;  %v1699_v40 = vmov 0  }
   0xd   : > { %s334_s14 = scalar_lea.vmem %s1925_s0, %s1519_s11  ;;  %1581 = vmatprep.mubr.msk.f32.mxu0 %vm1695_vm1, %v1694_v11  ;;  %1574 = vmatpush3.msra.mxu0 %v349_v10  ;;  %v1521_v24 = vld [vmem:[%s1927_s2] ss:$0 sm:$0xff]  ;;  %v556_v38 = vshrl.u32 %v555_v36, 7 }
   0xe   : > { %v342_v0 = vld [vmem:[%s334_s14] sm:$0xff]  ;;  %1575 = vmatprep.subr.mxu0 %v1694_v11  ;;  %1586 = vmatprep.mubr.msk.f32.mxu1 %vm1695_vm1, %v1694_v11  ;;  %s1697_s14 = smov 96  }
   0xf   : > { %v357_v2 = vmul.f32 5.656854, %v342_v0  ;;  %1576 = vmatpush3.msra.mxu0 %v348_v12  ;;  %v1522_v26 = vld [vmem:[%s1928_s3] ss:$0 sm:$0xff]  ;;  %v557_v39 = vsub.s32 0, %v556_v38 }
  0x10   : > { %1577 = vmatprep.subr.mxu0 %v1694_v11  ;;  %v1523_v29 = vld [vmem:[%s1930_s5] ss:$0 sm:$0xff] }
  0x11   : > { %v1777_v3 = vadd.f32 %v357_v2, %v343_v1  ;;  %1578 = vmatpush3.msra.mxu0 %v347_v13  ;;  %v356_v37 = vld [vmem:[%s337_s18] sm:$0x1] }
  0x12   : > { %1579 = vmatprep.subr.mxu0 %v1694_v11  ;;  %vm553_vm5 = vcmp.eq.f32.partialorder %v356_v37, 0.0 }
  0x13   : > { %v360_v4 = vsel %vm359_vm0, %v1777_v3, 0.0  ;;  %1580 = vmatpush3.msra.mxu0 %v346_v14  ;;  %v554_v41 = vsel %vm553_vm5, 1, %v1699_v40 }
  0x14   : > { %361 = vadd.xlane.f32.xlu0 %v360_v4  ;;  %1594 = vmatprep.subr.mxu0 %v1694_v11  ;;  %v1837_v42 = vrot.slane %v554_v41, %v557_v39  ;;  %v353_v39 = vld [vmem:[%s1931_s6 + $0x10] sm:$0xff] }
  0x16   : > { %vm559_vm6 = vcmp.eq.s32.totalorder %v1837_v42, 1 }
  0x9d   : > { %v362_v5 = vpop.xlane.xlu0 %361 }
  0x9e   : > { %v364_v6 = vmul.f32 0.03125, %v362_v5 }
  0xa0   : > { %v365_v7 = vsub.f32 %v1777_v3, %v364_v6 }
  0xa2   : > { %v366_v8 = vmul.f32 %v365_v7, %v365_v7 }
  0xa4   : > { %v367_v9 = vsel %vm359_vm0, %v366_v8, 0.0  ;;  %v351_v8 = vld [vmem:[%s1931_s6] sm:$0xff] }
  0xa5   : > { %368 = vadd.xlane.f32.xlu0 %v367_v9  ;;  %v352_v9 = vld [vmem:[%s1931_s6 + $0x8] sm:$0xff] }
 0x12e   : > { %v369_v15 = vpop.xlane.xlu0 %368 }
 0x12f   : > { %v370_v16 = vmul.f32 0.032258064, %v369_v15 }
 0x131   : > { %1666 = vrsqrt.f32 %v370_v16  ;;  %vm373_vm2 = vcmp.eq.f32.partialorder %v370_v16, inf  ;;  %v376_v19 = vand.u32 2147483648, %v370_v16  ;;  %vm375_vm3 = vcmp.eq.f32.partialorder %v370_v16, 0.0 }
 0x13e   : > { %v1667_v17 = vpop.eup %1666 }
 0x13f   : > { %v372_v18 = vmul.f32 %v1667_v17, %v370_v16 }
 0x141   : > { %v374_v20 = vsel %vm373_vm2, %v370_v16, %v372_v18 }
 0x142   : > { %v377_v21 = vsel %vm375_vm3, %v376_v19, %v374_v20 }
 0x143   : > { %v378_v22 = vadd.f32 1e-06, %v377_v21 }
 0x145   : > { %1668 = vrcp.f32 %v378_v22 }
 0x152   : > { %v1669_v23 = vpop.eup %1668 }
 0x153   : > { %v380_v25 = vmul.f32 %v1669_v23, %v365_v7 }
 0x155   : > { %v387_v27 = vmul.f32 %v1521_v24, %v380_v25 }
 0x157   : > { %v394_v28 = vadd.f32 %v1522_v26, %v387_v27 }
 0x159   : > { %1582 = vmatmul.mubr.msk.f32.vlgmr.msra.gmra.mxu0 %vm359_vm0, %v394_v28 }
 0x15a   : > { %1596 = vmatprep.mubr.msk.f32.mxu0 %vm1695_vm1, %v1694_v11 }
 0x219   : > { %v470_v30 = vpop.f32.mrf.mxu0 }
 0x21a   : > { %v1817_v31 = vadd.f32 %v1523_v29, %v470_v30 }
 0x21b   : > { %v1583_v32 = vpop.f32.mrf.mxu0 }
 0x21c   : > { %648 = vrot.lane.b32.xlu0 %v1817_v31, %s1696_s13  ;;  %475 = vrot.lane.b32.xlu1 %v1817_v31, %s1697_s14  ;;  %s1707_s14 = smov 40  }
 0x220   : > { %650 = vrot.lane.b32.xlu1 %v1817_v31, %s1698_s15 }
 0x28e   : > { %v476_v33 = vpop.permute.xlu1 %475  ;;  %v649_v35 = vpop.permute.xlu0 %648 }
 0x28f   : > { %1585 = vmatpush3.xpose.msk.msra.mxu1 %vm477_vm4, %v476_v33 }
 0x290   : > { %1589 = vmatprep.subr.mxu1 %v1694_v11 }
 0x292   : > { %1587 = vmatmul.mubr.msk.f32.vlgmr.msra.gmra.mxu1 %vm477_vm4, %v1817_v31  ;;  %v651_v34 = vpop.permute.xlu1 %650 }
 0x293   : > { %1595 = vmatpush3.xpose.msk.msra.mxu0 %vm477_vm4, %v651_v34  ;;  %1591 = vmatprep.mubr.msk.f32.mxu1 %vm1695_vm1, %v1694_v11 }
 0x294   : > { %1604 = vmatprep.subr.mxu0 %v1694_v11 }
 0x296   : > { %1597 = vmatmul.mubr.msk.f32.vlgmr.msra.gmra.mxu0 %vm477_vm4, %v649_v35 }
 0x297   : > { %1606 = vmatprep.mubr.msk.f32.mxu0 %vm1695_vm1, %v1694_v11  ;;  %1605 = vmatpush3.msra.mxu0 %v352_v9 }
 0x298   : > { %1614 = vmatprep.subr.mxu0 %v1694_v11 }
 0x352   : > { %v548_v43 = vpop.f32.mrf.mxu1 }
 0x353   : > { %v552_v44 = vmul.f32 0.35355338, %v548_v43 }
 0x354   : > { %v1588_v45 = vpop.f32.mrf.mxu1 }
 0x355   : > { %v560_v46 = vsel %vm559_vm6, -1e+09, %v552_v44 }
 0x356   : > { %v722_v47 = vpop.f32.mrf.mxu0  ;;  %v561_v48 = vsel %vm477_vm4, %v560_v46, -inf }
 0x357   : > { %v726_v49 = vmul.f32 0.35355338, %v722_v47  ;;  %562 = vmax.xlane.f32.xlu1 %v561_v48 }
 0x358   : > { %v1598_v50 = vpop.f32.mrf.mxu0 }
 0x359   : > { %v727_v51 = vsel %vm559_vm6, -1e+09, %v726_v49 }
 0x35a   : > { %v728_v52 = vsel %vm477_vm4, %v727_v51, -inf }
 0x35b   : > { %729 = vmax.xlane.f32.xlu0 %v728_v52 }
 0x371   : > { %739 = vrot.lane.b32.xlu0 %v1817_v31, %s1700_s19 }
 0x3e0   : > { %v563_v53 = vpop.xlane.xlu1 %562 }
 0x3e1   : > { %v564_v54 = vsub.f32 %v560_v46, %v563_v53 }
 0x3e3   : > { %v565_v55 = vmul.f32 1.442695, %v564_v54 }
 0x3e4   : > { %v730_v56 = vpop.xlane.xlu0 %729 }
 0x3e5   : > { %1670 = vpow2.f32 %v565_v55  ;;  %v731_v57 = vsub.f32 %v727_v51, %v730_v56 }
 0x3e7   : > { %v732_v58 = vmul.f32 1.442695, %v731_v57 }
 0x3e8   : > { %v740_v5 = vpop.permute.xlu0 %739 }
 0x3e9   : > { %1672 = vpow2.f32 %v732_v58 }
 0x3f2   : > { %v1671_v59 = vpop.eup %1670 }
 0x3f3   : > { %v567_v60 = vsel %vm477_vm4, %v1671_v59, 0.0 }
 0x3f4   : > { %568 = vadd.xlane.f32.xlu1 %v567_v60  ;;  %v1541_v60 = vld [vmem:[%s1932_s7] ss:$0 sm:$0xff] }
 0x3f6   : > { %v1673_v61 = vpop.eup %1672 }
 0x3f7   : > { %v734_v62 = vsel %vm477_vm4, %v1673_v61, 0.0 }
 0x3f8   : > { %735 = vadd.xlane.f32.xlu1 %v734_v62 }
 0x409   : > { %572 = vrot.lane.b32.xlu1 %v1817_v31, %s1701_s20 }
 0x40d   : > { %963 = vrot.lane.b32.xlu1 %v1817_v31, %s1702_s21  ;;  %s341_s21 = scalar_lea.vmem %s1934_s9, %s1519_s11 }
 0x411   : > { %961 = vrot.lane.b32.xlu1 %v1817_v31, %s1703_s22 }
 0x47d   : > { %v569_v63 = vpop.xlane.xlu1 %568 }
 0x47e   : > { %1674 = vrcp.f32 %v569_v63 }
 0x481   : > { %v736_v0 = vpop.xlane.xlu1 %735 }
 0x482   : > { %1676 = vrcp.f32 %v736_v0 }
 0x485   : > { %v573_v1 = vpop.permute.xlu1 %572 }
 0x486   : > { %1590 = vmatpush3.msra.mxu1 %v573_v1 }
 0x487   : > { %1599 = vmatprep.subr.mxu1 %v1694_v11 }
 0x489   : > { %v964_v12 = vpop.permute.xlu1 %963 }
 0x48b   : > { %v1675_v2 = vpop.eup %1674 }
 0x48c   : > { %v571_v4 = vmul.f32 %v1675_v2, %v1671_v59 }
 0x48d   : > { %v962_v16 = vpop.permute.xlu1 %961 }
 0x48e   : > { %1592 = vmatmul.mubr.msk.f32.vlgmr.msra.gmra.mxu1 %vm477_vm4, %v571_v4 }
 0x48f   : > { %v1677_v6 = vpop.eup %1676  ;;  %1600 = vmatpush3.msra.mxu1 %v740_v5  ;;  %1601 = vmatprep.mubr.msk.f32.mxu1 %vm1695_vm1, %v1694_v11 }
 0x490   : > { %v738_v7 = vmul.f32 %v1677_v6, %v1673_v61  ;;  %1609 = vmatprep.subr.mxu1 %v1694_v11 }
 0x492   : > { %1602 = vmatmul.mubr.msk.f32.vlgmr.msra.gmra.mxu1 %vm477_vm4, %v738_v7 }
 0x493   : > { %1611 = vmatprep.mubr.msk.f32.mxu1 %vm1695_vm1, %v1694_v11  ;;  %1610 = vmatpush3.msra.mxu1 %v351_v8 }
 0x494   : > { %1619 = vmatprep.subr.mxu1 %v1694_v11 }
 0x54e   : > { %v644_v10 = vpop.f32.mrf.mxu1 }
 0x54f   : > { %1612 = vmatmul.mubr.msk.f32.vlgmr.msra.gmra.mxu1 %vm477_vm4, %v644_v10 }
 0x550   : > { %v1593_v13 = vpop.f32.mrf.mxu1  ;;  %1621 = vmatprep.mubr.msk.f32.mxu1 %vm1695_vm1, %v1694_v11 }
 0x552   : > { %v811_v14 = vpop.f32.mrf.mxu1 }
 0x553   : > { %1607 = vmatmul.mubr.msk.f32.vlgmr.msra.gmra.mxu0 %vm477_vm4, %v811_v14 }
 0x554   : > { %1615 = vmatpush3.xpose.msk.msra.mxu0 %vm477_vm4, %v964_v12  ;;  %v1603_v15 = vpop.f32.mrf.mxu1  ;;  %1616 = vmatprep.mubr.msk.f32.mxu0 %vm1695_vm1, %v1694_v11 }
 0x555   : > { %1624 = vmatprep.subr.mxu0 %v1694_v11 }
 0x557   : > { %1617 = vmatmul.mubr.msk.f32.vlgmr.msra.gmra.mxu0 %vm477_vm4, %v962_v16 }
 0x558   : > { %1626 = vmatprep.mubr.msk.f32.mxu0 %vm1695_vm1, %v1694_v11  ;;  %1625 = vmatpush3.msra.mxu0 %v353_v39 }
 0x559   : > { %1634 = vmatprep.subr.mxu0 %v1694_v11 }
 0x60f   : > { %v957_v17 = vpop.f32.mrf.mxu1 }
 0x611   : > { %v1613_v18 = vpop.f32.mrf.mxu1 }
 0x613   : > { %v884_v19 = vpop.f32.mrf.mxu0 }
 0x614   : > { %v958_v20 = vadd.f32 %v957_v17, %v884_v19 }
 0x615   : > { %v1608_v21 = vpop.f32.mrf.mxu0 }
 0x617   : > { %v1035_v22 = vpop.f32.mrf.mxu0 }
 0x618   : > { %v1039_v23 = vmul.f32 0.35355338, %v1035_v22 }
 0x619   : > { %v1618_v24 = vpop.f32.mrf.mxu0 }
 0x61a   : > { %v1040_v25 = vsel %vm559_vm6, -1e+09, %v1039_v23 }
 0x61b   : > { %v1041_v26 = vsel %vm477_vm4, %v1040_v25, -inf }
 0x61c   : > { %1042 = vmax.xlane.f32.xlu1 %v1041_v26 }
 0x62d   : > { %1052 = vrot.lane.b32.xlu1 %v1817_v31, %s1704_s27 }
 0x631   : > { %1202 = vrot.lane.b32.xlu1 %v1817_v31, %s1705_s28 }
 0x6a5   : > { %v1043_v27 = vpop.xlane.xlu1 %1042 }
 0x6a6   : > { %v1044_v28 = vsub.f32 %v1040_v25, %v1043_v27 }
 0x6a8   : > { %v1045_v29 = vmul.f32 1.442695, %v1044_v28 }
 0x6a9   : > { %v1053_v30 = vpop.permute.xlu1 %1052 }
 0x6aa   : > { %1678 = vpow2.f32 %v1045_v29  ;;  %1620 = vmatpush3.msra.mxu1 %v1053_v30 }
 0x6ab   : > { %1629 = vmatprep.subr.mxu1 %v1694_v11 }
 0x6ad   : > { %v1203_v38 = vpop.permute.xlu1 %1202 }
 0x6b7   : > { %v1679_v32 = vpop.eup %1678 }
 0x6b8   : > { %v1047_v33 = vsel %vm477_vm4, %v1679_v32, 0.0 }
 0x6b9   : > { %1048 = vadd.xlane.f32.xlu0 %v1047_v33 }
 0x6cf   : > { %1204 = vrot.lane.b32.xlu0 %v1817_v31, %s1706_s29 }
 0x742   : > { %v1049_v34 = vpop.xlane.xlu0 %1048 }
 0x743   : > { %1680 = vrcp.f32 %v1049_v34 }
 0x746   : > { %v1205_v37 = vpop.permute.xlu0 %1204 }
 0x750   : > { %v1681_v35 = vpop.eup %1680 }
 0x751   : > { %v1051_v36 = vmul.f32 %v1681_v35, %v1679_v32 }
 0x753   : > { %1622 = vmatmul.mubr.msk.f32.vlgmr.msra.gmra.mxu1 %vm477_vm4, %v1051_v36 }
 0x754   : > { %1630 = vmatpush3.xpose.msk.msra.mxu1 %vm477_vm4, %v1205_v37  ;;  %1631 = vmatprep.mubr.msk.f32.mxu1 %vm1695_vm1, %v1694_v11 }
 0x755   : > { %1639 = vmatprep.subr.mxu1 %v1694_v11 }
 0x757   : > { %1632 = vmatmul.mubr.msk.f32.vlgmr.msra.gmra.mxu1 %vm477_vm4, %v1203_v38 }
 0x758   : > { %1641 = vmatprep.mubr.msk.f32.mxu1 %vm1695_vm1, %v1694_v11 }
 0x813   : > { %v1124_v40 = vpop.f32.mrf.mxu1 }
 0x814   : > { %1627 = vmatmul.mubr.msk.f32.vlgmr.msra.gmra.mxu0 %vm477_vm4, %v1124_v40 }
 0x815   : > { %v1623_v41 = vpop.f32.mrf.mxu1  ;;  %1636 = vmatprep.mubr.msk.f32.mxu0 %vm1695_vm1, %v1694_v11  ;;  %v354_v11 = vld [vmem:[%s1931_s6 + $0x18] sm:$0xff] }
 0x816   : > { %1640 = vmatpush3.msra.mxu1 %v354_v11 }
 0x817   : > { %v1276_v43 = vpop.f32.mrf.mxu1 }
 0x818   : > { %v1280_v44 = vmul.f32 0.35355338, %v1276_v43 }
 0x819   : > { %v1633_v45 = vpop.f32.mrf.mxu1 }
 0x81a   : > { %v1281_v46 = vsel %vm559_vm6, -1e+09, %v1280_v44 }
 0x81b   : > { %v1282_v47 = vsel %vm477_vm4, %v1281_v46, -inf }
 0x81c   : > { %1283 = vmax.xlane.f32.xlu1 %v1282_v47 }
 0x8a5   : > { %v1284_v48 = vpop.xlane.xlu1 %1283 }
 0x8a6   : > { %v1285_v49 = vsub.f32 %v1281_v46, %v1284_v48 }
 0x8a8   : > { %v1286_v50 = vmul.f32 1.442695, %v1285_v49 }
 0x8aa   : > { %1682 = vpow2.f32 %v1286_v50 }
 0x8b7   : > { %v1683_v51 = vpop.eup %1682 }
 0x8b8   : > { %v1288_v52 = vsel %vm477_vm4, %v1683_v51, 0.0 }
 0x8b9   : > { %1289 = vadd.xlane.f32.xlu0 %v1288_v52 }
 0x8cf   : > { %1293 = vrot.lane.b32.xlu0 %v1817_v31, %s1707_s14 }
 0x8d4   : > { %v1197_v42 = vpop.f32.mrf.mxu0 }
 0x8d5   : > { %v1201_v53 = vadd.f32 %v1197_v42, %v958_v20 }
 0x8d6   : > { %v1628_v54 = vpop.f32.mrf.mxu0 }
 0x942   : > { %v1290_v55 = vpop.xlane.xlu0 %1289 }
 0x943   : > { %1684 = vrcp.f32 %v1290_v55 }
 0x946   : > { %v1294_v56 = vpop.permute.xlu0 %1293 }
 0x947   : > { %1635 = vmatpush3.msra.mxu0 %v1294_v56 }
 0x950   : > { %v1685_v57 = vpop.eup %1684 }
 0x951   : > { %v1292_v58 = vmul.f32 %v1685_v57, %v1683_v51 }
 0x953   : > { %1637 = vmatmul.mubr.msk.f32.vlgmr.msra.gmra.mxu0 %vm477_vm4, %v1292_v58 }
 0xa13   : > { %v1365_v59 = vpop.f32.mrf.mxu0 }
 0xa14   : > { %1642 = vmatmul.mubr.msk.f32.vlgmr.msra.gmra.mxu1 %vm477_vm4, %v1365_v59 }
 0xa15   : > { %v1638_v31 = vpop.f32.mrf.mxu0 }
 0xad4   : > { %v1438_v61 = vpop.f32.mrf.mxu1 }
 0xad5   : > { %v1442_v62 = vadd.f32 %v1438_v61, %v1201_v53 }
 0xad6   : > { %v1643_v63 = vpop.f32.mrf.mxu1 }
 0xad7   : > { %v1449_v0 = vadd.f32 %v1541_v60, %v1442_v62 }
 0xad9   : > { %v1450_v1 = vadd.f32 %v1449_v0, %v1777_v3 }
 0xadb   : > { %1451 = vst.msk [vmem:[%s341_s21] sm:$0xff] %vm359_vm0, %v1450_v1 }
 0xadc PF: > { %s19_s30 = sadd.s32 1, %s1692_s30  }
 0xadd   : > { %p16_p4 = scmp.ge.s32.totalorder %s19_s30, 4  }
 0xadf   :  { %18 = sbr.rel (!%p16_p4) target bundleno = 1 (0x1), region = 89 }

// kernel: _lambda_.23
= control target key start
LH: loop header
LB: loop body
LE: loop exit
PB: predicated region body
PF: predicated region fallthrough
CT: control target
= control target key end

     0   :  { %10 = vsyncpa [#allocation3], 0  ;;  %s704_s0 = inlined_call_operand.vmem [shape: f32[16,32], index: 0, kind: input, shape index: {}]   ;;  %s705_s1 = inlined_call_operand.vmem [shape: f32[1,32], index: 1, kind: input, shape index: {}]   ;;  %s706_s2 = inlined_call_operand.vmem [shape: f32[1,32], index: 2, kind: input, shape index: {}]   ;;  %s707_s3 = inlined_call_operand.vmem [shape: f32[32,128], index: 3, kind: input, shape index: {}]   ;;  %s708_s4 = inlined_call_operand.vmem [shape: f32[1,128], index: 4, kind: input, shape index: {}]   ;;  %s709_s5 = inlined_call_operand.hbm [shape: f32[16,128], index: 5, kind: output, shape index: {}]  }
   0x1   :  { %12 = vsyncpa [#allocation3 + $0x1], 0  ;;  %s587_s18 = smov 0   ;;  %s589_s19 = smov 0  }
   0x2   :  { %s591_s20 = smov 0   ;;  %s593_s21 = smov 0  }
   0x3 LB: > { %s608_s22 = sadd.s32 4294967295, %s552_s21   ;;  %s417_s23 = sadd.s32 4294967294, %s552_s21   ;;  %s552_s21 = sphi %s593_s21, %s715_s21   ;;  %s548_s20 = sphi %s591_s20, %s714_s20   ;;  %s544_s19 = sphi %s589_s19, %s713_s19   ;;  %s540_s18 = sphi %s587_s18, %s712_s18  }
   0x4   : > { %s612_s24 = sadd.s32 1, %s552_s21   ;;  %s135_s25 = sadd.s32 1, %s548_s20 }
   0x5   : > { %s132_s26 = ssub.s32 %s552_s21, %s612_s24  ;;  %p145_p0 = scmp.ne.s32.totalorder %s548_s20, %s544_s19 }
   0x6   : > { %p133_p1 = scmp.eq.s32.totalorder %s132_s26, 0  ;;  %p146_p2 = scmp.eq.s32.totalorder %s608_s22, 1 }
   0x7   : > { %p151_p3 = scmp.ne.s32.totalorder %s544_s19, %s540_s18  ;;  %p152_p4 = scmp.eq.s32.totalorder %s417_s23, 1 }
   0x8   : > { %s623_s27 = scalar_select %p133_p1, %s548_s20, %s135_s25  }
   0x9   : > { %p625_p5 = por %p146_p2, %p145_p0  ;;  %p629_p6 = por %p152_p4, %p151_p3 }
   0xa   : > { %p420_p7 = scmp.ge.s32.totalorder %s552_s21, 1  ;;  %p189_p8 = scmp.lt.s32.totalorder %s552_s21, 3 }
   0xc   : > { %p190_p9 = pnand %p420_p7, %p189_p8 }
   0xd   : > { %p216_p10 = scmp.lt.s32.totalorder (!%p190_p9), %s608_s22, 1  ;;  %s428_s10 = sshll.u32 (!%p190_p9), %s608_s22, 7 }
   0xe   : > { %193 = sbr.rel (%p190_p9) target bundleno = 558 (0x22e), region = 40  ;;  %s669_s15 = scalar_lea.hbm (!%p190_p9), %s709_s5, %s428_s10 }
   0xf   : > { %s556_s23 = smov (!%p190_p9), [#allocation2]  }
  0x13   : > { %s217_s30 = scalar_select %p216_p10, %s608_s22, 1  ;;  %vm223_vm0 = vcmask 261120   ;;  %v262_v7 = vld [vmem:[%s707_s3 + $0x18] sm:$0xff]  ;;  %v554_v8 = vmov 0.0   ;;  %v261_v9 = vld [vmem:[%s707_s3 + $0x10] sm:$0xff]  ;;  %vm555_vm1 = vmmov 0  }
  0x14   : > { %436 = vmatprep.subr.mxu0 %v554_v8  ;;  %444 = vmatprep.mubr.msk.f32.mxu0 %vm555_vm1, %v554_v8  ;;  %v260_v10 = vld [vmem:[%s707_s3 + $0x8] sm:$0xff]  ;;  %v259_v11 = vld [vmem:[%s707_s3] sm:$0xff]  ;;  %s496_s22 = sshll.u32 %s556_s23, 4  ;;  %s497_s22 = int_to_ptr.vmem [resolvable:$false] %s496_s22 }
  0x15   : > { %s422_s6 = sshll.u32 %s217_s30, 3  ;;  %437 = vmatpush3.msra.mxu0 %v262_v7  ;;  %v423_v21 = vld [vmem:[%s705_s1] ss:$0 sm:$0xff]  ;;  %s498_s25 = scalar_lea.vmem %s497_s22, 256 }
  0x16   : > { %s219_s9 = scalar_lea.vmem %s704_s0, %s422_s6  ;;  %438 = vmatprep.subr.mxu0 %v554_v8  ;;  %v424_v23 = vld [vmem:[%s706_s2] ss:$0 sm:$0xff]  ;;  %s213_s6 = sand.u32 1, %s544_s19  }
  0x17   : > { %v220_v0 = vld [vmem:[%s219_s9] sm:$0xff]  ;;  %439 = vmatpush3.msra.mxu0 %v261_v9  ;;  %s421_s7 = sshll.u32 %s213_s6, 3  ;;  %s345_s16 = scalar_lea.sflag [#allocation3], %s213_s6 }
  0x18   : > { %v224_v1 = vsel %vm223_vm0, %v220_v0, 0.0  ;;  %440 = vmatprep.subr.mxu0 %v554_v8  ;;  %v425_v26 = vld [vmem:[%s708_s4] ss:$0 sm:$0xff]  ;;  %s215_s11 = scalar_lea.vmem [#allocation2], %s421_s7 }
  0x19   : > { %225 = vadd.xlane.f32.xlu0 %v224_v1  ;;  %441 = vmatpush3.msra.mxu0 %v260_v10  ;;  %s358_s12 = sshll.u32 %s215_s11, 4  ;;  %s359_s12 = int_to_ptr.vmem [resolvable:$true] %s358_s12 }
  0x1a   : > { %442 = vmatprep.subr.mxu0 %v554_v8  ;;  %s492_s17 = scalar_lea.vmem %s359_s12, 128  ;;  %p499_p0 = scmp.lt.s32.totalorder %s359_s12, %s497_s22 }
  0x1b   : > { %443 = vmatpush3.msra.mxu0 %v259_v11  ;;  %p493_p11 = scmp.ne.s32.totalorder %s359_s12, %s492_s17  ;;  %p500_p1 = scmp.lt.s32.totalorder %s498_s25, %s492_s17 }
  0x1d   : > { %p494_p12 = pnand %p493_p11, %p625_p5  ;;  %p501_p2 = por %p500_p1, %p499_p0 }
  0x1f   : > { %p495_p13 = pneg %p494_p12 }
  0x21   : > { %p502_p3 = pnand %p501_p2, %p495_p13 }
  0xa2   : > { %v226_v2 = vpop.xlane.xlu0 %225 }
  0xa3   : > { %v228_v3 = vmul.f32 0.03125, %v226_v2 }
  0xa5   : > { %v229_v4 = vsub.f32 %v220_v0, %v228_v3 }
  0xa7   : > { %v230_v5 = vmul.f32 %v229_v4, %v229_v4 }
  0xa9   : > { %v231_v6 = vsel %vm223_vm0, %v230_v5, 0.0 }
  0xaa   : > { %232 = vadd.xlane.f32.xlu0 %v231_v6 }
 0x133   : > { %v233_v12 = vpop.xlane.xlu0 %232 }
 0x134   : > { %v234_v13 = vmul.f32 0.032258064, %v233_v12 }
 0x136   : > { %488 = vrsqrt.f32 %v234_v13  ;;  %vm237_vm2 = vcmp.eq.f32.partialorder %v234_v13, inf  ;;  %v240_v16 = vand.u32 2147483648, %v234_v13  ;;  %vm239_vm3 = vcmp.eq.f32.partialorder %v234_v13, 0.0 }
 0x143   : > { %v489_v14 = vpop.eup %488 }
 0x144   : > { %v236_v15 = vmul.f32 %v489_v14, %v234_v13 }
 0x146   : > { %v238_v17 = vsel %vm237_vm2, %v234_v13, %v236_v15 }
 0x147   : > { %v241_v18 = vsel %vm239_vm3, %v240_v16, %v238_v17 }
 0x148   : > { %v242_v19 = vadd.f32 1e-06, %v241_v18 }
 0x14a   : > { %490 = vrcp.f32 %v242_v19 }
 0x157   : > { %v491_v20 = vpop.eup %490 }
 0x158   : > { %v244_v22 = vmul.f32 %v491_v20, %v229_v4 }
 0x15a   : > { %v251_v24 = vmul.f32 %v423_v21, %v244_v22 }
 0x15c   : > { %v258_v25 = vadd.f32 %v424_v23, %v251_v24 }
 0x15e   : > { %445 = vmatmul.mubr.msk.f32.vlgmr.msra.gmra.mxu0 %vm223_vm0, %v258_v25 }
 0x21e   : > { %v339_v27 = vpop.f32.mrf.mxu0 }
 0x21f   : > { %v340_v28 = vadd.f32 %v425_v26, %v339_v27 }
 0x220   : > { %v446_v29 = vpop.f32.mrf.mxu0 }
 0x221   : > { %343 = vst [vmem:[%s215_s11] sm:$0xff] %v340_v28 }
 0x222   : > { %505 = shalt.err (!%p502_p3)
}
 0x223   : > { %s506_s26 = scalar_lea.hbm %s669_s15, 128  ;;  %s510_s7 = scalar_lea.hbm %s709_s5, 256 }
 0x224   : > { %p507_p4 = scmp.ne.s32.totalorder %s669_s15, %s506_s26  ;;  %p511_p9 = scmp.lt.s32.totalorder %s669_s15, %s709_s5 }
 0x225   : > { %p512_p10 = scmp.lt.s32.totalorder %s510_s7, %s506_s26 }
 0x226   : > { %p508_p7 = pnand %p507_p4, %p625_p5 }
 0x227   : > { %p513_p11 = por %p512_p10, %p511_p9 }
 0x228   : > { %p509_p8 = pneg %p508_p7 }
 0x22a   : > { %p514_p12 = pnand %p513_p11, %p509_p8 }
 0x22c   : > { %517 = shalt.err (!%p514_p12)
}
 0x22d   : > { %447 = dma.vmem_to_hbm [thread:$0]  (%p625_p5), %s359_s12, 128, %s669_s15, %s345_s16  }
 0x22e PF: > { %p453_p13 = scmp.ge.s32.totalorder %s552_s21, 2  ;;  %s370_s10 = sand.u32 1, %s540_s18  }
 0x22f   : > { %s371_s11 = scalar_lea.sflag [#allocation3], %s370_s10 }
 0x230   : > { %p450_p0 = pnand %p453_p13, %p629_p6 }
 0x232   : > { %p451_p1 = pneg %p450_p0 }
 0x234   : > { %535 = dma.done.wait (%p451_p1), %s371_s11, 128  }
 0x235   : > { %537 = vsyncadd (%p451_p1), %s371_s11, 4294967168  ;;  %p15_p2 = scmp.ge.s32.totalorder %s612_s24, 4   ;;  %s712_s18 = smov %s544_s19 }
 0x236   : > { %s713_s19 = smov %s548_s20  ;;  %s714_s20 = smov %s623_s27 }
 0x237   : > { %s715_s21 = smov %s612_s24  ;;  %17 = sbr.rel (!%p15_p2) target bundleno = 3 (0x3), region = 75 }
 0x23c   :  { %376 = vsyncpa [#allocation3], 1 }
 0x23d   :  { %378 = vsyncpa [#allocation3 + $0x1], 1 }

// kernel: _lambda_.17
= control target key start
LH: loop header
LB: loop body
LE: loop exit
PB: predicated region body
PF: predicated region fallthrough
CT: control target
= control target key end

     0   :  { %s1757_s30 = smov 0   ;;  %s1921_s0 = inlined_call_operand.vmem [shape: f32[2,8,32], index: 0, kind: input, shape index: {}]   ;;  %s1922_s1 = inlined_call_operand.vmem [shape: f32[1,8,32], index: 1, kind: input, shape index: {}]   ;;  %s1923_s2 = inlined_call_operand.vmem [shape: f32[1,32], index: 2, kind: input, shape index: {}]   ;;  %s1924_s3 = inlined_call_operand.vmem [shape: f32[1,32], index: 3, kind: input, shape index: {}]   ;;  %s1925_s4 = inlined_call_operand.vmem [shape: f32[32,96], index: 4, kind: input, shape index: {}]   ;;  %s1926_s5 = inlined_call_operand.vmem [shape: f32[1,96], index: 5, kind: input, shape index: {}]   ;;  %s1927_s6 = inlined_call_operand.vmem [shape: f32[32,32], index: 6, kind: input, shape index: {}]   ;;  %s1928_s7 = inlined_call_operand.vmem [shape: f32[1,32], index: 7, kind: input, shape index: {}]   ;;  %s1929_s8 = inlined_call_operand.vmem [shape: f32[2,8,8], index: 8, kind: input, shape index: {}]   ;;  %s1930_s9 = inlined_call_operand.vmem [shape: f32[2,8,32], index: 9, kind: output, shape index: {}]  }
   0x1 LB: > { %s1514_s10 = sadd.s32 4294967295, %s1692_s30   ;;  %p1518_p0 = scmp.ge.s32.totalorder %s1692_s30, 1  ;;  %s1692_s30 = sphi %s1757_s30, %s19_s30  }
   0x2   : > { %p295_p1 = scmp.lt.s32.totalorder %s1692_s30, 3 }
   0x4   : > { %p296_p2 = pnand %p1518_p0, %p295_p1 }
   0x5   : > { %p333_p3 = scmp.lt.s32.totalorder (!%p296_p2), %s1514_s10, 1  ;;  %s1696_s12 = smov (!%p296_p2), 120  }
   0x6   : > { %299 = sbr.rel (%p296_p2) target bundleno = 2780 (0xadc), region = 56  ;;  %s1697_s13 = smov (!%p296_p2), 96  }
   0x7   : > { %s1699_s18 = smov (!%p296_p2), 56   ;;  %s1700_s19 = smov (!%p296_p2), 64  }
   0x8   : > { %s1701_s20 = smov (!%p296_p2), 80   ;;  %s1702_s21 = smov (!%p296_p2), 112  }
   0x9   : > { %s1703_s26 = smov (!%p296_p2), 48   ;;  %s1704_s27 = smov (!%p296_p2), 104  }
   0xa   : > { %s1705_s28 = smov (!%p296_p2), 72  }
   0xb   : > { %s1932_s10 = smov (!%p333_p3, %s1514_s10), 1  ;;  %v346_v1 = vld [vmem:[%s1922_s1] sm:$0xff]  ;;  %vm362_vm0 = vcmask 261120   ;;  %v352_v10 = vld [vmem:[%s1925_s4 + $0x18] sm:$0xff]  ;;  %v1694_v11 = vmov 0.0   ;;  %v351_v12 = vld [vmem:[%s1925_s4 + $0x10] sm:$0xff] }
   0xc   : > { %s1765_s11 = sshll.u32 %s1932_s10, 3  ;;  %1574 = vmatprep.subr.mxu0 %v1694_v11  ;;  %vm1695_vm1 = vmmov 0   ;;  %1585 = vmatprep.subr.mxu1 %v1694_v11  ;;  %v350_v13 = vld [vmem:[%s1925_s4 + $0x8] sm:$0xff]  ;;  %v349_v14 = vld [vmem:[%s1925_s4] sm:$0xff]  ;;  %vm480_vm4 = vcmask 64512  }
   0xd   : > { %s336_s14 = scalar_lea.vmem %s1921_s0, %s1765_s11  ;;  %1582 = vmatprep.mubr.msk.f32.mxu0 %vm1695_vm1, %v1694_v11  ;;  %1575 = vmatpush3.msra.mxu0 %v352_v10  ;;  %v1522_v24 = vld [vmem:[%s1923_s2] ss:$0 sm:$0xff]  ;;  %s340_s17 = scalar_lea.vmem %s1929_s8, %s1765_s11 }
   0xe   : > { %v345_v0 = vld [vmem:[%s336_s14] sm:$0xff]  ;;  %1576 = vmatprep.subr.mxu0 %v1694_v11  ;;  %1587 = vmatprep.mubr.msk.f32.mxu1 %vm1695_vm1, %v1694_v11  ;;  %s1698_s14 = smov 88  }
   0xf   : > { %v360_v2 = vmul.f32 5.656854, %v345_v0  ;;  %1577 = vmatpush3.msra.mxu0 %v351_v12  ;;  %v1523_v26 = vld [vmem:[%s1924_s3] ss:$0 sm:$0xff] }
  0x10   : > { %1578 = vmatprep.subr.mxu0 %v1694_v11  ;;  %v1524_v29 = vld [vmem:[%s1926_s5] ss:$0 sm:$0xff] }
  0x11   : > { %v1774_v3 = vadd.f32 %v360_v2, %v346_v1  ;;  %1579 = vmatpush3.msra.mxu0 %v350_v13  ;;  %v1834_v36 = vld [vmem:[%s340_s17] sm:$0xff]  ;;  %v355_v2 = vld [vmem:[%s1927_s6 + $0x8] sm:$0xff] }
  0x12   : > { %1580 = vmatprep.subr.mxu0 %v1694_v11  ;;  %vm556_vm5 = vcmp.eq.f32.partialorder %v1834_v36, 0.0  ;;  %v354_v1 = vld [vmem:[%s1927_s6] sm:$0xff] }
  0x13   : > { %v363_v4 = vsel %vm362_vm0, %v1774_v3, 0.0  ;;  %1581 = vmatpush3.msra.mxu0 %v349_v14 }
  0x14   : > { %364 = vadd.xlane.f32.xlu0 %v363_v4  ;;  %1595 = vmatprep.subr.mxu0 %v1694_v11 }
  0x9d   : > { %v365_v5 = vpop.xlane.xlu0 %364 }
  0x9e   : > { %v367_v6 = vmul.f32 0.03125, %v365_v5 }
  0xa0   : > { %v368_v7 = vsub.f32 %v1774_v3, %v367_v6 }
  0xa2   : > { %v369_v8 = vmul.f32 %v368_v7, %v368_v7 }
  0xa4   : > { %v370_v9 = vsel %vm362_vm0, %v369_v8, 0.0 }
  0xa5   : > { %371 = vadd.xlane.f32.xlu0 %v370_v9 }
 0x12e   : > { %v372_v15 = vpop.xlane.xlu0 %371 }
 0x12f   : > { %v373_v16 = vmul.f32 0.032258064, %v372_v15 }
 0x131   : > { %1666 = vrsqrt.f32 %v373_v16  ;;  %vm376_vm2 = vcmp.eq.f32.partialorder %v373_v16, inf  ;;  %v379_v19 = vand.u32 2147483648, %v373_v16  ;;  %vm378_vm3 = vcmp.eq.f32.partialorder %v373_v16, 0.0 }
 0x13e   : > { %v1667_v17 = vpop.eup %1666 }
 0x13f   : > { %v375_v18 = vmul.f32 %v1667_v17, %v373_v16 }
 0x141   : > { %v377_v20 = vsel %vm376_vm2, %v373_v16, %v375_v18 }
 0x142   : > { %v380_v21 = vsel %vm378_vm3, %v379_v19, %v377_v20 }
 0x143   : > { %v381_v22 = vadd.f32 1e-06, %v380_v21 }
 0x145   : > { %1668 = vrcp.f32 %v381_v22 }
 0x152   : > { %v1669_v23 = vpop.eup %1668 }
 0x153   : > { %v383_v25 = vmul.f32 %v1669_v23, %v368_v7 }
 0x155   : > { %v390_v27 = vmul.f32 %v1522_v24, %v383_v25 }
 0x157   : > { %v397_v28 = vadd.f32 %v1523_v26, %v390_v27 }
 0x159   : > { %1583 = vmatmul.mubr.msk.f32.vlgmr.msra.gmra.mxu0 %vm362_vm0, %v397_v28 }
 0x15a   : > { %1597 = vmatprep.mubr.msk.f32.mxu0 %vm1695_vm1, %v1694_v11 }
 0x219   : > { %v473_v30 = vpop.f32.mrf.mxu0 }
 0x21a   : > { %v1814_v31 = vadd.f32 %v1524_v29, %v473_v30 }
 0x21b   : > { %v1584_v32 = vpop.f32.mrf.mxu0 }
 0x21c   : > { %645 = vrot.lane.b32.xlu0 %v1814_v31, %s1696_s12  ;;  %478 = vrot.lane.b32.xlu1 %v1814_v31, %s1697_s13  ;;  %s1706_s12 = smov 40  }
 0x220   : > { %647 = vrot.lane.b32.xlu1 %v1814_v31, %s1698_s14 }
 0x28e   : > { %v479_v33 = vpop.permute.xlu1 %478  ;;  %v646_v35 = vpop.permute.xlu0 %645 }
 0x28f   : > { %1586 = vmatpush3.xpose.msk.msra.mxu1 %vm480_vm4, %v479_v33  ;;  %v356_v33 = vld [vmem:[%s1927_s6 + $0x10] sm:$0xff] }
 0x290   : > { %1590 = vmatprep.subr.mxu1 %v1694_v11 }
 0x292   : > { %1588 = vmatmul.mubr.msk.f32.vlgmr.msra.gmra.mxu1 %vm480_vm4, %v1814_v31  ;;  %v648_v34 = vpop.permute.xlu1 %647 }
 0x293   : > { %1596 = vmatpush3.xpose.msk.msra.mxu0 %vm480_vm4, %v648_v34  ;;  %1592 = vmatprep.mubr.msk.f32.mxu1 %vm1695_vm1, %v1694_v11 }
 0x294   : > { %1605 = vmatprep.subr.mxu0 %v1694_v11 }
 0x296   : > { %1598 = vmatmul.mubr.msk.f32.vlgmr.msra.gmra.mxu0 %vm480_vm4, %v646_v35 }
 0x297   : > { %1607 = vmatprep.mubr.msk.f32.mxu0 %vm1695_vm1, %v1694_v11  ;;  %1606 = vmatpush3.msra.mxu0 %v355_v2 }
 0x298   : > { %1615 = vmatprep.subr.mxu0 %v1694_v11 }
 0x352   : > { %v551_v37 = vpop.f32.mrf.mxu1 }
 0x353   : > { %v555_v38 = vmul.f32 0.35355338, %v551_v37 }
 0x354   : > { %v1589_v39 = vpop.f32.mrf.mxu1 }
 0x355   : > { %v557_v40 = vsel %vm556_vm5, -1e+09, %v555_v38 }
 0x356   : > { %v719_v41 = vpop.f32.mrf.mxu0  ;;  %v558_v42 = vsel %vm480_vm4, %v557_v40, -inf }
 0x357   : > { %v723_v43 = vmul.f32 0.35355338, %v719_v41  ;;  %559 = vmax.xlane.f32.xlu1 %v558_v42 }
 0x358   : > { %v1599_v44 = vpop.f32.mrf.mxu0 }
 0x359   : > { %v724_v45 = vsel %vm556_vm5, -1e+09, %v723_v43 }
 0x35a   : > { %v725_v46 = vsel %vm480_vm4, %v724_v45, -inf }
 0x35b   : > { %726 = vmax.xlane.f32.xlu0 %v725_v46 }
 0x371   : > { %736 = vrot.lane.b32.xlu0 %v1814_v31, %s1699_s18 }
 0x3e0   : > { %v560_v47 = vpop.xlane.xlu1 %559 }
 0x3e1   : > { %v561_v48 = vsub.f32 %v557_v40, %v560_v47 }
 0x3e3   : > { %v562_v49 = vmul.f32 1.442695, %v561_v48 }
 0x3e4   : > { %v727_v50 = vpop.xlane.xlu0 %726 }
 0x3e5   : > { %1670 = vpow2.f32 %v562_v49  ;;  %v728_v51 = vsub.f32 %v724_v45, %v727_v50 }
 0x3e7   : > { %v729_v52 = vmul.f32 1.442695, %v728_v51 }
 0x3e8   : > { %v737_v62 = vpop.permute.xlu0 %736 }
 0x3e9   : > { %1672 = vpow2.f32 %v729_v52 }
 0x3f2   : > { %v1671_v53 = vpop.eup %1670 }
 0x3f3   : > { %v564_v54 = vsel %vm480_vm4, %v1671_v53, 0.0 }
 0x3f4   : > { %565 = vadd.xlane.f32.xlu1 %v564_v54  ;;  %v1542_v54 = vld [vmem:[%s1928_s7] ss:$0 sm:$0xff] }
 0x3f6   : > { %v1673_v55 = vpop.eup %1672 }
 0x3f7   : > { %v731_v56 = vsel %vm480_vm4, %v1673_v55, 0.0 }
 0x3f8   : > { %732 = vadd.xlane.f32.xlu1 %v731_v56 }
 0x409   : > { %569 = vrot.lane.b32.xlu1 %v1814_v31, %s1700_s19  ;;  %s344_s19 = scalar_lea.vmem %s1930_s9, %s1765_s11 }
 0x40d   : > { %960 = vrot.lane.b32.xlu1 %v1814_v31, %s1701_s20 }
 0x411   : > { %958 = vrot.lane.b32.xlu1 %v1814_v31, %s1702_s21 }
 0x47d   : > { %v566_v57 = vpop.xlane.xlu1 %565 }
 0x47e   : > { %1674 = vrcp.f32 %v566_v57 }
 0x481   : > { %v733_v58 = vpop.xlane.xlu1 %732 }
 0x482   : > { %1676 = vrcp.f32 %v733_v58 }
 0x485   : > { %v570_v59 = vpop.permute.xlu1 %569 }
 0x486   : > { %1591 = vmatpush3.msra.mxu1 %v570_v59 }
 0x487   : > { %1600 = vmatprep.subr.mxu1 %v1694_v11 }
 0x489   : > { %v961_v5 = vpop.permute.xlu1 %960 }
 0x48b   : > { %v1675_v60 = vpop.eup %1674 }
 0x48c   : > { %v568_v61 = vmul.f32 %v1675_v60, %v1671_v53 }
 0x48d   : > { %v959_v9 = vpop.permute.xlu1 %958 }
 0x48e   : > { %1593 = vmatmul.mubr.msk.f32.vlgmr.msra.gmra.mxu1 %vm480_vm4, %v568_v61 }
 0x48f   : > { %v1677_v63 = vpop.eup %1676  ;;  %1601 = vmatpush3.msra.mxu1 %v737_v62  ;;  %1602 = vmatprep.mubr.msk.f32.mxu1 %vm1695_vm1, %v1694_v11 }
 0x490   : > { %v735_v0 = vmul.f32 %v1677_v63, %v1673_v55  ;;  %1610 = vmatprep.subr.mxu1 %v1694_v11 }
 0x492   : > { %1603 = vmatmul.mubr.msk.f32.vlgmr.msra.gmra.mxu1 %vm480_vm4, %v735_v0 }
 0x493   : > { %1612 = vmatprep.mubr.msk.f32.mxu1 %vm1695_vm1, %v1694_v11  ;;  %1611 = vmatpush3.msra.mxu1 %v354_v1 }
 0x494   : > { %1620 = vmatprep.subr.mxu1 %v1694_v11 }
 0x54e   : > { %v641_v4 = vpop.f32.mrf.mxu1 }
 0x54f   : > { %1613 = vmatmul.mubr.msk.f32.vlgmr.msra.gmra.mxu1 %vm480_vm4, %v641_v4 }
 0x550   : > { %v1594_v6 = vpop.f32.mrf.mxu1  ;;  %1622 = vmatprep.mubr.msk.f32.mxu1 %vm1695_vm1, %v1694_v11 }
 0x552   : > { %v808_v7 = vpop.f32.mrf.mxu1 }
 0x553   : > { %1608 = vmatmul.mubr.msk.f32.vlgmr.msra.gmra.mxu0 %vm480_vm4, %v808_v7 }
 0x554   : > { %1616 = vmatpush3.xpose.msk.msra.mxu0 %vm480_vm4, %v961_v5  ;;  %v1604_v8 = vpop.f32.mrf.mxu1  ;;  %1617 = vmatprep.mubr.msk.f32.mxu0 %vm1695_vm1, %v1694_v11 }
 0x555   : > { %1625 = vmatprep.subr.mxu0 %v1694_v11 }
 0x557   : > { %1618 = vmatmul.mubr.msk.f32.vlgmr.msra.gmra.mxu0 %vm480_vm4, %v959_v9 }
 0x558   : > { %1627 = vmatprep.mubr.msk.f32.mxu0 %vm1695_vm1, %v1694_v11  ;;  %1626 = vmatpush3.msra.mxu0 %v356_v33 }
 0x559   : > { %1635 = vmatprep.subr.mxu0 %v1694_v11 }
 0x60f   : > { %v954_v10 = vpop.f32.mrf.mxu1 }
 0x611   : > { %v1614_v12 = vpop.f32.mrf.mxu1 }
 0x613   : > { %v881_v13 = vpop.f32.mrf.mxu0 }
 0x614   : > { %v955_v14 = vadd.f32 %v954_v10, %v881_v13 }
 0x615   : > { %v1609_v15 = vpop.f32.mrf.mxu0 }
 0x617   : > { %v1032_v16 = vpop.f32.mrf.mxu0 }
 0x618   : > { %v1036_v17 = vmul.f32 0.35355338, %v1032_v16 }
 0x619   : > { %v1619_v18 = vpop.f32.mrf.mxu0 }
 0x61a   : > { %v1037_v19 = vsel %vm556_vm5, -1e+09, %v1036_v17 }
 0x61b   : > { %v1038_v20 = vsel %vm480_vm4, %v1037_v19, -inf }
 0x61c   : > { %1039 = vmax.xlane.f32.xlu1 %v1038_v20 }
 0x62d   : > { %1049 = vrot.lane.b32.xlu1 %v1814_v31, %s1703_s26 }
 0x631   : > { %1199 = vrot.lane.b32.xlu1 %v1814_v31, %s1704_s27 }
 0x6a5   : > { %v1040_v21 = vpop.xlane.xlu1 %1039 }
 0x6a6   : > { %v1041_v22 = vsub.f32 %v1037_v19, %v1040_v21 }
 0x6a8   : > { %v1042_v23 = vmul.f32 1.442695, %v1041_v22 }
 0x6a9   : > { %v1050_v24 = vpop.permute.xlu1 %1049 }
 0x6aa   : > { %1678 = vpow2.f32 %v1042_v23  ;;  %1621 = vmatpush3.msra.mxu1 %v1050_v24 }
 0x6ab   : > { %1630 = vmatprep.subr.mxu1 %v1694_v11 }
 0x6ad   : > { %v1200_v32 = vpop.permute.xlu1 %1199 }
 0x6b7   : > { %v1679_v25 = vpop.eup %1678 }
 0x6b8   : > { %v1044_v26 = vsel %vm480_vm4, %v1679_v25, 0.0 }
 0x6b9   : > { %1045 = vadd.xlane.f32.xlu0 %v1044_v26 }
 0x6cf   : > { %1201 = vrot.lane.b32.xlu0 %v1814_v31, %s1705_s28 }
 0x742   : > { %v1046_v27 = vpop.xlane.xlu0 %1045 }
 0x743   : > { %1680 = vrcp.f32 %v1046_v27 }
 0x746   : > { %v1202_v30 = vpop.permute.xlu0 %1201 }
 0x750   : > { %v1681_v28 = vpop.eup %1680 }
 0x751   : > { %v1048_v29 = vmul.f32 %v1681_v28, %v1679_v25 }
 0x753   : > { %1623 = vmatmul.mubr.msk.f32.vlgmr.msra.gmra.mxu1 %vm480_vm4, %v1048_v29 }
 0x754   : > { %1631 = vmatpush3.xpose.msk.msra.mxu1 %vm480_vm4, %v1202_v30  ;;  %1632 = vmatprep.mubr.msk.f32.mxu1 %vm1695_vm1, %v1694_v11 }
 0x755   : > { %1640 = vmatprep.subr.mxu1 %v1694_v11 }
 0x757   : > { %1633 = vmatmul.mubr.msk.f32.vlgmr.msra.gmra.mxu1 %vm480_vm4, %v1200_v32 }
 0x758   : > { %1642 = vmatprep.mubr.msk.f32.mxu1 %vm1695_vm1, %v1694_v11 }
 0x813   : > { %v1121_v34 = vpop.f32.mrf.mxu1 }
 0x814   : > { %1628 = vmatmul.mubr.msk.f32.vlgmr.msra.gmra.mxu0 %vm480_vm4, %v1121_v34 }
 0x815   : > { %v1624_v35 = vpop.f32.mrf.mxu1  ;;  %1637 = vmatprep.mubr.msk.f32.mxu0 %vm1695_vm1, %v1694_v11  ;;  %v357_v11 = vld [vmem:[%s1927_s6 + $0x18] sm:$0xff] }
 0x816   : > { %1641 = vmatpush3.msra.mxu1 %v357_v11 }
 0x817   : > { %v1273_v37 = vpop.f32.mrf.mxu1 }
 0x818   : > { %v1277_v38 = vmul.f32 0.35355338, %v1273_v37 }
 0x819   : > { %v1634_v39 = vpop.f32.mrf.mxu1 }
 0x81a   : > { %v1278_v40 = vsel %vm556_vm5, -1e+09, %v1277_v38 }
 0x81b   : > { %v1279_v41 = vsel %vm480_vm4, %v1278_v40, -inf }
 0x81c   : > { %1280 = vmax.xlane.f32.xlu1 %v1279_v41 }
 0x8a5   : > { %v1281_v42 = vpop.xlane.xlu1 %1280 }
 0x8a6   : > { %v1282_v43 = vsub.f32 %v1278_v40, %v1281_v42 }
 0x8a8   : > { %v1283_v44 = vmul.f32 1.442695, %v1282_v43 }
 0x8aa   : > { %1682 = vpow2.f32 %v1283_v44 }
 0x8b7   : > { %v1683_v45 = vpop.eup %1682 }
 0x8b8   : > { %v1285_v46 = vsel %vm480_vm4, %v1683_v45, 0.0 }
 0x8b9   : > { %1286 = vadd.xlane.f32.xlu0 %v1285_v46 }
 0x8cf   : > { %1290 = vrot.lane.b32.xlu0 %v1814_v31, %s1706_s12 }
 0x8d4   : > { %v1194_v36 = vpop.f32.mrf.mxu0 }
 0x8d5   : > { %v1198_v47 = vadd.f32 %v1194_v36, %v955_v14 }
 0x8d6   : > { %v1629_v48 = vpop.f32.mrf.mxu0 }
 0x942   : > { %v1287_v49 = vpop.xlane.xlu0 %1286 }
 0x943   : > { %1684 = vrcp.f32 %v1287_v49 }
 0x946   : > { %v1291_v50 = vpop.permute.xlu0 %1290 }
 0x947   : > { %1636 = vmatpush3.msra.mxu0 %v1291_v50 }
 0x950   : > { %v1685_v51 = vpop.eup %1684 }
 0x951   : > { %v1289_v52 = vmul.f32 %v1685_v51, %v1683_v45 }
 0x953   : > { %1638 = vmatmul.mubr.msk.f32.vlgmr.msra.gmra.mxu0 %vm480_vm4, %v1289_v52 }
 0xa13   : > { %v1362_v53 = vpop.f32.mrf.mxu0 }
 0xa14   : > { %1643 = vmatmul.mubr.msk.f32.vlgmr.msra.gmra.mxu1 %vm480_vm4, %v1362_v53 }
 0xa15   : > { %v1639_v31 = vpop.f32.mrf.mxu0 }
 0xad4   : > { %v1435_v55 = vpop.f32.mrf.mxu1 }
 0xad5   : > { %v1439_v56 = vadd.f32 %v1435_v55, %v1198_v47 }
 0xad6   : > { %v1644_v57 = vpop.f32.mrf.mxu1 }
 0xad7   : > { %v1446_v58 = vadd.f32 %v1542_v54, %v1439_v56 }
 0xad9   : > { %v1447_v59 = vadd.f32 %v1446_v58, %v1774_v3 }
 0xadb   : > { %1448 = vst.msk [vmem:[%s344_s19] sm:$0xff] %vm362_vm0, %v1447_v59 }
 0xadc PF: > { %s19_s30 = sadd.s32 1, %s1692_s30  }
 0xadd   : > { %p16_p4 = scmp.ge.s32.totalorder %s19_s30, 4  }
 0xadf   :  { %18 = sbr.rel (!%p16_p4) target bundleno = 1 (0x1), region = 89 }

// kernel: _lambda_.20
= control target key start
LH: loop header
LB: loop body
LE: loop exit
PB: predicated region body
PF: predicated region fallthrough
CT: control target
= control target key end

     0   :  { %s1722_s27 = smov 0   ;;  %s1883_s0 = inlined_call_operand.vmem [shape: f32[2,8,32], index: 0, kind: input, shape index: {}]   ;;  %s1884_s1 = inlined_call_operand.vmem [shape: f32[1,32], index: 1, kind: input, shape index: {}]   ;;  %s1885_s2 = inlined_call_operand.vmem [shape: f32[1,32], index: 2, kind: input, shape index: {}]   ;;  %s1886_s3 = inlined_call_operand.vmem [shape: f32[32,96], index: 3, kind: input, shape index: {}]   ;;  %s1887_s4 = inlined_call_operand.vmem [shape: f32[1,96], index: 4, kind: input, shape index: {}]   ;;  %s1888_s5 = inlined_call_operand.vmem [shape: f32[32,32], index: 5, kind: input, shape index: {}]   ;;  %s1889_s6 = inlined_call_operand.vmem [shape: f32[1,32], index: 6, kind: input, shape index: {}]   ;;  %s1890_s7 = inlined_call_operand.vmem [shape: f32[2,8,8], index: 7, kind: input, shape index: {}]   ;;  %s1891_s8 = inlined_call_operand.vmem [shape: f32[2,8,32], index: 8, kind: output, shape index: {}]  }
   0x1 LB: > { %s1484_s28 = sadd.s32 4294967295, %s1662_s27   ;;  %p1488_p0 = scmp.ge.s32.totalorder %s1662_s27, 1  ;;  %s1662_s27 = sphi %s1722_s27, %s18_s27  }
   0x2   : > { %p270_p1 = scmp.lt.s32.totalorder %s1662_s27, 3 }
   0x4   : > { %p271_p2 = pnand %p1488_p0, %p270_p1 }
   0x5   : > { %p306_p3 = scmp.lt.s32.totalorder (!%p271_p2), %s1484_s28, 1  ;;  %s1666_s25 = smov (!%p271_p2), 120  }
   0x6   : > { %274 = sbr.rel (%p271_p2) target bundleno = 2776 (0xad8), region = 52  ;;  %s1667_s26 = smov (!%p271_p2), 96  }
   0x7   : > { %s1669_s11 = smov (!%p271_p2), 56   ;;  %s1670_s12 = smov (!%p271_p2), 64  }
   0x8   : > { %s1671_s13 = smov (!%p271_p2), 80   ;;  %s1672_s14 = smov (!%p271_p2), 112  }
   0x9   : > { %s1673_s19 = smov (!%p271_p2), 48   ;;  %s1674_s20 = smov (!%p271_p2), 104  }
   0xa   : > { %s1675_s21 = smov (!%p271_p2), 72   ;;  %s1676_s24 = smov (!%p271_p2), 40  }
   0xb   : > { %s1893_s28 = smov (!%p306_p3, %s1484_s28), 1  ;;  %vm332_vm0 = vcmask 261120   ;;  %v324_v7 = vld [vmem:[%s1886_s3 + $0x18] sm:$0xff]  ;;  %v1664_v8 = vmov 0.0   ;;  %v323_v9 = vld [vmem:[%s1886_s3 + $0x10] sm:$0xff]  ;;  %vm1665_vm1 = vmmov 0  }
   0xc   : > { %s1730_s29 = sshll.u32 %s1893_s28, 3  ;;  %1544 = vmatprep.subr.mxu0 %v1664_v8  ;;  %1552 = vmatprep.mubr.msk.f32.mxu0 %vm1665_vm1, %v1664_v8  ;;  %v322_v10 = vld [vmem:[%s1886_s3 + $0x8] sm:$0xff]  ;;  %v321_v11 = vld [vmem:[%s1886_s3] sm:$0xff]  ;;  %s1668_s28 = smov 88   ;;  %vm450_vm4 = vcmask 64512  }
   0xd   : > { %s309_s10 = scalar_lea.vmem %s1883_s0, %s1730_s29  ;;  %1545 = vmatpush3.msra.mxu0 %v324_v7  ;;  %1555 = vmatprep.subr.mxu1 %v1664_v8  ;;  %v1492_v21 = vld [vmem:[%s1884_s1] ss:$0 sm:$0xff]  ;;  %v327_v63 = vld [vmem:[%s1888_s5 + $0x8] sm:$0xff] }
   0xe   : > { %v1736_v0 = vld [vmem:[%s309_s10] sm:$0xff]  ;;  %1546 = vmatprep.subr.mxu0 %v1664_v8  ;;  %1557 = vmatprep.mubr.msk.f32.mxu1 %vm1665_vm1, %v1664_v8  ;;  %s313_s10 = scalar_lea.vmem %s1890_s7, %s1730_s29 }
   0xf   : > { %v333_v1 = vsel %vm332_vm0, %v1736_v0, 0.0  ;;  %1547 = vmatpush3.msra.mxu0 %v323_v9  ;;  %v1493_v23 = vld [vmem:[%s1885_s2] ss:$0 sm:$0xff] }
  0x10   : > { %334 = vadd.xlane.f32.xlu0 %v333_v1  ;;  %1548 = vmatprep.subr.mxu0 %v1664_v8  ;;  %v1494_v26 = vld [vmem:[%s1887_s4] ss:$0 sm:$0xff] }
  0x11   : > { %1549 = vmatpush3.msra.mxu0 %v322_v10  ;;  %v1796_v33 = vld [vmem:[%s313_s10] sm:$0xff] }
  0x12   : > { %1550 = vmatprep.subr.mxu0 %v1664_v8  ;;  %vm526_vm5 = vcmp.eq.f32.partialorder %v1796_v33, 0.0  ;;  %v326_v62 = vld [vmem:[%s1888_s5] sm:$0xff] }
  0x13   : > { %1551 = vmatpush3.msra.mxu0 %v321_v11 }
  0x14   : > { %1565 = vmatprep.subr.mxu0 %v1664_v8 }
  0x99   : > { %v335_v2 = vpop.xlane.xlu0 %334 }
  0x9a   : > { %v337_v3 = vmul.f32 0.03125, %v335_v2 }
  0x9c   : > { %v338_v4 = vsub.f32 %v1736_v0, %v337_v3 }
  0x9e   : > { %v339_v5 = vmul.f32 %v338_v4, %v338_v4 }
  0xa0   : > { %v340_v6 = vsel %vm332_vm0, %v339_v5, 0.0 }
  0xa1   : > { %341 = vadd.xlane.f32.xlu0 %v340_v6 }
 0x12a   : > { %v342_v12 = vpop.xlane.xlu0 %341 }
 0x12b   : > { %v343_v13 = vmul.f32 0.032258064, %v342_v12 }
 0x12d   : > { %1636 = vrsqrt.f32 %v343_v13  ;;  %vm346_vm2 = vcmp.eq.f32.partialorder %v343_v13, inf  ;;  %v349_v16 = vand.u32 2147483648, %v343_v13  ;;  %vm348_vm3 = vcmp.eq.f32.partialorder %v343_v13, 0.0 }
 0x13a   : > { %v1637_v14 = vpop.eup %1636 }
 0x13b   : > { %v345_v15 = vmul.f32 %v1637_v14, %v343_v13 }
 0x13d   : > { %v347_v17 = vsel %vm346_vm2, %v343_v13, %v345_v15 }
 0x13e   : > { %v350_v18 = vsel %vm348_vm3, %v349_v16, %v347_v17 }
 0x13f   : > { %v351_v19 = vadd.f32 1e-06, %v350_v18 }
 0x141   : > { %1638 = vrcp.f32 %v351_v19 }
 0x14e   : > { %v1639_v20 = vpop.eup %1638 }
 0x14f   : > { %v353_v22 = vmul.f32 %v1639_v20, %v338_v4 }
 0x151   : > { %v360_v24 = vmul.f32 %v1492_v21, %v353_v22 }
 0x153   : > { %v367_v25 = vadd.f32 %v1493_v23, %v360_v24 }
 0x155   : > { %1553 = vmatmul.mubr.msk.f32.vlgmr.msra.gmra.mxu0 %vm332_vm0, %v367_v25 }
 0x156   : > { %1567 = vmatprep.mubr.msk.f32.mxu0 %vm1665_vm1, %v1664_v8 }
 0x215   : > { %v443_v27 = vpop.f32.mrf.mxu0 }
 0x216   : > { %v1776_v28 = vadd.f32 %v1494_v26, %v443_v27 }
 0x217   : > { %v1554_v29 = vpop.f32.mrf.mxu0 }
 0x218   : > { %615 = vrot.lane.b32.xlu0 %v1776_v28, %s1666_s25  ;;  %448 = vrot.lane.b32.xlu1 %v1776_v28, %s1667_s26 }
 0x21c   : > { %617 = vrot.lane.b32.xlu1 %v1776_v28, %s1668_s28 }
 0x28a   : > { %v449_v30 = vpop.permute.xlu1 %448  ;;  %v616_v32 = vpop.permute.xlu0 %615 }
 0x28b   : > { %1556 = vmatpush3.xpose.msk.msra.mxu1 %vm450_vm4, %v449_v30  ;;  %v328_v30 = vld [vmem:[%s1888_s5 + $0x10] sm:$0xff] }
 0x28c   : > { %1560 = vmatprep.subr.mxu1 %v1664_v8 }
 0x28e   : > { %1558 = vmatmul.mubr.msk.f32.vlgmr.msra.gmra.mxu1 %vm450_vm4, %v1776_v28  ;;  %v618_v31 = vpop.permute.xlu1 %617 }
 0x28f   : > { %1566 = vmatpush3.xpose.msk.msra.mxu0 %vm450_vm4, %v618_v31  ;;  %1562 = vmatprep.mubr.msk.f32.mxu1 %vm1665_vm1, %v1664_v8 }
 0x290   : > { %1575 = vmatprep.subr.mxu0 %v1664_v8 }
 0x292   : > { %1568 = vmatmul.mubr.msk.f32.vlgmr.msra.gmra.mxu0 %vm450_vm4, %v616_v32 }
 0x293   : > { %1577 = vmatprep.mubr.msk.f32.mxu0 %vm1665_vm1, %v1664_v8  ;;  %1576 = vmatpush3.msra.mxu0 %v327_v63 }
 0x294   : > { %1585 = vmatprep.subr.mxu0 %v1664_v8 }
 0x34e   : > { %v521_v34 = vpop.f32.mrf.mxu1 }
 0x34f   : > { %v525_v35 = vmul.f32 0.35355338, %v521_v34 }
 0x350   : > { %v1559_v36 = vpop.f32.mrf.mxu1 }
 0x351   : > { %v527_v37 = vsel %vm526_vm5, -1e+09, %v525_v35 }
 0x352   : > { %v689_v38 = vpop.f32.mrf.mxu0  ;;  %v528_v39 = vsel %vm450_vm4, %v527_v37, -inf }
 0x353   : > { %v693_v40 = vmul.f32 0.35355338, %v689_v38  ;;  %529 = vmax.xlane.f32.xlu1 %v528_v39 }
 0x354   : > { %v1569_v41 = vpop.f32.mrf.mxu0 }
 0x355   : > { %v694_v42 = vsel %vm526_vm5, -1e+09, %v693_v40 }
 0x356   : > { %v695_v43 = vsel %vm450_vm4, %v694_v42, -inf }
 0x357   : > { %696 = vmax.xlane.f32.xlu0 %v695_v43 }
 0x36d   : > { %706 = vrot.lane.b32.xlu0 %v1776_v28, %s1669_s11  ;;  %s317_s11 = scalar_lea.vmem %s1891_s8, %s1730_s29 }
 0x3dc   : > { %v530_v44 = vpop.xlane.xlu1 %529 }
 0x3dd   : > { %v531_v45 = vsub.f32 %v527_v37, %v530_v44 }
 0x3df   : > { %v532_v46 = vmul.f32 1.442695, %v531_v45 }
 0x3e0   : > { %v697_v47 = vpop.xlane.xlu0 %696 }
 0x3e1   : > { %1640 = vpow2.f32 %v532_v46  ;;  %v698_v48 = vsub.f32 %v694_v42, %v697_v47 }
 0x3e3   : > { %v699_v49 = vmul.f32 1.442695, %v698_v48 }
 0x3e4   : > { %v707_v59 = vpop.permute.xlu0 %706 }
 0x3e5   : > { %1642 = vpow2.f32 %v699_v49 }
 0x3ee   : > { %v1641_v50 = vpop.eup %1640 }
 0x3ef   : > { %v534_v51 = vsel %vm450_vm4, %v1641_v50, 0.0 }
 0x3f0   : > { %535 = vadd.xlane.f32.xlu1 %v534_v51  ;;  %v1512_v51 = vld [vmem:[%s1889_s6] ss:$0 sm:$0xff] }
 0x3f2   : > { %v1643_v52 = vpop.eup %1642 }
 0x3f3   : > { %v701_v53 = vsel %vm450_vm4, %v1643_v52, 0.0 }
 0x3f4   : > { %702 = vadd.xlane.f32.xlu1 %v701_v53 }
 0x405   : > { %539 = vrot.lane.b32.xlu1 %v1776_v28, %s1670_s12 }
 0x409   : > { %930 = vrot.lane.b32.xlu1 %v1776_v28, %s1671_s13 }
 0x40d   : > { %928 = vrot.lane.b32.xlu1 %v1776_v28, %s1672_s14 }
 0x479   : > { %v536_v54 = vpop.xlane.xlu1 %535 }
 0x47a   : > { %1644 = vrcp.f32 %v536_v54 }
 0x47d   : > { %v703_v55 = vpop.xlane.xlu1 %702 }
 0x47e   : > { %1646 = vrcp.f32 %v703_v55 }
 0x481   : > { %v540_v56 = vpop.permute.xlu1 %539 }
 0x482   : > { %1561 = vmatpush3.msra.mxu1 %v540_v56 }
 0x483   : > { %1570 = vmatprep.subr.mxu1 %v1664_v8 }
 0x485   : > { %v931_v2 = vpop.permute.xlu1 %930 }
 0x487   : > { %v1645_v57 = vpop.eup %1644 }
 0x488   : > { %v538_v58 = vmul.f32 %v1645_v57, %v1641_v50 }
 0x489   : > { %v929_v6 = vpop.permute.xlu1 %928 }
 0x48a   : > { %1563 = vmatmul.mubr.msk.f32.vlgmr.msra.gmra.mxu1 %vm450_vm4, %v538_v58 }
 0x48b   : > { %v1647_v60 = vpop.eup %1646  ;;  %1571 = vmatpush3.msra.mxu1 %v707_v59  ;;  %1572 = vmatprep.mubr.msk.f32.mxu1 %vm1665_vm1, %v1664_v8 }
 0x48c   : > { %v705_v61 = vmul.f32 %v1647_v60, %v1643_v52  ;;  %1580 = vmatprep.subr.mxu1 %v1664_v8 }
 0x48e   : > { %1573 = vmatmul.mubr.msk.f32.vlgmr.msra.gmra.mxu1 %vm450_vm4, %v705_v61 }
 0x48f   : > { %1582 = vmatprep.mubr.msk.f32.mxu1 %vm1665_vm1, %v1664_v8  ;;  %1581 = vmatpush3.msra.mxu1 %v326_v62 }
 0x490   : > { %1590 = vmatprep.subr.mxu1 %v1664_v8 }
 0x54a   : > { %v611_v1 = vpop.f32.mrf.mxu1 }
 0x54b   : > { %1583 = vmatmul.mubr.msk.f32.vlgmr.msra.gmra.mxu1 %vm450_vm4, %v611_v1 }
 0x54c   : > { %v1564_v3 = vpop.f32.mrf.mxu1  ;;  %1592 = vmatprep.mubr.msk.f32.mxu1 %vm1665_vm1, %v1664_v8 }
 0x54e   : > { %v778_v4 = vpop.f32.mrf.mxu1 }
 0x54f   : > { %1578 = vmatmul.mubr.msk.f32.vlgmr.msra.gmra.mxu0 %vm450_vm4, %v778_v4 }
 0x550   : > { %1586 = vmatpush3.xpose.msk.msra.mxu0 %vm450_vm4, %v931_v2  ;;  %v1574_v5 = vpop.f32.mrf.mxu1  ;;  %1587 = vmatprep.mubr.msk.f32.mxu0 %vm1665_vm1, %v1664_v8 }
 0x551   : > { %1595 = vmatprep.subr.mxu0 %v1664_v8 }
 0x553   : > { %1588 = vmatmul.mubr.msk.f32.vlgmr.msra.gmra.mxu0 %vm450_vm4, %v929_v6 }
 0x554   : > { %1597 = vmatprep.mubr.msk.f32.mxu0 %vm1665_vm1, %v1664_v8  ;;  %1596 = vmatpush3.msra.mxu0 %v328_v30 }
 0x555   : > { %1605 = vmatprep.subr.mxu0 %v1664_v8 }
 0x60b   : > { %v924_v7 = vpop.f32.mrf.mxu1 }
 0x60d   : > { %v1584_v9 = vpop.f32.mrf.mxu1 }
 0x60f   : > { %v851_v10 = vpop.f32.mrf.mxu0 }
 0x610   : > { %v925_v11 = vadd.f32 %v924_v7, %v851_v10 }
 0x611   : > { %v1579_v12 = vpop.f32.mrf.mxu0 }
 0x613   : > { %v1002_v13 = vpop.f32.mrf.mxu0 }
 0x614   : > { %v1006_v14 = vmul.f32 0.35355338, %v1002_v13 }
 0x615   : > { %v1589_v15 = vpop.f32.mrf.mxu0 }
 0x616   : > { %v1007_v16 = vsel %vm526_vm5, -1e+09, %v1006_v14 }
 0x617   : > { %v1008_v17 = vsel %vm450_vm4, %v1007_v16, -inf }
 0x618   : > { %1009 = vmax.xlane.f32.xlu1 %v1008_v17 }
 0x629   : > { %1019 = vrot.lane.b32.xlu1 %v1776_v28, %s1673_s19 }
 0x62d   : > { %1169 = vrot.lane.b32.xlu1 %v1776_v28, %s1674_s20 }
 0x6a1   : > { %v1010_v18 = vpop.xlane.xlu1 %1009 }
 0x6a2   : > { %v1011_v19 = vsub.f32 %v1007_v16, %v1010_v18 }
 0x6a4   : > { %v1012_v20 = vmul.f32 1.442695, %v1011_v19 }
 0x6a5   : > { %v1020_v21 = vpop.permute.xlu1 %1019 }
 0x6a6   : > { %1648 = vpow2.f32 %v1012_v20  ;;  %1591 = vmatpush3.msra.mxu1 %v1020_v21 }
 0x6a7   : > { %1600 = vmatprep.subr.mxu1 %v1664_v8 }
 0x6a9   : > { %v1170_v29 = vpop.permute.xlu1 %1169 }
 0x6b3   : > { %v1649_v22 = vpop.eup %1648 }
 0x6b4   : > { %v1014_v23 = vsel %vm450_vm4, %v1649_v22, 0.0 }
 0x6b5   : > { %1015 = vadd.xlane.f32.xlu0 %v1014_v23 }
 0x6cb   : > { %1171 = vrot.lane.b32.xlu0 %v1776_v28, %s1675_s21 }
 0x73e   : > { %v1016_v24 = vpop.xlane.xlu0 %1015 }
 0x73f   : > { %1650 = vrcp.f32 %v1016_v24 }
 0x742   : > { %v1172_v27 = vpop.permute.xlu0 %1171 }
 0x74c   : > { %v1651_v25 = vpop.eup %1650 }
 0x74d   : > { %v1018_v26 = vmul.f32 %v1651_v25, %v1649_v22 }
 0x74f   : > { %1593 = vmatmul.mubr.msk.f32.vlgmr.msra.gmra.mxu1 %vm450_vm4, %v1018_v26 }
 0x750   : > { %1601 = vmatpush3.xpose.msk.msra.mxu1 %vm450_vm4, %v1172_v27  ;;  %1602 = vmatprep.mubr.msk.f32.mxu1 %vm1665_vm1, %v1664_v8 }
 0x751   : > { %1610 = vmatprep.subr.mxu1 %v1664_v8 }
 0x753   : > { %1603 = vmatmul.mubr.msk.f32.vlgmr.msra.gmra.mxu1 %vm450_vm4, %v1170_v29 }
 0x754   : > { %1612 = vmatprep.mubr.msk.f32.mxu1 %vm1665_vm1, %v1664_v8 }
 0x80f   : > { %v1091_v31 = vpop.f32.mrf.mxu1 }
 0x810   : > { %1598 = vmatmul.mubr.msk.f32.vlgmr.msra.gmra.mxu0 %vm450_vm4, %v1091_v31 }
 0x811   : > { %v1594_v32 = vpop.f32.mrf.mxu1  ;;  %1607 = vmatprep.mubr.msk.f32.mxu0 %vm1665_vm1, %v1664_v8  ;;  %v329_v8 = vld [vmem:[%s1888_s5 + $0x18] sm:$0xff] }
 0x812   : > { %1611 = vmatpush3.msra.mxu1 %v329_v8 }
 0x813   : > { %v1243_v34 = vpop.f32.mrf.mxu1 }
 0x814   : > { %v1247_v35 = vmul.f32 0.35355338, %v1243_v34 }
 0x815   : > { %v1604_v36 = vpop.f32.mrf.mxu1 }
 0x816   : > { %v1248_v37 = vsel %vm526_vm5, -1e+09, %v1247_v35 }
 0x817   : > { %v1249_v38 = vsel %vm450_vm4, %v1248_v37, -inf }
 0x818   : > { %1250 = vmax.xlane.f32.xlu1 %v1249_v38 }
 0x8a1   : > { %v1251_v39 = vpop.xlane.xlu1 %1250 }
 0x8a2   : > { %v1252_v40 = vsub.f32 %v1248_v37, %v1251_v39 }
 0x8a4   : > { %v1253_v41 = vmul.f32 1.442695, %v1252_v40 }
 0x8a6   : > { %1652 = vpow2.f32 %v1253_v41 }
 0x8b3   : > { %v1653_v42 = vpop.eup %1652 }
 0x8b4   : > { %v1255_v43 = vsel %vm450_vm4, %v1653_v42, 0.0 }
 0x8b5   : > { %1256 = vadd.xlane.f32.xlu0 %v1255_v43 }
 0x8cb   : > { %1260 = vrot.lane.b32.xlu0 %v1776_v28, %s1676_s24 }
 0x8d0   : > { %v1164_v33 = vpop.f32.mrf.mxu0 }
 0x8d1   : > { %v1168_v44 = vadd.f32 %v1164_v33, %v925_v11 }
 0x8d2   : > { %v1599_v45 = vpop.f32.mrf.mxu0 }
 0x93e   : > { %v1257_v46 = vpop.xlane.xlu0 %1256 }
 0x93f   : > { %1654 = vrcp.f32 %v1257_v46 }
 0x942   : > { %v1261_v47 = vpop.permute.xlu0 %1260 }
 0x943   : > { %1606 = vmatpush3.msra.mxu0 %v1261_v47 }
 0x94c   : > { %v1655_v48 = vpop.eup %1654 }
 0x94d   : > { %v1259_v49 = vmul.f32 %v1655_v48, %v1653_v42 }
 0x94f   : > { %1608 = vmatmul.mubr.msk.f32.vlgmr.msra.gmra.mxu0 %vm450_vm4, %v1259_v49 }
 0xa0f   : > { %v1332_v50 = vpop.f32.mrf.mxu0 }
 0xa10   : > { %1613 = vmatmul.mubr.msk.f32.vlgmr.msra.gmra.mxu1 %vm450_vm4, %v1332_v50 }
 0xa11   : > { %v1609_v28 = vpop.f32.mrf.mxu0 }
 0xad0   : > { %v1405_v52 = vpop.f32.mrf.mxu1 }
 0xad1   : > { %v1409_v53 = vadd.f32 %v1405_v52, %v1168_v44 }
 0xad2   : > { %v1614_v54 = vpop.f32.mrf.mxu1 }
 0xad3   : > { %v1416_v55 = vadd.f32 %v1512_v51, %v1409_v53 }
 0xad5   : > { %v1417_v56 = vadd.f32 %v1416_v55, %v1736_v0 }
 0xad7   : > { %1418 = vst.msk [vmem:[%s317_s11] sm:$0xff] %vm332_vm0, %v1417_v56 }
 0xad8 PF: > { %s18_s27 = sadd.s32 1, %s1662_s27  }
 0xad9   : > { %p15_p4 = scmp.ge.s32.totalorder %s18_s27, 4  }
 0xadb   :  { %17 = sbr.rel (!%p15_p4) target bundleno = 1 (0x1), region = 85 }

// kernel: _lambda_.18
= control target key start
LH: loop header
LB: loop body
LE: loop exit
PB: predicated region body
PF: predicated region fallthrough
CT: control target
= control target key end

     0   :  { %s1943_s17 = smov 0   ;;  %s2135_s0 = inlined_call_operand.vmem [shape: f32[2,8,32], index: 0, kind: input, shape index: {}]   ;;  %s2136_s1 = inlined_call_operand.vmem [shape: f32[2,8,32], index: 1, kind: input, shape index: {}]   ;;  %s2137_s2 = inlined_call_operand.vmem [shape: f32[1,32], index: 2, kind: input, shape index: {}]   ;;  %s2138_s3 = inlined_call_operand.vmem [shape: f32[1,32], index: 3, kind: input, shape index: {}]   ;;  %s2139_s4 = inlined_call_operand.vmem [shape: f32[32,32], index: 4, kind: input, shape index: {}]   ;;  %s2140_s5 = inlined_call_operand.vmem [shape: f32[1,32], index: 5, kind: input, shape index: {}]   ;;  %s2141_s6 = inlined_call_operand.vmem [shape: f32[32,64], index: 6, kind: input, shape index: {}]   ;;  %s2142_s7 = inlined_call_operand.vmem [shape: f32[1,64], index: 7, kind: input, shape index: {}]   ;;  %s2143_s8 = inlined_call_operand.vmem [shape: f32[32,32], index: 8, kind: input, shape index: {}]   ;;  %s2144_s9 = inlined_call_operand.vmem [shape: f32[1,32], index: 9, kind: input, shape index: {}]   ;;  %s2145_s10 = inlined_call_operand.vmem [shape: f32[2,1,8], index: 10, kind: input, shape index: {}]   ;;  %s2146_s11 = inlined_call_operand.vmem [shape: f32[2,8,32], index: 11, kind: output, shape index: {}]  }
   0x1 LB: > { %s1678_s18 = sadd.s32 4294967295, %s1871_s17   ;;  %p1682_p0 = scmp.ge.s32.totalorder %s1871_s17, 1  ;;  %s1871_s17 = sphi %s1943_s17, %s21_s17  }
   0x2   : > { %p353_p1 = scmp.lt.s32.totalorder %s1871_s17, 3 }
   0x4   : > { %p354_p2 = pnand %p1682_p0, %p353_p1 }
   0x5   : > { %p398_p3 = scmp.lt.s32.totalorder (!%p354_p2), %s1678_s18, 1  ;;  %s1875_s13 = smov (!%p354_p2), 120  }
   0x6   : > { %357 = sbr.rel (%p354_p2) target bundleno = 2769 (0xad1), region = 64  ;;  %s1879_s23 = smov (!%p354_p2), 88  }
   0x7   : > { %s1880_s28 = smov (!%p354_p2), 80   ;;  %s1881_s29 = smov (!%p354_p2), 104  }
   0xb   : > { %s2148_s18 = smov (!%p398_p3, %s1678_s18), 1  ;;  %vm416_vm0 = vcmask 261120   ;;  %v540_v7 = vld [vmem:[%s2141_s6 + $0x18] sm:$0xff]  ;;  %v1873_v8 = vmov 0.0   ;;  %v539_v9 = vld [vmem:[%s2141_s6 + $0x10] sm:$0xff]  ;;  %v538_v12 = vld [vmem:[%s2141_s6 + $0x8] sm:$0xff]  ;;  %v707_v41 = vlaneseq }
   0xc   : > { %s1954_s19 = sshll.u32 %s2148_s18, 3  ;;  %1756 = vmatprep.subr.mxu1 %v1873_v8  ;;  %1745 = vmatprep.subr.mxu0 %v1873_v8  ;;  %v455_v10 = vld [vmem:[%s2139_s4 + $0x18] sm:$0xff]  ;;  %v454_v11 = vld [vmem:[%s2139_s4 + $0x10] sm:$0xff]  ;;  %vm1874_vm1 = vmmov 0   ;;  %v453_v13 = vld [vmem:[%s2139_s4 + $0x8] sm:$0xff]  ;;  %vm627_vm4 = vcmask 64512   ;;  %s408_s21 = scalar_lea.vmem %s2145_s10, %s2148_s18 }
   0xd   : > { %s401_s22 = scalar_lea.vmem %s2135_s0, %s1954_s19  ;;  %1757 = vmatpush3.msra.mxu1 %v540_v7  ;;  %1746 = vmatpush3.msra.mxu0 %v455_v10  ;;  %s405_s16 = scalar_lea.vmem %s2136_s1, %s1954_s19  ;;  %v537_v14 = vld [vmem:[%s2141_s6] sm:$0xff]  ;;  %v708_v43 = vshrl.u32 %v707_v41, 7  ;;  %v1876_v45 = vmov 0   ;;  %v623_v10 = vld [vmem:[%s2143_s8 + $0x8] sm:$0xff] }
   0xe   : > { %v1960_v0 = vld [vmem:[%s401_s22] sm:$0xff]  ;;  %1758 = vmatprep.subr.mxu1 %v1873_v8  ;;  %1764 = vmatprep.mubr.msk.f32.mxu1 %vm1874_vm1, %v1873_v8  ;;  %s1877_s18 = smov 96   ;;  %s1878_s22 = smov 112  }
   0xf   : > { %v417_v1 = vsel %vm416_vm0, %v1960_v0, 0.0  ;;  %1759 = vmatpush3.msra.mxu1 %v539_v9  ;;  %1747 = vmatprep.subr.mxu0 %v1873_v8  ;;  %v536_v15 = vld [vmem:[%s405_s16] sm:$0xff]  ;;  %v709_v44 = vsub.s32 0, %v708_v43  ;;  %v624_v43 = vld [vmem:[%s2143_s8 + $0x10] sm:$0xff] }
  0x10   : > { %418 = vadd.xlane.f32.xlu0 %v417_v1  ;;  %1760 = vmatprep.subr.mxu1 %v1873_v8  ;;  %v452_v16 = vld [vmem:[%s2139_s4] sm:$0xff] }
  0x11   : > { %1748 = vmatpush3.msra.mxu0 %v454_v11  ;;  %1761 = vmatpush3.msra.mxu1 %v538_v12  ;;  %v1686_v26 = vld [vmem:[%s2137_s2] ss:$0 sm:$0xff] }
  0x12   : > { %1749 = vmatprep.subr.mxu0 %v1873_v8  ;;  %1762 = vmatprep.subr.mxu1 %v1873_v8  ;;  %v1687_v28 = vld [vmem:[%s2138_s3] ss:$0 sm:$0xff] }
  0x13   : > { %1750 = vmatpush3.msra.mxu0 %v453_v13  ;;  %1763 = vmatpush3.msra.mxu1 %v537_v14  ;;  %v1690_v31 = vld [vmem:[%s2142_s7] ss:$0 sm:$0xff] }
  0x14   : > { %1751 = vmatprep.subr.mxu0 %v1873_v8  ;;  %1765 = vmatmul.mubr.msk.f32.vlgmr.msra.gmra.mxu1 %vm416_vm0, %v536_v15  ;;  %v1688_v35 = vld [vmem:[%s2140_s5] ss:$0 sm:$0xff] }
  0x15   : > { %1752 = vmatpush3.msra.mxu0 %v452_v16  ;;  %1753 = vmatprep.mubr.msk.f32.mxu0 %vm1874_vm1, %v1873_v8  ;;  %v621_v42 = vld [vmem:[%s408_s21] sm:$0x1] }
  0x16   : > { %1767 = vmatprep.subr.mxu0 %v1873_v8  ;;  %1772 = vmatprep.subr.mxu1 %v1873_v8  ;;  %vm705_vm5 = vcmp.eq.f32.partialorder %v621_v42, 0.0  ;;  %v622_v15 = vld [vmem:[%s2143_s8] sm:$0xff] }
  0x17   : > { %1774 = vmatprep.mubr.msk.f32.mxu1 %vm1874_vm1, %v1873_v8  ;;  %v706_v46 = vsel %vm705_vm5, 1, %v1876_v45 }
  0x18   : > { %v2048_v47 = vrot.slane %v706_v46, %v709_v44 }
  0x1a   : > { %vm711_vm6 = vcmp.eq.s32.totalorder %v2048_v47, 1  ;;  %v625_v47 = vld [vmem:[%s2143_s8 + $0x18] sm:$0xff] }
  0x99   : > { %v419_v2 = vpop.xlane.xlu0 %418 }
  0x9a   : > { %v421_v3 = vmul.f32 0.03125, %v419_v2 }
  0x9c   : > { %v422_v4 = vsub.f32 %v1960_v0, %v421_v3 }
  0x9e   : > { %v423_v5 = vmul.f32 %v422_v4, %v422_v4 }
  0xa0   : > { %v424_v6 = vsel %vm416_vm0, %v423_v5, 0.0 }
  0xa1   : > { %425 = vadd.xlane.f32.xlu0 %v424_v6 }
  0xd4   : > { %v617_v32 = vpop.f32.mrf.mxu1 }
  0xd5   : > { %v2023_v33 = vadd.f32 %v1690_v31, %v617_v32 }
  0xd6   : > { %v1766_v34 = vpop.f32.mrf.mxu1 }
  0xd7   : > { %802 = vrot.lane.b32.xlu1 %v2023_v33, %s1875_s13 }
 0x12a   : > { %v426_v17 = vpop.xlane.xlu0 %425 }
 0x12b   : > { %v427_v18 = vmul.f32 0.032258064, %v426_v17 }
 0x12d   : > { %1845 = vrsqrt.f32 %v427_v18  ;;  %vm430_vm2 = vcmp.eq.f32.partialorder %v427_v18, inf  ;;  %v433_v21 = vand.u32 2147483648, %v427_v18  ;;  %vm432_vm3 = vcmp.eq.f32.partialorder %v427_v18, 0.0 }
 0x13a   : > { %v1846_v19 = vpop.eup %1845 }
 0x13b   : > { %v429_v20 = vmul.f32 %v1846_v19, %v427_v18 }
 0x13d   : > { %v431_v22 = vsel %vm430_vm2, %v427_v18, %v429_v20 }
 0x13e   : > { %v434_v23 = vsel %vm432_vm3, %v433_v21, %v431_v22 }
 0x13f   : > { %v435_v24 = vadd.f32 1e-06, %v434_v23 }
 0x141   : > { %1847 = vrcp.f32 %v435_v24 }
 0x149   : > { %v803_v38 = vpop.permute.xlu1 %802 }
 0x14e   : > { %v1848_v25 = vpop.eup %1847 }
 0x14f   : > { %v437_v27 = vmul.f32 %v1848_v25, %v422_v4 }
 0x151   : > { %v444_v29 = vmul.f32 %v1686_v26, %v437_v27 }
 0x153   : > { %v451_v30 = vadd.f32 %v1687_v28, %v444_v29 }
 0x155   : > { %1754 = vmatmul.mubr.msk.f32.vlgmr.msra.gmra.mxu0 %vm416_vm0, %v451_v30 }
 0x156   : > { %1769 = vmatprep.mubr.msk.f32.mxu0 %vm1874_vm1, %v1873_v8  ;;  %1768 = vmatpush3.xpose.msk.msra.mxu0 %vm627_vm4, %v2023_v33 }
 0x157   : > { %1777 = vmatprep.subr.mxu0 %v1873_v8 }
 0x215   : > { %v532_v36 = vpop.f32.mrf.mxu0 }
 0x216   : > { %v2032_v37 = vadd.f32 %v1688_v35, %v532_v36 }
 0x217   : > { %v1755_v39 = vpop.f32.mrf.mxu0 }
 0x218   : > { %800 = vrot.lane.b32.xlu1 %v2032_v37, %s1875_s13  ;;  %1770 = vmatmul.mubr.msk.f32.vlgmr.msra.gmra.mxu0 %vm627_vm4, %v2032_v37  ;;  %s1882_s13 = smov 72  }
 0x219   : > { %1778 = vmatpush3.xpose.msk.msra.mxu0 %vm627_vm4, %v803_v38  ;;  %1779 = vmatprep.mubr.msk.f32.mxu0 %vm1874_vm1, %v1873_v8 }
 0x21a   : > { %1787 = vmatprep.subr.mxu0 %v1873_v8 }
 0x28a   : > { %v801_v40 = vpop.permute.xlu1 %800 }
 0x28b   : > { %1780 = vmatmul.mubr.msk.f32.vlgmr.msra.gmra.mxu0 %vm627_vm4, %v801_v40 }
 0x28c   : > { %1789 = vmatprep.mubr.msk.f32.mxu0 %vm1874_vm1, %v1873_v8  ;;  %1788 = vmatpush3.msra.mxu0 %v623_v10 }
 0x28d   : > { %1797 = vmatprep.subr.mxu0 %v1873_v8 }
 0x2d8   : > { %v700_v48 = vpop.f32.mrf.mxu0 }
 0x2d9   : > { %v704_v49 = vmul.f32 0.35355338, %v700_v48 }
 0x2da   : > { %v1771_v50 = vpop.f32.mrf.mxu0 }
 0x2db   : > { %v712_v51 = vsel %vm711_vm6, -1e+09, %v704_v49 }
 0x2dc   : > { %v713_v52 = vsel %vm627_vm4, %v712_v51, -inf }
 0x2dd   : > { %714 = vmax.xlane.f32.xlu0 %v713_v52 }
 0x2f3   : > { %724 = vrot.lane.b32.xlu0 %v2023_v33, %s1877_s18 }
 0x34b   : > { %v874_v53 = vpop.f32.mrf.mxu0 }
 0x34c   : > { %v878_v54 = vmul.f32 0.35355338, %v874_v53 }
 0x34d   : > { %v1781_v55 = vpop.f32.mrf.mxu0 }
 0x34e   : > { %v879_v56 = vsel %vm711_vm6, -1e+09, %v878_v54 }
 0x34f   : > { %v880_v57 = vsel %vm627_vm4, %v879_v56, -inf }
 0x350   : > { %881 = vmax.xlane.f32.xlu1 %v880_v57 }
 0x361   : > { %1115 = vrot.lane.b32.xlu1 %v2023_v33, %s1878_s22 }
 0x366   : > { %v715_v58 = vpop.xlane.xlu0 %714 }
 0x367   : > { %v716_v59 = vsub.f32 %v712_v51, %v715_v58 }
 0x369   : > { %v717_v60 = vmul.f32 1.442695, %v716_v59 }
 0x36a   : > { %v725_v61 = vpop.permute.xlu0 %724 }
 0x36b   : > { %1849 = vpow2.f32 %v717_v60  ;;  %1773 = vmatpush3.msra.mxu1 %v725_v61 }
 0x36c   : > { %1782 = vmatprep.subr.mxu1 %v1873_v8 }
 0x378   : > { %v1850_v62 = vpop.eup %1849 }
 0x379   : > { %v719_v63 = vsel %vm627_vm4, %v1850_v62, 0.0 }
 0x37a   : > { %720 = vadd.xlane.f32.xlu0 %v719_v63 }
 0x3d9   : > { %v882_v1 = vpop.xlane.xlu1 %881 }
 0x3da   : > { %v883_v2 = vsub.f32 %v879_v56, %v882_v1 }
 0x3dc   : > { %v884_v3 = vmul.f32 1.442695, %v883_v2  ;;  %v1708_v2 = vld [vmem:[%s2144_s9] ss:$0 sm:$0xff] }
 0x3dd   : > { %v1116_v19 = vpop.permute.xlu1 %1115 }
 0x3de   : > { %1851 = vpow2.f32 %v884_v3 }
 0x3eb   : > { %v1852_v4 = vpop.eup %1851 }
 0x3ec   : > { %v886_v5 = vsel %vm627_vm4, %v1852_v4, 0.0 }
 0x3ed   : > { %887 = vadd.xlane.f32.xlu0 %v886_v5 }
 0x403   : > { %v721_v6 = vpop.xlane.xlu0 %720  ;;  %891 = vrot.lane.b32.xlu0 %v2023_v33, %s1879_s23 }
 0x404   : > { %1853 = vrcp.f32 %v721_v6 }
 0x407   : > { %1113 = vrot.lane.b32.xlu0 %v2032_v37, %s1878_s22  ;;  %s412_s22 = scalar_lea.vmem %s2146_s11, %s1954_s19 }
 0x411   : > { %v1854_v7 = vpop.eup %1853 }
 0x412   : > { %v723_v9 = vmul.f32 %v1854_v7, %v1850_v62 }
 0x414   : > { %1775 = vmatmul.mubr.msk.f32.vlgmr.msra.gmra.mxu1 %vm627_vm4, %v723_v9 }
 0x415   : > { %1784 = vmatprep.mubr.msk.f32.mxu1 %vm1874_vm1, %v1873_v8 }
 0x476   : > { %v888_v11 = vpop.xlane.xlu0 %887 }
 0x477   : > { %1855 = vrcp.f32 %v888_v11 }
 0x47a   : > { %v892_v12 = vpop.permute.xlu0 %891 }
 0x47b   : > { %1783 = vmatpush3.msra.mxu1 %v892_v12 }
 0x47c   : > { %1792 = vmatprep.subr.mxu1 %v1873_v8 }
 0x47e   : > { %v1114_v21 = vpop.permute.xlu0 %1113 }
 0x484   : > { %v1856_v13 = vpop.eup %1855 }
 0x485   : > { %v890_v14 = vmul.f32 %v1856_v13, %v1852_v4 }
 0x487   : > { %1785 = vmatmul.mubr.msk.f32.vlgmr.msra.gmra.mxu1 %vm627_vm4, %v890_v14 }
 0x488   : > { %1793 = vmatpush3.msra.mxu1 %v622_v15  ;;  %1794 = vmatprep.mubr.msk.f32.mxu1 %vm1874_vm1, %v1873_v8 }
 0x489   : > { %1802 = vmatprep.subr.mxu1 %v1873_v8 }
 0x4d4   : > { %v796_v16 = vpop.f32.mrf.mxu1 }
 0x4d5   : > { %1795 = vmatmul.mubr.msk.f32.vlgmr.msra.gmra.mxu1 %vm627_vm4, %v796_v16 }
 0x4d6   : > { %v1776_v17 = vpop.f32.mrf.mxu1  ;;  %1804 = vmatprep.mubr.msk.f32.mxu1 %vm1874_vm1, %v1873_v8 }
 0x547   : > { %v963_v18 = vpop.f32.mrf.mxu1 }
 0x548   : > { %1790 = vmatmul.mubr.msk.f32.vlgmr.msra.gmra.mxu0 %vm627_vm4, %v963_v18 }
 0x549   : > { %1798 = vmatpush3.xpose.msk.msra.mxu0 %vm627_vm4, %v1116_v19  ;;  %v1786_v20 = vpop.f32.mrf.mxu1  ;;  %1799 = vmatprep.mubr.msk.f32.mxu0 %vm1874_vm1, %v1873_v8 }
 0x54a   : > { %1807 = vmatprep.subr.mxu0 %v1873_v8 }
 0x54c   : > { %1800 = vmatmul.mubr.msk.f32.vlgmr.msra.gmra.mxu0 %vm627_vm4, %v1114_v21 }
 0x54d   : > { %1809 = vmatprep.mubr.msk.f32.mxu0 %vm1874_vm1, %v1873_v8  ;;  %1808 = vmatpush3.msra.mxu0 %v624_v43 }
 0x54e   : > { %1817 = vmatprep.subr.mxu0 %v1873_v8 }
 0x595   : > { %v1109_v22 = vpop.f32.mrf.mxu1 }
 0x597   : > { %v1796_v23 = vpop.f32.mrf.mxu1 }
 0x608   : > { %v1036_v24 = vpop.f32.mrf.mxu0 }
 0x609   : > { %v1110_v57 = vadd.f32 %v1109_v22, %v1036_v24 }
 0x60a   : > { %v1791_v25 = vpop.f32.mrf.mxu0 }
 0x60c   : > { %v1187_v26 = vpop.f32.mrf.mxu0 }
 0x60d   : > { %v1191_v27 = vmul.f32 0.35355338, %v1187_v26 }
 0x60e   : > { %v1801_v28 = vpop.f32.mrf.mxu0 }
 0x60f   : > { %v1192_v29 = vsel %vm711_vm6, -1e+09, %v1191_v27 }
 0x610   : > { %v1193_v30 = vsel %vm627_vm4, %v1192_v29, -inf }
 0x611   : > { %1194 = vmax.xlane.f32.xlu0 %v1193_v30 }
 0x627   : > { %1204 = vrot.lane.b32.xlu0 %v2023_v33, %s1880_s28 }
 0x62b   : > { %1354 = vrot.lane.b32.xlu0 %v2032_v37, %s1881_s29 }
 0x69a   : > { %v1195_v31 = vpop.xlane.xlu0 %1194 }
 0x69b   : > { %v1196_v32 = vsub.f32 %v1192_v29, %v1195_v31 }
 0x69d   : > { %v1197_v34 = vmul.f32 1.442695, %v1196_v32 }
 0x69e   : > { %v1205_v35 = vpop.permute.xlu0 %1204 }
 0x69f   : > { %1857 = vpow2.f32 %v1197_v34  ;;  %1803 = vmatpush3.msra.mxu1 %v1205_v35 }
 0x6a0   : > { %1812 = vmatprep.subr.mxu1 %v1873_v8 }
 0x6a2   : > { %v1355_v37 = vpop.permute.xlu0 %1354 }
 0x6ac   : > { %v1858_v36 = vpop.eup %1857 }
 0x6ad   : > { %v1199_v38 = vsel %vm627_vm4, %v1858_v36, 0.0 }
 0x6ae   : > { %1200 = vadd.xlane.f32.xlu1 %v1199_v38 }
 0x6bf   : > { %1356 = vrot.lane.b32.xlu1 %v2023_v33, %s1881_s29 }
 0x737   : > { %v1201_v39 = vpop.xlane.xlu1 %1200 }
 0x738   : > { %1859 = vrcp.f32 %v1201_v39 }
 0x73b   : > { %v1357_v42 = vpop.permute.xlu1 %1356 }
 0x745   : > { %v1860_v40 = vpop.eup %1859 }
 0x746   : > { %v1203_v41 = vmul.f32 %v1860_v40, %v1858_v36 }
 0x748   : > { %1805 = vmatmul.mubr.msk.f32.vlgmr.msra.gmra.mxu1 %vm627_vm4, %v1203_v41 }
 0x749   : > { %1813 = vmatpush3.xpose.msk.msra.mxu1 %vm627_vm4, %v1357_v42  ;;  %1814 = vmatprep.mubr.msk.f32.mxu1 %vm1874_vm1, %v1873_v8 }
 0x74a   : > { %1822 = vmatprep.subr.mxu1 %v1873_v8 }
 0x74c   : > { %1815 = vmatmul.mubr.msk.f32.vlgmr.msra.gmra.mxu1 %vm627_vm4, %v1355_v37 }
 0x74d   : > { %1824 = vmatprep.mubr.msk.f32.mxu1 %vm1874_vm1, %v1873_v8  ;;  %1823 = vmatpush3.msra.mxu1 %v625_v47 }
 0x808   : > { %v1276_v44 = vpop.f32.mrf.mxu1 }
 0x809   : > { %1810 = vmatmul.mubr.msk.f32.vlgmr.msra.gmra.mxu0 %vm627_vm4, %v1276_v44 }
 0x80a   : > { %v1806_v45 = vpop.f32.mrf.mxu1  ;;  %1819 = vmatprep.mubr.msk.f32.mxu0 %vm1874_vm1, %v1873_v8 }
 0x80c   : > { %v1428_v46 = vpop.f32.mrf.mxu1 }
 0x80d   : > { %v1432_v48 = vmul.f32 0.35355338, %v1428_v46 }
 0x80e   : > { %v1816_v49 = vpop.f32.mrf.mxu1 }
 0x80f   : > { %v1433_v50 = vsel %vm711_vm6, -1e+09, %v1432_v48 }
 0x810   : > { %v1434_v51 = vsel %vm627_vm4, %v1433_v50, -inf }
 0x811   : > { %1435 = vmax.xlane.f32.xlu0 %v1434_v51 }
 0x827   : > { %1445 = vrot.lane.b32.xlu0 %v2023_v33, %s1882_s13 }
 0x89a   : > { %v1436_v52 = vpop.xlane.xlu0 %1435 }
 0x89b   : > { %v1437_v53 = vsub.f32 %v1433_v50, %v1436_v52 }
 0x89d   : > { %v1438_v54 = vmul.f32 1.442695, %v1437_v53 }
 0x89e   : > { %v1446_v55 = vpop.permute.xlu0 %1445 }
 0x89f   : > { %1861 = vpow2.f32 %v1438_v54  ;;  %1818 = vmatpush3.msra.mxu0 %v1446_v55 }
 0x8ac   : > { %v1862_v56 = vpop.eup %1861 }
 0x8ad   : > { %v1440_v8 = vsel %vm627_vm4, %v1862_v56, 0.0 }
 0x8ae   : > { %1441 = vadd.xlane.f32.xlu1 %v1440_v8 }
 0x8c9   : > { %v1349_v58 = vpop.f32.mrf.mxu0 }
 0x8ca   : > { %v1353_v59 = vadd.f32 %v1349_v58, %v1110_v57 }
 0x8cb   : > { %v1811_v33 = vpop.f32.mrf.mxu0 }
 0x937   : > { %v1442_v60 = vpop.xlane.xlu1 %1441 }
 0x938   : > { %1863 = vrcp.f32 %v1442_v60 }
 0x945   : > { %v1864_v61 = vpop.eup %1863 }
 0x946   : > { %v1444_v62 = vmul.f32 %v1864_v61, %v1862_v56 }
 0x948   : > { %1820 = vmatmul.mubr.msk.f32.vlgmr.msra.gmra.mxu0 %vm627_vm4, %v1444_v62 }
 0xa08   : > { %v1517_v63 = vpop.f32.mrf.mxu0 }
 0xa09   : > { %1825 = vmatmul.mubr.msk.f32.vlgmr.msra.gmra.mxu1 %vm627_vm4, %v1517_v63 }
 0xa0a   : > { %v1821_v1 = vpop.f32.mrf.mxu0 }
 0xac9   : > { %v1590_v3 = vpop.f32.mrf.mxu1 }
 0xaca   : > { %v1594_v4 = vadd.f32 %v1590_v3, %v1353_v59 }
 0xacb   : > { %v1826_v5 = vpop.f32.mrf.mxu1 }
 0xacc   : > { %v1601_v6 = vadd.f32 %v1708_v2, %v1594_v4 }
 0xace   : > { %v1602_v7 = vadd.f32 %v1601_v6, %v1960_v0 }
 0xad0   : > { %1603 = vst.msk [vmem:[%s412_s22] sm:$0xff] %vm416_vm0, %v1602_v7 }
 0xad1 PF: > { %s21_s17 = sadd.s32 1, %s1871_s17  }
 0xad2   : > { %p18_p4 = scmp.ge.s32.totalorder %s21_s17, 4  }
 0xad4   :  { %20 = sbr.rel (!%p18_p4) target bundleno = 1 (0x1), region = 100 }

</bundles_post_ra>
